<compile_context>
chip_gen: v7x
topology: tpu7x:2x2x1
jax: 0.10.0
libtpu: 0.0.40
codegen_flags: <defaults>
</compile_context>

<pallas_src>
import math

import jax
import jax.numpy as jnp
from jax.experimental import pallas as pl
from jax.experimental.pallas import tpu as pltpu

# ----- model dims (small, consistent with a transformer decoder) -------------
B, S, D, H, DFF, NLAYERS = 2, 8, 32, 4, 64, 2
DH = D // H
EPS = 1e-5
NEG_INF = -1e9

# row order inside the stacked (D, D) weight blob (per layer)
_W_Q_SA, _W_K_SA, _W_V_SA, _W_O_SA, _W_Q_CA, _W_K_CA, _W_V_CA, _W_O_CA = range(8)
# row order inside the stacked (1, D) vector blob (per layer)
(_B_Q_SA, _B_K_SA, _B_V_SA, _B_O_SA,
 _B_Q_CA, _B_K_CA, _B_V_CA, _B_O_CA,
 _B_2,
 _LN1_G, _LN1_B, _LN2_G, _LN2_B, _LN3_G, _LN3_B) = range(15)
_NVEC = 15


# ----------------------------- fused Pallas kernel ---------------------------
def _fused_decoder_kernel(x_ref, enc_ref, msa_ref, mca_ref, hsel_ref,
                          wdd_ref, w1_ref, w2_ref, vec_ref, b1_ref, o_ref):
    """Whole decoder stack in one kernel invocation, everything VMEM-resident.

    x_ref:   (B*S, D)      f32
    enc_ref: (B*S_src, D)  f32
    msa_ref: (B*H*S, B*S)      additive mask (0 / -1e9), self-attention
    mca_ref: (B*H*S, B*S_src)  additive mask (0 / -1e9), cross-attention
    hsel_ref:(1, H, 1, D)  per-head lane selector (1 on head h's DH lanes)
    wdd_ref: (L, 8, D, D)  bf16  stacked (D,D) weights (order: _W_*)
    w1_ref:  (L, D, DFF)   bf16
    w2_ref:  (L, DFF, D)   bf16
    vec_ref: (L, 15, 1, D) f32   stacked bias/LN vectors (order: _B_*/_LN*)
    b1_ref:  (L, 1, DFF)   f32
    """
    x = x_ref[...]                                   # (B*S, D) f32
    enc_bf = enc_ref[...].astype(jnp.bfloat16)       # (B*S_src, D) bf16
    mask_sa = msa_ref[...]                           # (B*H*S, B*S)
    mask_ca = mca_ref[...]                           # (B*H*S, B*S_src)
    head_sel = hsel_ref[...]                         # (1, H, 1, D) f32

    def layernorm(z, g, b):
        mu = jnp.mean(z, axis=-1, keepdims=True)
        c = z - mu
        var = jnp.mean(c * c, axis=-1, keepdims=True)
        return c * jax.lax.rsqrt(var + EPS) * g + b

    def mha(q, k, v, add_mask):
        # q: (B*Sq, D) f32 (already scaled by 1/sqrt(DH) via the weights)
        # k, v: (B*Sk, D) f32.  Heads stay packed in the lane dim.
        s_q = q.shape[0] // B
        s_k = k.shape[0] // B
        # Block-diagonal head packing: replicate q per head with the non-head
        # lanes zeroed, so ONE matmul yields all (batch, head) score blocks.
        q_bd = (q.reshape(B, 1, s_q, D) * head_sel).reshape(B * H * s_q, D)
        scores = jax.lax.dot_general(
            q_bd.astype(jnp.bfloat16), k.astype(jnp.bfloat16),
            (((1,), (1,)), ((), ())),
            preferred_element_type=jnp.float32)      # (B*H*Sq, B*Sk)
        # additive mask also kills cross-batch blocks of the packed scores
        scores = scores + add_mask
        scores = scores - jnp.max(scores, axis=-1, keepdims=True)
        p = jnp.exp(scores)
        p = p * pl.reciprocal(jnp.sum(p, axis=-1, keepdims=True), approx=True)
        pv = jnp.dot(p.astype(jnp.bfloat16), v.astype(jnp.bfloat16),
                     preferred_element_type=jnp.float32)   # (B*H*Sq, D)
        # Recombine heads: keep only head-h lanes of head-h's row block, then
        # sum over the (leading) head axis — no concatenates, no lane slices.
        out = jnp.sum(pv.reshape(B, H, s_q, D) * head_sel, axis=1)  # (B,Sq,D)
        return out.reshape(B * s_q, D)

    for l in range(NLAYERS):                         # static, unrolled
        w = lambda i: wdd_ref[l, i]                  # (D, D)  bf16
        vec = lambda i: vec_ref[l, i]                # (1, D)  f32

        # ---- masked self-attention --------------------------------------
        x_bf = x.astype(jnp.bfloat16)
        q = jnp.dot(x_bf, w(_W_Q_SA), preferred_element_type=jnp.float32) + vec(_B_Q_SA)
        k = jnp.dot(x_bf, w(_W_K_SA), preferred_element_type=jnp.float32) + vec(_B_K_SA)
        v = jnp.dot(x_bf, w(_W_V_SA), preferred_element_type=jnp.float32) + vec(_B_V_SA)
        a = mha(q, k, v, mask_sa)
        a = jnp.dot(a.astype(jnp.bfloat16), w(_W_O_SA),
                    preferred_element_type=jnp.float32) + vec(_B_O_SA)
        x = layernorm(x + a, vec(_LN1_G), vec(_LN1_B))

        # ---- cross-attention over encoder output -------------------------
        x_bf = x.astype(jnp.bfloat16)
        q = jnp.dot(x_bf, w(_W_Q_CA), preferred_element_type=jnp.float32) + vec(_B_Q_CA)
        k = jnp.dot(enc_bf, w(_W_K_CA), preferred_element_type=jnp.float32) + vec(_B_K_CA)
        v = jnp.dot(enc_bf, w(_W_V_CA), preferred_element_type=jnp.float32) + vec(_B_V_CA)
        c = mha(q, k, v, mask_ca)
        c = jnp.dot(c.astype(jnp.bfloat16), w(_W_O_CA),
                    preferred_element_type=jnp.float32) + vec(_B_O_CA)
        x = layernorm(x + c, vec(_LN2_G), vec(_LN2_B))

        # ---- feed-forward -------------------------------------------------
        x_bf = x.astype(jnp.bfloat16)
        h1 = jnp.maximum(
            jnp.dot(x_bf, w1_ref[l], preferred_element_type=jnp.float32)
            + b1_ref[l], 0.0)
        f = jnp.dot(h1.astype(jnp.bfloat16), w2_ref[l],
                    preferred_element_type=jnp.float32) + vec(_B_2)
        x = layernorm(x + f, vec(_LN3_G), vec(_LN3_B))

    o_ref[...] = x.astype(o_ref.dtype)


# ----------------------------- mask / wrapper --------------------------------
def _pack_additive_mask(keep, n_heads):
    """keep: (B, Sq, Sk) with 1 = attend.  Returns (B*H*Sq, B*Sk) additive
    mask (0 / -1e9) matching the block-diagonal packed score matrix, with the
    cross-batch blocks also masked out."""
    b, s_q, s_k = keep.shape
    same_batch = jnp.eye(b, dtype=jnp.float32)
    allow = keep[:, None, :, None, :] * same_batch[:, None, None, :, None]
    allow = jnp.broadcast_to(allow, (b, n_heads, s_q, b, s_k))
    add = jnp.where(allow > 0, 0.0, NEG_INF).astype(jnp.float32)
    return add.reshape(b * n_heads * s_q, b * s_k)


def decoder_forward(packed, x, enc, src_mask, tgt_mask):
    """Mirrors Decoder.forward: one fused Pallas call for the whole stack."""
    b, s, d = x.shape
    s_src = enc.shape[1]
    x2d = x.reshape(b * s, d).astype(jnp.float32)
    enc2d = enc.reshape(b * s_src, d).astype(jnp.float32)

    keep_tgt = tgt_mask.astype(jnp.float32).reshape(b, s, s)
    keep_src = jnp.broadcast_to(
        src_mask.astype(jnp.float32).reshape(b, 1, s_src), (b, s, s_src))
    mask_sa = _pack_additive_mask(keep_tgt, H)       # (B*H*S, B*S)
    mask_ca = _pack_additive_mask(keep_src, H)       # (B*H*S, B*S_src)

    # per-head lane selector, shape (1, H, 1, D): 1 on head h's DH lanes
    head_sel = (jnp.arange(d, dtype=jnp.int32)[None, None, None, :] // DH
                == jnp.arange(H, dtype=jnp.int32)[None, :, None, None]
                ).astype(jnp.float32)

    vmem = pl.BlockSpec(memory_space=pltpu.MemorySpace.VMEM)
    out2d = pl.pallas_call(
        _fused_decoder_kernel,
        out_shape=jax.ShapeDtypeStruct((b * s, d), jnp.float32),
        in_specs=[vmem] * 10,
        out_specs=vmem,
        input_output_aliases={0: 0},   # result overwrites x2d buffer in place
    )(x2d, enc2d, mask_sa, mask_ca, head_sel, *packed)
    return out2d.reshape(b, s, d)


# ----------------------------- parameter init / packing ----------------------
def init_params(key):
    layers = []
    sc = 1.0 / math.sqrt(D)

    def nrm(k, shape, scl):
        return jax.random.normal(k, shape, jnp.float32) * scl

    for _ in range(NLAYERS):
        key, *ks = jax.random.split(key, 11)
        layers.append({
            "wq_sa": nrm(ks[0], (D, D), sc), "bq_sa": jnp.zeros((1, D), jnp.float32),
            "wk_sa": nrm(ks[1], (D, D), sc), "bk_sa": jnp.zeros((1, D), jnp.float32),
            "wv_sa": nrm(ks[2], (D, D), sc), "bv_sa": jnp.zeros((1, D), jnp.float32),
            "wo_sa": nrm(ks[3], (D, D), sc), "bo_sa": jnp.zeros((1, D), jnp.float32),
            "wq_ca": nrm(ks[4], (D, D), sc), "bq_ca": jnp.zeros((1, D), jnp.float32),
            "wk_ca": nrm(ks[5], (D, D), sc), "bk_ca": jnp.zeros((1, D), jnp.float32),
            "wv_ca": nrm(ks[6], (D, D), sc), "bv_ca": jnp.zeros((1, D), jnp.float32),
            "wo_ca": nrm(ks[7], (D, D), sc), "bo_ca": jnp.zeros((1, D), jnp.float32),
            "w1": nrm(ks[8], (D, DFF), sc), "b1": jnp.zeros((1, DFF), jnp.float32),
            "w2": nrm(ks[9], (DFF, D), 1.0 / math.sqrt(DFF)),
            "b2": jnp.zeros((1, D), jnp.float32),
            "ln1_g": jnp.ones((1, D), jnp.float32), "ln1_b": jnp.zeros((1, D), jnp.float32),
            "ln2_g": jnp.ones((1, D), jnp.float32), "ln2_b": jnp.zeros((1, D), jnp.float32),
            "ln3_g": jnp.ones((1, D), jnp.float32), "ln3_b": jnp.zeros((1, D), jnp.float32),
        })
    return layers


def pack_params(layers):
    """Pack per-layer params into 5 stacked kernel operands.

    Matmul weights are cast to bfloat16 (MXU-native); bias/LN vectors stay
    f32.  The 1/sqrt(DH) attention scale is folded into the Q weights/biases
    (a one-time, semantics-preserving transform)."""
    qs = 1.0 / math.sqrt(DH)
    wdd, w1s, w2s, vecs, b1s = [], [], [], [], []
    for p in layers:
        wdd.append(jnp.stack([
            p["wq_sa"] * qs, p["wk_sa"], p["wv_sa"], p["wo_sa"],
            p["wq_ca"] * qs, p["wk_ca"], p["wv_ca"], p["wo_ca"]]))
        w1s.append(p["w1"])
        w2s.append(p["w2"])
        vecs.append(jnp.stack([
            p["bq_sa"] * qs, p["bk_sa"], p["bv_sa"], p["bo_sa"],
            p["bq_ca"] * qs, p["bk_ca"], p["bv_ca"], p["bo_ca"],
            p["b2"],
            p["ln1_g"], p["ln1_b"], p["ln2_g"], p["ln2_b"],
            p["ln3_g"], p["ln3_b"]]))
        b1s.append(p["b1"])
    return (jnp.stack(wdd).astype(jnp.bfloat16),    # (L, 8, D, D)
            jnp.stack(w1s).astype(jnp.bfloat16),    # (L, D, DFF)
            jnp.stack(w2s).astype(jnp.bfloat16),    # (L, DFF, D)
            jnp.stack(vecs).astype(jnp.float32),    # (L, 15, 1, D)
            jnp.stack(b1s).astype(jnp.float32))     # (L, 1, DFF)


# ----------------------------------- main -------------------------------------
if __name__ == "__main__":
    root = jax.random.PRNGKey(0)
    kp, kx, ke = jax.random.split(root, 3)

    packed = pack_params(init_params(kp))
    x = jax.random.normal(kx, (B, S, D), jnp.float32)
    enc_out = jax.random.normal(ke, (B, S, D), jnp.float32)

    # src_mask: (B, 1, 1, S_src) all valid; target_mask: (B, 1, S, S) causal.
    src_mask = jnp.ones((B, 1, 1, S), jnp.float32)
    causal = jnp.tril(jnp.ones((S, S), jnp.float32))
    tgt_mask = jnp.broadcast_to(causal, (B, 1, S, S))

    fwd = jax.jit(decoder_forward)
    out = fwd(packed, x, enc_out, src_mask, tgt_mask)
    out = jax.block_until_ready(out)
    assert out.shape == (B, S, D)
    assert bool(jnp.all(jnp.isfinite(out)))
    print("KERNEL_OK")
</pallas_src>

<mosaic_0001>
module attributes {stable_mosaic.version = 11 : i64} {
  func.func @_fused_decoder_kernel(%arg0: memref<16x32xf32, #tpu.memory_space<vmem>>, %arg1: memref<16x32xf32, #tpu.memory_space<vmem>>, %arg2: memref<64x16xf32, #tpu.memory_space<vmem>>, %arg3: memref<64x16xf32, #tpu.memory_space<vmem>>, %arg4: memref<1x4x1x32xf32, #tpu.memory_space<vmem>>, %arg5: memref<2x8x32x32xbf16, #tpu.memory_space<vmem>>, %arg6: memref<2x32x64xbf16, #tpu.memory_space<vmem>>, %arg7: memref<2x64x32xbf16, #tpu.memory_space<vmem>>, %arg8: memref<2x15x1x32xf32, #tpu.memory_space<vmem>>, %arg9: memref<2x1x64xf32, #tpu.memory_space<vmem>>, %arg10: memref<16x32xf32, #tpu.memory_space<vmem>>) attributes {dimension_semantics = [], scalar_prefetch = 0 : i64, scratch_operands = 0 : i64, tpu.core_type = #tpu.core_type<tc>} {
    %c0 = arith.constant 0 : index
    %c0_0 = arith.constant 0 : index
    %0 = vector.load %arg0[%c0, %c0_0] : memref<16x32xf32, #tpu.memory_space<vmem>>, vector<16x32xf32>
    %c0_1 = arith.constant 0 : index
    %c0_2 = arith.constant 0 : index
    %1 = vector.load %arg1[%c0_1, %c0_2] : memref<16x32xf32, #tpu.memory_space<vmem>>, vector<16x32xf32>
    %2 = arith.truncf %1 : vector<16x32xf32> to vector<16x32xbf16>
    %c0_3 = arith.constant 0 : index
    %c0_4 = arith.constant 0 : index
    %3 = vector.load %arg2[%c0_3, %c0_4] : memref<64x16xf32, #tpu.memory_space<vmem>>, vector<64x16xf32>
    %c0_5 = arith.constant 0 : index
    %c0_6 = arith.constant 0 : index
    %4 = vector.load %arg3[%c0_5, %c0_6] : memref<64x16xf32, #tpu.memory_space<vmem>>, vector<64x16xf32>
    %c0_7 = arith.constant 0 : index
    %c0_8 = arith.constant 0 : index
    %c0_9 = arith.constant 0 : index
    %c0_10 = arith.constant 0 : index
    %5 = vector.load %arg4[%c0_7, %c0_8, %c0_9, %c0_10] : memref<1x4x1x32xf32, #tpu.memory_space<vmem>>, vector<1x4x1x32xf32>
    %6 = arith.truncf %0 : vector<16x32xf32> to vector<16x32xbf16>
    %c0_11 = arith.constant 0 : index
    %c0_12 = arith.constant 0 : index
    %c0_13 = arith.constant 0 : index
    %c0_14 = arith.constant 0 : index
    %7 = vector.load %arg5[%c0_11, %c0_12, %c0_13, %c0_14] : memref<2x8x32x32xbf16, #tpu.memory_space<vmem>>, vector<1x1x32x32xbf16>
    %8 = vector.shape_cast %7 : vector<1x1x32x32xbf16> to vector<32x32xbf16>
    %cst = arith.constant dense<0.000000e+00> : vector<16x32xf32>
    %9 = tpu.matmul %6, %8, %cst {dimension_numbers = #tpu.dot_dimension_numbers<[1], [0], [0], [1], [0, 0, 1, 1], [], []>} : vector<16x32xbf16>, vector<32x32xbf16>, vector<16x32xf32> -> vector<16x32xf32>
    %c0_15 = arith.constant 0 : index
    %c0_16 = arith.constant 0 : index
    %c0_17 = arith.constant 0 : index
    %c0_18 = arith.constant 0 : index
    %10 = vector.load %arg8[%c0_15, %c0_16, %c0_17, %c0_18] : memref<2x15x1x32xf32, #tpu.memory_space<vmem>>, vector<1x1x1x32xf32>
    %11 = vector.shape_cast %10 : vector<1x1x1x32xf32> to vector<1x32xf32>
    %12 = vector.broadcast %11 : vector<1x32xf32> to vector<16x32xf32>
    %13 = arith.addf %9, %12 : vector<16x32xf32>
    %c0_19 = arith.constant 0 : index
    %c1 = arith.constant 1 : index
    %c0_20 = arith.constant 0 : index
    %c0_21 = arith.constant 0 : index
    %14 = vector.load %arg5[%c0_19, %c1, %c0_20, %c0_21] : memref<2x8x32x32xbf16, #tpu.memory_space<vmem>>, vector<1x1x32x32xbf16>
    %15 = vector.shape_cast %14 : vector<1x1x32x32xbf16> to vector<32x32xbf16>
    %cst_22 = arith.constant dense<0.000000e+00> : vector<16x32xf32>
    %16 = tpu.matmul %6, %15, %cst_22 {dimension_numbers = #tpu.dot_dimension_numbers<[1], [0], [0], [1], [0, 0, 1, 1], [], []>} : vector<16x32xbf16>, vector<32x32xbf16>, vector<16x32xf32> -> vector<16x32xf32>
    %c0_23 = arith.constant 0 : index
    %c1_24 = arith.constant 1 : index
    %c0_25 = arith.constant 0 : index
    %c0_26 = arith.constant 0 : index
    %17 = vector.load %arg8[%c0_23, %c1_24, %c0_25, %c0_26] : memref<2x15x1x32xf32, #tpu.memory_space<vmem>>, vector<1x1x1x32xf32>
    %18 = vector.shape_cast %17 : vector<1x1x1x32xf32> to vector<1x32xf32>
    %19 = vector.broadcast %18 : vector<1x32xf32> to vector<16x32xf32>
    %20 = arith.addf %16, %19 : vector<16x32xf32>
    %c0_27 = arith.constant 0 : index
    %c2 = arith.constant 2 : index
    %c0_28 = arith.constant 0 : index
    %c0_29 = arith.constant 0 : index
    %21 = vector.load %arg5[%c0_27, %c2, %c0_28, %c0_29] : memref<2x8x32x32xbf16, #tpu.memory_space<vmem>>, vector<1x1x32x32xbf16>
    %22 = vector.shape_cast %21 : vector<1x1x32x32xbf16> to vector<32x32xbf16>
    %cst_30 = arith.constant dense<0.000000e+00> : vector<16x32xf32>
    %23 = tpu.matmul %6, %22, %cst_30 {dimension_numbers = #tpu.dot_dimension_numbers<[1], [0], [0], [1], [0, 0, 1, 1], [], []>} : vector<16x32xbf16>, vector<32x32xbf16>, vector<16x32xf32> -> vector<16x32xf32>
    %c0_31 = arith.constant 0 : index
    %c2_32 = arith.constant 2 : index
    %c0_33 = arith.constant 0 : index
    %c0_34 = arith.constant 0 : index
    %24 = vector.load %arg8[%c0_31, %c2_32, %c0_33, %c0_34] : memref<2x15x1x32xf32, #tpu.memory_space<vmem>>, vector<1x1x1x32xf32>
    %25 = vector.shape_cast %24 : vector<1x1x1x32xf32> to vector<1x32xf32>
    %26 = vector.broadcast %25 : vector<1x32xf32> to vector<16x32xf32>
    %27 = arith.addf %23, %26 : vector<16x32xf32>
    %28 = vector.shape_cast %13 : vector<16x32xf32> to vector<2x1x8x32xf32>
    %29 = vector.broadcast %28 : vector<2x1x8x32xf32> to vector<2x4x8x32xf32>
    %30 = vector.broadcast %5 : vector<1x4x1x32xf32> to vector<2x4x8x32xf32>
    %31 = arith.mulf %29, %30 : vector<2x4x8x32xf32>
    %32 = vector.shape_cast %31 : vector<2x4x8x32xf32> to vector<64x32xf32>
    %33 = arith.truncf %32 : vector<64x32xf32> to vector<64x32xbf16>
    %34 = arith.truncf %20 : vector<16x32xf32> to vector<16x32xbf16>
    %cst_35 = arith.constant dense<0.000000e+00> : vector<64x16xf32>
    %35 = tpu.matmul %33, %34, %cst_35 {dimension_numbers = #tpu.dot_dimension_numbers<[1], [1], [0], [0], [0, 0, 1, 0], [], []>} : vector<64x32xbf16>, vector<16x32xbf16>, vector<64x16xf32> -> vector<64x16xf32>
    %36 = arith.addf %35, %3 : vector<64x16xf32>
    %cst_36 = arith.constant dense<0xFF800000> : vector<64xf32>
    %37 = vector.multi_reduction <maximumf>, %36, %cst_36 [1] : vector<64x16xf32> to vector<64xf32>
    %38 = vector.shape_cast %37 : vector<64xf32> to vector<64x1xf32>
    %39 = vector.broadcast %38 : vector<64x1xf32> to vector<64x16xf32>
    %40 = arith.subf %36, %39 : vector<64x16xf32>
    %41 = math.exp %40 : vector<64x16xf32>
    %cst_37 = arith.constant dense<0.000000e+00> : vector<64xf32>
    %42 = vector.multi_reduction <add>, %41, %cst_37 [1] : vector<64x16xf32> to vector<64xf32>
    %43 = vector.shape_cast %42 : vector<64xf32> to vector<64x1xf32>
    %44 = tpu.reciprocal %43 {approx = true} : vector<64x1xf32> -> vector<64x1xf32>
    %45 = vector.broadcast %44 : vector<64x1xf32> to vector<64x16xf32>
    %46 = arith.mulf %41, %45 : vector<64x16xf32>
    %47 = arith.truncf %46 : vector<64x16xf32> to vector<64x16xbf16>
    %48 = arith.truncf %27 : vector<16x32xf32> to vector<16x32xbf16>
    %cst_38 = arith.constant dense<0.000000e+00> : vector<64x32xf32>
    %49 = tpu.matmul %47, %48, %cst_38 {dimension_numbers = #tpu.dot_dimension_numbers<[1], [0], [0], [1], [0, 0, 1, 1], [], []>} : vector<64x16xbf16>, vector<16x32xbf16>, vector<64x32xf32> -> vector<64x32xf32>
    %50 = vector.shape_cast %49 : vector<64x32xf32> to vector<2x4x8x32xf32>
    %51 = vector.broadcast %5 : vector<1x4x1x32xf32> to vector<2x4x8x32xf32>
    %52 = arith.mulf %50, %51 : vector<2x4x8x32xf32>
    %cst_39 = arith.constant dense<0.000000e+00> : vector<2x8x32xf32>
    %53 = vector.multi_reduction <add>, %52, %cst_39 [1] : vector<2x4x8x32xf32> to vector<2x8x32xf32>
    %54 = vector.shape_cast %53 : vector<2x8x32xf32> to vector<16x32xf32>
    %55 = arith.truncf %54 : vector<16x32xf32> to vector<16x32xbf16>
    %c0_40 = arith.constant 0 : index
    %c3 = arith.constant 3 : index
    %c0_41 = arith.constant 0 : index
    %c0_42 = arith.constant 0 : index
    %56 = vector.load %arg5[%c0_40, %c3, %c0_41, %c0_42] : memref<2x8x32x32xbf16, #tpu.memory_space<vmem>>, vector<1x1x32x32xbf16>
    %57 = vector.shape_cast %56 : vector<1x1x32x32xbf16> to vector<32x32xbf16>
    %cst_43 = arith.constant dense<0.000000e+00> : vector<16x32xf32>
    %58 = tpu.matmul %55, %57, %cst_43 {dimension_numbers = #tpu.dot_dimension_numbers<[1], [0], [0], [1], [0, 0, 1, 1], [], []>} : vector<16x32xbf16>, vector<32x32xbf16>, vector<16x32xf32> -> vector<16x32xf32>
    %c0_44 = arith.constant 0 : index
    %c3_45 = arith.constant 3 : index
    %c0_46 = arith.constant 0 : index
    %c0_47 = arith.constant 0 : index
    %59 = vector.load %arg8[%c0_44, %c3_45, %c0_46, %c0_47] : memref<2x15x1x32xf32, #tpu.memory_space<vmem>>, vector<1x1x1x32xf32>
    %60 = vector.shape_cast %59 : vector<1x1x1x32xf32> to vector<1x32xf32>
    %61 = vector.broadcast %60 : vector<1x32xf32> to vector<16x32xf32>
    %62 = arith.addf %58, %61 : vector<16x32xf32>
    %63 = arith.addf %0, %62 : vector<16x32xf32>
    %c0_48 = arith.constant 0 : index
    %c9 = arith.constant 9 : index
    %c0_49 = arith.constant 0 : index
    %c0_50 = arith.constant 0 : index
    %64 = vector.load %arg8[%c0_48, %c9, %c0_49, %c0_50] : memref<2x15x1x32xf32, #tpu.memory_space<vmem>>, vector<1x1x1x32xf32>
    %65 = vector.shape_cast %64 : vector<1x1x1x32xf32> to vector<1x32xf32>
    %c0_51 = arith.constant 0 : index
    %c10 = arith.constant 10 : index
    %c0_52 = arith.constant 0 : index
    %c0_53 = arith.constant 0 : index
    %66 = vector.load %arg8[%c0_51, %c10, %c0_52, %c0_53] : memref<2x15x1x32xf32, #tpu.memory_space<vmem>>, vector<1x1x1x32xf32>
    %67 = vector.shape_cast %66 : vector<1x1x1x32xf32> to vector<1x32xf32>
    %cst_54 = arith.constant dense<0.000000e+00> : vector<16xf32>
    %68 = vector.multi_reduction <add>, %63, %cst_54 [1] : vector<16x32xf32> to vector<16xf32>
    %69 = vector.shape_cast %68 : vector<16xf32> to vector<16x1xf32>
    %cst_55 = arith.constant 3.200000e+01 : f32
    %70 = vector.broadcast %cst_55 : f32 to vector<16x1xf32>
    %71 = arith.divf %69, %70 : vector<16x1xf32>
    %72 = vector.broadcast %71 : vector<16x1xf32> to vector<16x32xf32>
    %73 = arith.subf %63, %72 : vector<16x32xf32>
    %74 = arith.mulf %73, %73 : vector<16x32xf32>
    %cst_56 = arith.constant dense<0.000000e+00> : vector<16xf32>
    %75 = vector.multi_reduction <add>, %74, %cst_56 [1] : vector<16x32xf32> to vector<16xf32>
    %76 = vector.shape_cast %75 : vector<16xf32> to vector<16x1xf32>
    %cst_57 = arith.constant 3.200000e+01 : f32
    %77 = vector.broadcast %cst_57 : f32 to vector<16x1xf32>
    %78 = arith.divf %76, %77 : vector<16x1xf32>
    %cst_58 = arith.constant 9.99999974E-6 : f32
    %79 = vector.broadcast %cst_58 : f32 to vector<16x1xf32>
    %80 = arith.addf %78, %79 : vector<16x1xf32>
    %81 = math.rsqrt %80 : vector<16x1xf32>
    %82 = vector.broadcast %81 : vector<16x1xf32> to vector<16x32xf32>
    %83 = arith.mulf %73, %82 : vector<16x32xf32>
    %84 = vector.broadcast %65 : vector<1x32xf32> to vector<16x32xf32>
    %85 = arith.mulf %83, %84 : vector<16x32xf32>
    %86 = vector.broadcast %67 : vector<1x32xf32> to vector<16x32xf32>
    %87 = arith.addf %85, %86 : vector<16x32xf32>
    %88 = arith.truncf %87 : vector<16x32xf32> to vector<16x32xbf16>
    %c0_59 = arith.constant 0 : index
    %c4 = arith.constant 4 : index
    %c0_60 = arith.constant 0 : index
    %c0_61 = arith.constant 0 : index
    %89 = vector.load %arg5[%c0_59, %c4, %c0_60, %c0_61] : memref<2x8x32x32xbf16, #tpu.memory_space<vmem>>, vector<1x1x32x32xbf16>
    %90 = vector.shape_cast %89 : vector<1x1x32x32xbf16> to vector<32x32xbf16>
    %cst_62 = arith.constant dense<0.000000e+00> : vector<16x32xf32>
    %91 = tpu.matmul %88, %90, %cst_62 {dimension_numbers = #tpu.dot_dimension_numbers<[1], [0], [0], [1], [0, 0, 1, 1], [], []>} : vector<16x32xbf16>, vector<32x32xbf16>, vector<16x32xf32> -> vector<16x32xf32>
    %c0_63 = arith.constant 0 : index
    %c4_64 = arith.constant 4 : index
    %c0_65 = arith.constant 0 : index
    %c0_66 = arith.constant 0 : index
    %92 = vector.load %arg8[%c0_63, %c4_64, %c0_65, %c0_66] : memref<2x15x1x32xf32, #tpu.memory_space<vmem>>, vector<1x1x1x32xf32>
    %93 = vector.shape_cast %92 : vector<1x1x1x32xf32> to vector<1x32xf32>
    %94 = vector.broadcast %93 : vector<1x32xf32> to vector<16x32xf32>
    %95 = arith.addf %91, %94 : vector<16x32xf32>
    %c0_67 = arith.constant 0 : index
    %c5 = arith.constant 5 : index
    %c0_68 = arith.constant 0 : index
    %c0_69 = arith.constant 0 : index
    %96 = vector.load %arg5[%c0_67, %c5, %c0_68, %c0_69] : memref<2x8x32x32xbf16, #tpu.memory_space<vmem>>, vector<1x1x32x32xbf16>
    %97 = vector.shape_cast %96 : vector<1x1x32x32xbf16> to vector<32x32xbf16>
    %cst_70 = arith.constant dense<0.000000e+00> : vector<16x32xf32>
    %98 = tpu.matmul %2, %97, %cst_70 {dimension_numbers = #tpu.dot_dimension_numbers<[1], [0], [0], [1], [0, 0, 1, 1], [], []>} : vector<16x32xbf16>, vector<32x32xbf16>, vector<16x32xf32> -> vector<16x32xf32>
    %c0_71 = arith.constant 0 : index
    %c5_72 = arith.constant 5 : index
    %c0_73 = arith.constant 0 : index
    %c0_74 = arith.constant 0 : index
    %99 = vector.load %arg8[%c0_71, %c5_72, %c0_73, %c0_74] : memref<2x15x1x32xf32, #tpu.memory_space<vmem>>, vector<1x1x1x32xf32>
    %100 = vector.shape_cast %99 : vector<1x1x1x32xf32> to vector<1x32xf32>
    %101 = vector.broadcast %100 : vector<1x32xf32> to vector<16x32xf32>
    %102 = arith.addf %98, %101 : vector<16x32xf32>
    %c0_75 = arith.constant 0 : index
    %c6 = arith.constant 6 : index
    %c0_76 = arith.constant 0 : index
    %c0_77 = arith.constant 0 : index
    %103 = vector.load %arg5[%c0_75, %c6, %c0_76, %c0_77] : memref<2x8x32x32xbf16, #tpu.memory_space<vmem>>, vector<1x1x32x32xbf16>
    %104 = vector.shape_cast %103 : vector<1x1x32x32xbf16> to vector<32x32xbf16>
    %cst_78 = arith.constant dense<0.000000e+00> : vector<16x32xf32>
    %105 = tpu.matmul %2, %104, %cst_78 {dimension_numbers = #tpu.dot_dimension_numbers<[1], [0], [0], [1], [0, 0, 1, 1], [], []>} : vector<16x32xbf16>, vector<32x32xbf16>, vector<16x32xf32> -> vector<16x32xf32>
    %c0_79 = arith.constant 0 : index
    %c6_80 = arith.constant 6 : index
    %c0_81 = arith.constant 0 : index
    %c0_82 = arith.constant 0 : index
    %106 = vector.load %arg8[%c0_79, %c6_80, %c0_81, %c0_82] : memref<2x15x1x32xf32, #tpu.memory_space<vmem>>, vector<1x1x1x32xf32>
    %107 = vector.shape_cast %106 : vector<1x1x1x32xf32> to vector<1x32xf32>
    %108 = vector.broadcast %107 : vector<1x32xf32> to vector<16x32xf32>
    %109 = arith.addf %105, %108 : vector<16x32xf32>
    %110 = vector.shape_cast %95 : vector<16x32xf32> to vector<2x1x8x32xf32>
    %111 = vector.broadcast %110 : vector<2x1x8x32xf32> to vector<2x4x8x32xf32>
    %112 = vector.broadcast %5 : vector<1x4x1x32xf32> to vector<2x4x8x32xf32>
    %113 = arith.mulf %111, %112 : vector<2x4x8x32xf32>
    %114 = vector.shape_cast %113 : vector<2x4x8x32xf32> to vector<64x32xf32>
    %115 = arith.truncf %114 : vector<64x32xf32> to vector<64x32xbf16>
    %116 = arith.truncf %102 : vector<16x32xf32> to vector<16x32xbf16>
    %cst_83 = arith.constant dense<0.000000e+00> : vector<64x16xf32>
    %117 = tpu.matmul %115, %116, %cst_83 {dimension_numbers = #tpu.dot_dimension_numbers<[1], [1], [0], [0], [0, 0, 1, 0], [], []>} : vector<64x32xbf16>, vector<16x32xbf16>, vector<64x16xf32> -> vector<64x16xf32>
    %118 = arith.addf %117, %4 : vector<64x16xf32>
    %cst_84 = arith.constant dense<0xFF800000> : vector<64xf32>
    %119 = vector.multi_reduction <maximumf>, %118, %cst_84 [1] : vector<64x16xf32> to vector<64xf32>
    %120 = vector.shape_cast %119 : vector<64xf32> to vector<64x1xf32>
    %121 = vector.broadcast %120 : vector<64x1xf32> to vector<64x16xf32>
    %122 = arith.subf %118, %121 : vector<64x16xf32>
    %123 = math.exp %122 : vector<64x16xf32>
    %cst_85 = arith.constant dense<0.000000e+00> : vector<64xf32>
    %124 = vector.multi_reduction <add>, %123, %cst_85 [1] : vector<64x16xf32> to vector<64xf32>
    %125 = vector.shape_cast %124 : vector<64xf32> to vector<64x1xf32>
    %126 = tpu.reciprocal %125 {approx = true} : vector<64x1xf32> -> vector<64x1xf32>
    %127 = vector.broadcast %126 : vector<64x1xf32> to vector<64x16xf32>
    %128 = arith.mulf %123, %127 : vector<64x16xf32>
    %129 = arith.truncf %128 : vector<64x16xf32> to vector<64x16xbf16>
    %130 = arith.truncf %109 : vector<16x32xf32> to vector<16x32xbf16>
    %cst_86 = arith.constant dense<0.000000e+00> : vector<64x32xf32>
    %131 = tpu.matmul %129, %130, %cst_86 {dimension_numbers = #tpu.dot_dimension_numbers<[1], [0], [0], [1], [0, 0, 1, 1], [], []>} : vector<64x16xbf16>, vector<16x32xbf16>, vector<64x32xf32> -> vector<64x32xf32>
    %132 = vector.shape_cast %131 : vector<64x32xf32> to vector<2x4x8x32xf32>
    %133 = vector.broadcast %5 : vector<1x4x1x32xf32> to vector<2x4x8x32xf32>
    %134 = arith.mulf %132, %133 : vector<2x4x8x32xf32>
    %cst_87 = arith.constant dense<0.000000e+00> : vector<2x8x32xf32>
    %135 = vector.multi_reduction <add>, %134, %cst_87 [1] : vector<2x4x8x32xf32> to vector<2x8x32xf32>
    %136 = vector.shape_cast %135 : vector<2x8x32xf32> to vector<16x32xf32>
    %137 = arith.truncf %136 : vector<16x32xf32> to vector<16x32xbf16>
    %c0_88 = arith.constant 0 : index
    %c7 = arith.constant 7 : index
    %c0_89 = arith.constant 0 : index
    %c0_90 = arith.constant 0 : index
    %138 = vector.load %arg5[%c0_88, %c7, %c0_89, %c0_90] : memref<2x8x32x32xbf16, #tpu.memory_space<vmem>>, vector<1x1x32x32xbf16>
    %139 = vector.shape_cast %138 : vector<1x1x32x32xbf16> to vector<32x32xbf16>
    %cst_91 = arith.constant dense<0.000000e+00> : vector<16x32xf32>
    %140 = tpu.matmul %137, %139, %cst_91 {dimension_numbers = #tpu.dot_dimension_numbers<[1], [0], [0], [1], [0, 0, 1, 1], [], []>} : vector<16x32xbf16>, vector<32x32xbf16>, vector<16x32xf32> -> vector<16x32xf32>
    %c0_92 = arith.constant 0 : index
    %c7_93 = arith.constant 7 : index
    %c0_94 = arith.constant 0 : index
    %c0_95 = arith.constant 0 : index
    %141 = vector.load %arg8[%c0_92, %c7_93, %c0_94, %c0_95] : memref<2x15x1x32xf32, #tpu.memory_space<vmem>>, vector<1x1x1x32xf32>
    %142 = vector.shape_cast %141 : vector<1x1x1x32xf32> to vector<1x32xf32>
    %143 = vector.broadcast %142 : vector<1x32xf32> to vector<16x32xf32>
    %144 = arith.addf %140, %143 : vector<16x32xf32>
    %145 = arith.addf %87, %144 : vector<16x32xf32>
    %c0_96 = arith.constant 0 : index
    %c11 = arith.constant 11 : index
    %c0_97 = arith.constant 0 : index
    %c0_98 = arith.constant 0 : index
    %146 = vector.load %arg8[%c0_96, %c11, %c0_97, %c0_98] : memref<2x15x1x32xf32, #tpu.memory_space<vmem>>, vector<1x1x1x32xf32>
    %147 = vector.shape_cast %146 : vector<1x1x1x32xf32> to vector<1x32xf32>
    %c0_99 = arith.constant 0 : index
    %c12 = arith.constant 12 : index
    %c0_100 = arith.constant 0 : index
    %c0_101 = arith.constant 0 : index
    %148 = vector.load %arg8[%c0_99, %c12, %c0_100, %c0_101] : memref<2x15x1x32xf32, #tpu.memory_space<vmem>>, vector<1x1x1x32xf32>
    %149 = vector.shape_cast %148 : vector<1x1x1x32xf32> to vector<1x32xf32>
    %cst_102 = arith.constant dense<0.000000e+00> : vector<16xf32>
    %150 = vector.multi_reduction <add>, %145, %cst_102 [1] : vector<16x32xf32> to vector<16xf32>
    %151 = vector.shape_cast %150 : vector<16xf32> to vector<16x1xf32>
    %cst_103 = arith.constant 3.200000e+01 : f32
    %152 = vector.broadcast %cst_103 : f32 to vector<16x1xf32>
    %153 = arith.divf %151, %152 : vector<16x1xf32>
    %154 = vector.broadcast %153 : vector<16x1xf32> to vector<16x32xf32>
    %155 = arith.subf %145, %154 : vector<16x32xf32>
    %156 = arith.mulf %155, %155 : vector<16x32xf32>
    %cst_104 = arith.constant dense<0.000000e+00> : vector<16xf32>
    %157 = vector.multi_reduction <add>, %156, %cst_104 [1] : vector<16x32xf32> to vector<16xf32>
    %158 = vector.shape_cast %157 : vector<16xf32> to vector<16x1xf32>
    %cst_105 = arith.constant 3.200000e+01 : f32
    %159 = vector.broadcast %cst_105 : f32 to vector<16x1xf32>
    %160 = arith.divf %158, %159 : vector<16x1xf32>
    %cst_106 = arith.constant 9.99999974E-6 : f32
    %161 = vector.broadcast %cst_106 : f32 to vector<16x1xf32>
    %162 = arith.addf %160, %161 : vector<16x1xf32>
    %163 = math.rsqrt %162 : vector<16x1xf32>
    %164 = vector.broadcast %163 : vector<16x1xf32> to vector<16x32xf32>
    %165 = arith.mulf %155, %164 : vector<16x32xf32>
    %166 = vector.broadcast %147 : vector<1x32xf32> to vector<16x32xf32>
    %167 = arith.mulf %165, %166 : vector<16x32xf32>
    %168 = vector.broadcast %149 : vector<1x32xf32> to vector<16x32xf32>
    %169 = arith.addf %167, %168 : vector<16x32xf32>
    %170 = arith.truncf %169 : vector<16x32xf32> to vector<16x32xbf16>
    %c0_107 = arith.constant 0 : index
    %c0_108 = arith.constant 0 : index
    %c0_109 = arith.constant 0 : index
    %171 = vector.load %arg6[%c0_107, %c0_108, %c0_109] : memref<2x32x64xbf16, #tpu.memory_space<vmem>>, vector<1x32x64xbf16>
    %172 = vector.shape_cast %171 : vector<1x32x64xbf16> to vector<32x64xbf16>
    %cst_110 = arith.constant dense<0.000000e+00> : vector<16x64xf32>
    %173 = tpu.matmul %170, %172, %cst_110 {dimension_numbers = #tpu.dot_dimension_numbers<[1], [0], [0], [1], [0, 0, 1, 1], [], []>} : vector<16x32xbf16>, vector<32x64xbf16>, vector<16x64xf32> -> vector<16x64xf32>
    %c0_111 = arith.constant 0 : index
    %c0_112 = arith.constant 0 : index
    %c0_113 = arith.constant 0 : index
    %174 = vector.load %arg9[%c0_111, %c0_112, %c0_113] : memref<2x1x64xf32, #tpu.memory_space<vmem>>, vector<1x1x64xf32>
    %175 = vector.shape_cast %174 : vector<1x1x64xf32> to vector<1x64xf32>
    %176 = vector.broadcast %175 : vector<1x64xf32> to vector<16x64xf32>
    %177 = arith.addf %173, %176 : vector<16x64xf32>
    %cst_114 = arith.constant 0.000000e+00 : f32
    %178 = vector.broadcast %cst_114 : f32 to vector<16x64xf32>
    %179 = arith.maximumf %177, %178 : vector<16x64xf32>
    %180 = arith.truncf %179 : vector<16x64xf32> to vector<16x64xbf16>
    %c0_115 = arith.constant 0 : index
    %c0_116 = arith.constant 0 : index
    %c0_117 = arith.constant 0 : index
    %181 = vector.load %arg7[%c0_115, %c0_116, %c0_117] : memref<2x64x32xbf16, #tpu.memory_space<vmem>>, vector<1x64x32xbf16>
    %182 = vector.shape_cast %181 : vector<1x64x32xbf16> to vector<64x32xbf16>
    %cst_118 = arith.constant dense<0.000000e+00> : vector<16x32xf32>
    %183 = tpu.matmul %180, %182, %cst_118 {dimension_numbers = #tpu.dot_dimension_numbers<[1], [0], [0], [1], [0, 0, 1, 1], [], []>} : vector<16x64xbf16>, vector<64x32xbf16>, vector<16x32xf32> -> vector<16x32xf32>
    %c0_119 = arith.constant 0 : index
    %c8 = arith.constant 8 : index
    %c0_120 = arith.constant 0 : index
    %c0_121 = arith.constant 0 : index
    %184 = vector.load %arg8[%c0_119, %c8, %c0_120, %c0_121] : memref<2x15x1x32xf32, #tpu.memory_space<vmem>>, vector<1x1x1x32xf32>
    %185 = vector.shape_cast %184 : vector<1x1x1x32xf32> to vector<1x32xf32>
    %186 = vector.broadcast %185 : vector<1x32xf32> to vector<16x32xf32>
    %187 = arith.addf %183, %186 : vector<16x32xf32>
    %188 = arith.addf %169, %187 : vector<16x32xf32>
    %c0_122 = arith.constant 0 : index
    %c13 = arith.constant 13 : index
    %c0_123 = arith.constant 0 : index
    %c0_124 = arith.constant 0 : index
    %189 = vector.load %arg8[%c0_122, %c13, %c0_123, %c0_124] : memref<2x15x1x32xf32, #tpu.memory_space<vmem>>, vector<1x1x1x32xf32>
    %190 = vector.shape_cast %189 : vector<1x1x1x32xf32> to vector<1x32xf32>
    %c0_125 = arith.constant 0 : index
    %c14 = arith.constant 14 : index
    %c0_126 = arith.constant 0 : index
    %c0_127 = arith.constant 0 : index
    %191 = vector.load %arg8[%c0_125, %c14, %c0_126, %c0_127] : memref<2x15x1x32xf32, #tpu.memory_space<vmem>>, vector<1x1x1x32xf32>
    %192 = vector.shape_cast %191 : vector<1x1x1x32xf32> to vector<1x32xf32>
    %cst_128 = arith.constant dense<0.000000e+00> : vector<16xf32>
    %193 = vector.multi_reduction <add>, %188, %cst_128 [1] : vector<16x32xf32> to vector<16xf32>
    %194 = vector.shape_cast %193 : vector<16xf32> to vector<16x1xf32>
    %cst_129 = arith.constant 3.200000e+01 : f32
    %195 = vector.broadcast %cst_129 : f32 to vector<16x1xf32>
    %196 = arith.divf %194, %195 : vector<16x1xf32>
    %197 = vector.broadcast %196 : vector<16x1xf32> to vector<16x32xf32>
    %198 = arith.subf %188, %197 : vector<16x32xf32>
    %199 = arith.mulf %198, %198 : vector<16x32xf32>
    %cst_130 = arith.constant dense<0.000000e+00> : vector<16xf32>
    %200 = vector.multi_reduction <add>, %199, %cst_130 [1] : vector<16x32xf32> to vector<16xf32>
    %201 = vector.shape_cast %200 : vector<16xf32> to vector<16x1xf32>
    %cst_131 = arith.constant 3.200000e+01 : f32
    %202 = vector.broadcast %cst_131 : f32 to vector<16x1xf32>
    %203 = arith.divf %201, %202 : vector<16x1xf32>
    %cst_132 = arith.constant 9.99999974E-6 : f32
    %204 = vector.broadcast %cst_132 : f32 to vector<16x1xf32>
    %205 = arith.addf %203, %204 : vector<16x1xf32>
    %206 = math.rsqrt %205 : vector<16x1xf32>
    %207 = vector.broadcast %206 : vector<16x1xf32> to vector<16x32xf32>
    %208 = arith.mulf %198, %207 : vector<16x32xf32>
    %209 = vector.broadcast %190 : vector<1x32xf32> to vector<16x32xf32>
    %210 = arith.mulf %208, %209 : vector<16x32xf32>
    %211 = vector.broadcast %192 : vector<1x32xf32> to vector<16x32xf32>
    %212 = arith.addf %210, %211 : vector<16x32xf32>
    %213 = arith.truncf %212 : vector<16x32xf32> to vector<16x32xbf16>
    %c1_133 = arith.constant 1 : index
    %c0_134 = arith.constant 0 : index
    %c0_135 = arith.constant 0 : index
    %c0_136 = arith.constant 0 : index
    %214 = vector.load %arg5[%c1_133, %c0_134, %c0_135, %c0_136] : memref<2x8x32x32xbf16, #tpu.memory_space<vmem>>, vector<1x1x32x32xbf16>
    %215 = vector.shape_cast %214 : vector<1x1x32x32xbf16> to vector<32x32xbf16>
    %cst_137 = arith.constant dense<0.000000e+00> : vector<16x32xf32>
    %216 = tpu.matmul %213, %215, %cst_137 {dimension_numbers = #tpu.dot_dimension_numbers<[1], [0], [0], [1], [0, 0, 1, 1], [], []>} : vector<16x32xbf16>, vector<32x32xbf16>, vector<16x32xf32> -> vector<16x32xf32>
    %c1_138 = arith.constant 1 : index
    %c0_139 = arith.constant 0 : index
    %c0_140 = arith.constant 0 : index
    %c0_141 = arith.constant 0 : index
    %217 = vector.load %arg8[%c1_138, %c0_139, %c0_140, %c0_141] : memref<2x15x1x32xf32, #tpu.memory_space<vmem>>, vector<1x1x1x32xf32>
    %218 = vector.shape_cast %217 : vector<1x1x1x32xf32> to vector<1x32xf32>
    %219 = vector.broadcast %218 : vector<1x32xf32> to vector<16x32xf32>
    %220 = arith.addf %216, %219 : vector<16x32xf32>
    %c1_142 = arith.constant 1 : index
    %c1_143 = arith.constant 1 : index
    %c0_144 = arith.constant 0 : index
    %c0_145 = arith.constant 0 : index
    %221 = vector.load %arg5[%c1_142, %c1_143, %c0_144, %c0_145] : memref<2x8x32x32xbf16, #tpu.memory_space<vmem>>, vector<1x1x32x32xbf16>
    %222 = vector.shape_cast %221 : vector<1x1x32x32xbf16> to vector<32x32xbf16>
    %cst_146 = arith.constant dense<0.000000e+00> : vector<16x32xf32>
    %223 = tpu.matmul %213, %222, %cst_146 {dimension_numbers = #tpu.dot_dimension_numbers<[1], [0], [0], [1], [0, 0, 1, 1], [], []>} : vector<16x32xbf16>, vector<32x32xbf16>, vector<16x32xf32> -> vector<16x32xf32>
    %c1_147 = arith.constant 1 : index
    %c1_148 = arith.constant 1 : index
    %c0_149 = arith.constant 0 : index
    %c0_150 = arith.constant 0 : index
    %224 = vector.load %arg8[%c1_147, %c1_148, %c0_149, %c0_150] : memref<2x15x1x32xf32, #tpu.memory_space<vmem>>, vector<1x1x1x32xf32>
    %225 = vector.shape_cast %224 : vector<1x1x1x32xf32> to vector<1x32xf32>
    %226 = vector.broadcast %225 : vector<1x32xf32> to vector<16x32xf32>
    %227 = arith.addf %223, %226 : vector<16x32xf32>
    %c1_151 = arith.constant 1 : index
    %c2_152 = arith.constant 2 : index
    %c0_153 = arith.constant 0 : index
    %c0_154 = arith.constant 0 : index
    %228 = vector.load %arg5[%c1_151, %c2_152, %c0_153, %c0_154] : memref<2x8x32x32xbf16, #tpu.memory_space<vmem>>, vector<1x1x32x32xbf16>
    %229 = vector.shape_cast %228 : vector<1x1x32x32xbf16> to vector<32x32xbf16>
    %cst_155 = arith.constant dense<0.000000e+00> : vector<16x32xf32>
    %230 = tpu.matmul %213, %229, %cst_155 {dimension_numbers = #tpu.dot_dimension_numbers<[1], [0], [0], [1], [0, 0, 1, 1], [], []>} : vector<16x32xbf16>, vector<32x32xbf16>, vector<16x32xf32> -> vector<16x32xf32>
    %c1_156 = arith.constant 1 : index
    %c2_157 = arith.constant 2 : index
    %c0_158 = arith.constant 0 : index
    %c0_159 = arith.constant 0 : index
    %231 = vector.load %arg8[%c1_156, %c2_157, %c0_158, %c0_159] : memref<2x15x1x32xf32, #tpu.memory_space<vmem>>, vector<1x1x1x32xf32>
    %232 = vector.shape_cast %231 : vector<1x1x1x32xf32> to vector<1x32xf32>
    %233 = vector.broadcast %232 : vector<1x32xf32> to vector<16x32xf32>
    %234 = arith.addf %230, %233 : vector<16x32xf32>
    %235 = vector.shape_cast %220 : vector<16x32xf32> to vector<2x1x8x32xf32>
    %236 = vector.broadcast %235 : vector<2x1x8x32xf32> to vector<2x4x8x32xf32>
    %237 = vector.broadcast %5 : vector<1x4x1x32xf32> to vector<2x4x8x32xf32>
    %238 = arith.mulf %236, %237 : vector<2x4x8x32xf32>
    %239 = vector.shape_cast %238 : vector<2x4x8x32xf32> to vector<64x32xf32>
    %240 = arith.truncf %239 : vector<64x32xf32> to vector<64x32xbf16>
    %241 = arith.truncf %227 : vector<16x32xf32> to vector<16x32xbf16>
    %cst_160 = arith.constant dense<0.000000e+00> : vector<64x16xf32>
    %242 = tpu.matmul %240, %241, %cst_160 {dimension_numbers = #tpu.dot_dimension_numbers<[1], [1], [0], [0], [0, 0, 1, 0], [], []>} : vector<64x32xbf16>, vector<16x32xbf16>, vector<64x16xf32> -> vector<64x16xf32>
    %243 = arith.addf %242, %3 : vector<64x16xf32>
    %cst_161 = arith.constant dense<0xFF800000> : vector<64xf32>
    %244 = vector.multi_reduction <maximumf>, %243, %cst_161 [1] : vector<64x16xf32> to vector<64xf32>
    %245 = vector.shape_cast %244 : vector<64xf32> to vector<64x1xf32>
    %246 = vector.broadcast %245 : vector<64x1xf32> to vector<64x16xf32>
    %247 = arith.subf %243, %246 : vector<64x16xf32>
    %248 = math.exp %247 : vector<64x16xf32>
    %cst_162 = arith.constant dense<0.000000e+00> : vector<64xf32>
    %249 = vector.multi_reduction <add>, %248, %cst_162 [1] : vector<64x16xf32> to vector<64xf32>
    %250 = vector.shape_cast %249 : vector<64xf32> to vector<64x1xf32>
    %251 = tpu.reciprocal %250 {approx = true} : vector<64x1xf32> -> vector<64x1xf32>
    %252 = vector.broadcast %251 : vector<64x1xf32> to vector<64x16xf32>
    %253 = arith.mulf %248, %252 : vector<64x16xf32>
    %254 = arith.truncf %253 : vector<64x16xf32> to vector<64x16xbf16>
    %255 = arith.truncf %234 : vector<16x32xf32> to vector<16x32xbf16>
    %cst_163 = arith.constant dense<0.000000e+00> : vector<64x32xf32>
    %256 = tpu.matmul %254, %255, %cst_163 {dimension_numbers = #tpu.dot_dimension_numbers<[1], [0], [0], [1], [0, 0, 1, 1], [], []>} : vector<64x16xbf16>, vector<16x32xbf16>, vector<64x32xf32> -> vector<64x32xf32>
    %257 = vector.shape_cast %256 : vector<64x32xf32> to vector<2x4x8x32xf32>
    %258 = vector.broadcast %5 : vector<1x4x1x32xf32> to vector<2x4x8x32xf32>
    %259 = arith.mulf %257, %258 : vector<2x4x8x32xf32>
    %cst_164 = arith.constant dense<0.000000e+00> : vector<2x8x32xf32>
    %260 = vector.multi_reduction <add>, %259, %cst_164 [1] : vector<2x4x8x32xf32> to vector<2x8x32xf32>
    %261 = vector.shape_cast %260 : vector<2x8x32xf32> to vector<16x32xf32>
    %262 = arith.truncf %261 : vector<16x32xf32> to vector<16x32xbf16>
    %c1_165 = arith.constant 1 : index
    %c3_166 = arith.constant 3 : index
    %c0_167 = arith.constant 0 : index
    %c0_168 = arith.constant 0 : index
    %263 = vector.load %arg5[%c1_165, %c3_166, %c0_167, %c0_168] : memref<2x8x32x32xbf16, #tpu.memory_space<vmem>>, vector<1x1x32x32xbf16>
    %264 = vector.shape_cast %263 : vector<1x1x32x32xbf16> to vector<32x32xbf16>
    %cst_169 = arith.constant dense<0.000000e+00> : vector<16x32xf32>
    %265 = tpu.matmul %262, %264, %cst_169 {dimension_numbers = #tpu.dot_dimension_numbers<[1], [0], [0], [1], [0, 0, 1, 1], [], []>} : vector<16x32xbf16>, vector<32x32xbf16>, vector<16x32xf32> -> vector<16x32xf32>
    %c1_170 = arith.constant 1 : index
    %c3_171 = arith.constant 3 : index
    %c0_172 = arith.constant 0 : index
    %c0_173 = arith.constant 0 : index
    %266 = vector.load %arg8[%c1_170, %c3_171, %c0_172, %c0_173] : memref<2x15x1x32xf32, #tpu.memory_space<vmem>>, vector<1x1x1x32xf32>
    %267 = vector.shape_cast %266 : vector<1x1x1x32xf32> to vector<1x32xf32>
    %268 = vector.broadcast %267 : vector<1x32xf32> to vector<16x32xf32>
    %269 = arith.addf %265, %268 : vector<16x32xf32>
    %270 = arith.addf %212, %269 : vector<16x32xf32>
    %c1_174 = arith.constant 1 : index
    %c9_175 = arith.constant 9 : index
    %c0_176 = arith.constant 0 : index
    %c0_177 = arith.constant 0 : index
    %271 = vector.load %arg8[%c1_174, %c9_175, %c0_176, %c0_177] : memref<2x15x1x32xf32, #tpu.memory_space<vmem>>, vector<1x1x1x32xf32>
    %272 = vector.shape_cast %271 : vector<1x1x1x32xf32> to vector<1x32xf32>
    %c1_178 = arith.constant 1 : index
    %c10_179 = arith.constant 10 : index
    %c0_180 = arith.constant 0 : index
    %c0_181 = arith.constant 0 : index
    %273 = vector.load %arg8[%c1_178, %c10_179, %c0_180, %c0_181] : memref<2x15x1x32xf32, #tpu.memory_space<vmem>>, vector<1x1x1x32xf32>
    %274 = vector.shape_cast %273 : vector<1x1x1x32xf32> to vector<1x32xf32>
    %cst_182 = arith.constant dense<0.000000e+00> : vector<16xf32>
    %275 = vector.multi_reduction <add>, %270, %cst_182 [1] : vector<16x32xf32> to vector<16xf32>
    %276 = vector.shape_cast %275 : vector<16xf32> to vector<16x1xf32>
    %cst_183 = arith.constant 3.200000e+01 : f32
    %277 = vector.broadcast %cst_183 : f32 to vector<16x1xf32>
    %278 = arith.divf %276, %277 : vector<16x1xf32>
    %279 = vector.broadcast %278 : vector<16x1xf32> to vector<16x32xf32>
    %280 = arith.subf %270, %279 : vector<16x32xf32>
    %281 = arith.mulf %280, %280 : vector<16x32xf32>
    %cst_184 = arith.constant dense<0.000000e+00> : vector<16xf32>
    %282 = vector.multi_reduction <add>, %281, %cst_184 [1] : vector<16x32xf32> to vector<16xf32>
    %283 = vector.shape_cast %282 : vector<16xf32> to vector<16x1xf32>
    %cst_185 = arith.constant 3.200000e+01 : f32
    %284 = vector.broadcast %cst_185 : f32 to vector<16x1xf32>
    %285 = arith.divf %283, %284 : vector<16x1xf32>
    %cst_186 = arith.constant 9.99999974E-6 : f32
    %286 = vector.broadcast %cst_186 : f32 to vector<16x1xf32>
    %287 = arith.addf %285, %286 : vector<16x1xf32>
    %288 = math.rsqrt %287 : vector<16x1xf32>
    %289 = vector.broadcast %288 : vector<16x1xf32> to vector<16x32xf32>
    %290 = arith.mulf %280, %289 : vector<16x32xf32>
    %291 = vector.broadcast %272 : vector<1x32xf32> to vector<16x32xf32>
    %292 = arith.mulf %290, %291 : vector<16x32xf32>
    %293 = vector.broadcast %274 : vector<1x32xf32> to vector<16x32xf32>
    %294 = arith.addf %292, %293 : vector<16x32xf32>
    %295 = arith.truncf %294 : vector<16x32xf32> to vector<16x32xbf16>
    %c1_187 = arith.constant 1 : index
    %c4_188 = arith.constant 4 : index
    %c0_189 = arith.constant 0 : index
    %c0_190 = arith.constant 0 : index
    %296 = vector.load %arg5[%c1_187, %c4_188, %c0_189, %c0_190] : memref<2x8x32x32xbf16, #tpu.memory_space<vmem>>, vector<1x1x32x32xbf16>
    %297 = vector.shape_cast %296 : vector<1x1x32x32xbf16> to vector<32x32xbf16>
    %cst_191 = arith.constant dense<0.000000e+00> : vector<16x32xf32>
    %298 = tpu.matmul %295, %297, %cst_191 {dimension_numbers = #tpu.dot_dimension_numbers<[1], [0], [0], [1], [0, 0, 1, 1], [], []>} : vector<16x32xbf16>, vector<32x32xbf16>, vector<16x32xf32> -> vector<16x32xf32>
    %c1_192 = arith.constant 1 : index
    %c4_193 = arith.constant 4 : index
    %c0_194 = arith.constant 0 : index
    %c0_195 = arith.constant 0 : index
    %299 = vector.load %arg8[%c1_192, %c4_193, %c0_194, %c0_195] : memref<2x15x1x32xf32, #tpu.memory_space<vmem>>, vector<1x1x1x32xf32>
    %300 = vector.shape_cast %299 : vector<1x1x1x32xf32> to vector<1x32xf32>
    %301 = vector.broadcast %300 : vector<1x32xf32> to vector<16x32xf32>
    %302 = arith.addf %298, %301 : vector<16x32xf32>
    %c1_196 = arith.constant 1 : index
    %c5_197 = arith.constant 5 : index
    %c0_198 = arith.constant 0 : index
    %c0_199 = arith.constant 0 : index
    %303 = vector.load %arg5[%c1_196, %c5_197, %c0_198, %c0_199] : memref<2x8x32x32xbf16, #tpu.memory_space<vmem>>, vector<1x1x32x32xbf16>
    %304 = vector.shape_cast %303 : vector<1x1x32x32xbf16> to vector<32x32xbf16>
    %cst_200 = arith.constant dense<0.000000e+00> : vector<16x32xf32>
    %305 = tpu.matmul %2, %304, %cst_200 {dimension_numbers = #tpu.dot_dimension_numbers<[1], [0], [0], [1], [0, 0, 1, 1], [], []>} : vector<16x32xbf16>, vector<32x32xbf16>, vector<16x32xf32> -> vector<16x32xf32>
    %c1_201 = arith.constant 1 : index
    %c5_202 = arith.constant 5 : index
    %c0_203 = arith.constant 0 : index
    %c0_204 = arith.constant 0 : index
    %306 = vector.load %arg8[%c1_201, %c5_202, %c0_203, %c0_204] : memref<2x15x1x32xf32, #tpu.memory_space<vmem>>, vector<1x1x1x32xf32>
    %307 = vector.shape_cast %306 : vector<1x1x1x32xf32> to vector<1x32xf32>
    %308 = vector.broadcast %307 : vector<1x32xf32> to vector<16x32xf32>
    %309 = arith.addf %305, %308 : vector<16x32xf32>
    %c1_205 = arith.constant 1 : index
    %c6_206 = arith.constant 6 : index
    %c0_207 = arith.constant 0 : index
    %c0_208 = arith.constant 0 : index
    %310 = vector.load %arg5[%c1_205, %c6_206, %c0_207, %c0_208] : memref<2x8x32x32xbf16, #tpu.memory_space<vmem>>, vector<1x1x32x32xbf16>
    %311 = vector.shape_cast %310 : vector<1x1x32x32xbf16> to vector<32x32xbf16>
    %cst_209 = arith.constant dense<0.000000e+00> : vector<16x32xf32>
    %312 = tpu.matmul %2, %311, %cst_209 {dimension_numbers = #tpu.dot_dimension_numbers<[1], [0], [0], [1], [0, 0, 1, 1], [], []>} : vector<16x32xbf16>, vector<32x32xbf16>, vector<16x32xf32> -> vector<16x32xf32>
    %c1_210 = arith.constant 1 : index
    %c6_211 = arith.constant 6 : index
    %c0_212 = arith.constant 0 : index
    %c0_213 = arith.constant 0 : index
    %313 = vector.load %arg8[%c1_210, %c6_211, %c0_212, %c0_213] : memref<2x15x1x32xf32, #tpu.memory_space<vmem>>, vector<1x1x1x32xf32>
    %314 = vector.shape_cast %313 : vector<1x1x1x32xf32> to vector<1x32xf32>
    %315 = vector.broadcast %314 : vector<1x32xf32> to vector<16x32xf32>
    %316 = arith.addf %312, %315 : vector<16x32xf32>
    %317 = vector.shape_cast %302 : vector<16x32xf32> to vector<2x1x8x32xf32>
    %318 = vector.broadcast %317 : vector<2x1x8x32xf32> to vector<2x4x8x32xf32>
    %319 = vector.broadcast %5 : vector<1x4x1x32xf32> to vector<2x4x8x32xf32>
    %320 = arith.mulf %318, %319 : vector<2x4x8x32xf32>
    %321 = vector.shape_cast %320 : vector<2x4x8x32xf32> to vector<64x32xf32>
    %322 = arith.truncf %321 : vector<64x32xf32> to vector<64x32xbf16>
    %323 = arith.truncf %309 : vector<16x32xf32> to vector<16x32xbf16>
    %cst_214 = arith.constant dense<0.000000e+00> : vector<64x16xf32>
    %324 = tpu.matmul %322, %323, %cst_214 {dimension_numbers = #tpu.dot_dimension_numbers<[1], [1], [0], [0], [0, 0, 1, 0], [], []>} : vector<64x32xbf16>, vector<16x32xbf16>, vector<64x16xf32> -> vector<64x16xf32>
    %325 = arith.addf %324, %4 : vector<64x16xf32>
    %cst_215 = arith.constant dense<0xFF800000> : vector<64xf32>
    %326 = vector.multi_reduction <maximumf>, %325, %cst_215 [1] : vector<64x16xf32> to vector<64xf32>
    %327 = vector.shape_cast %326 : vector<64xf32> to vector<64x1xf32>
    %328 = vector.broadcast %327 : vector<64x1xf32> to vector<64x16xf32>
    %329 = arith.subf %325, %328 : vector<64x16xf32>
    %330 = math.exp %329 : vector<64x16xf32>
    %cst_216 = arith.constant dense<0.000000e+00> : vector<64xf32>
    %331 = vector.multi_reduction <add>, %330, %cst_216 [1] : vector<64x16xf32> to vector<64xf32>
    %332 = vector.shape_cast %331 : vector<64xf32> to vector<64x1xf32>
    %333 = tpu.reciprocal %332 {approx = true} : vector<64x1xf32> -> vector<64x1xf32>
    %334 = vector.broadcast %333 : vector<64x1xf32> to vector<64x16xf32>
    %335 = arith.mulf %330, %334 : vector<64x16xf32>
    %336 = arith.truncf %335 : vector<64x16xf32> to vector<64x16xbf16>
    %337 = arith.truncf %316 : vector<16x32xf32> to vector<16x32xbf16>
    %cst_217 = arith.constant dense<0.000000e+00> : vector<64x32xf32>
    %338 = tpu.matmul %336, %337, %cst_217 {dimension_numbers = #tpu.dot_dimension_numbers<[1], [0], [0], [1], [0, 0, 1, 1], [], []>} : vector<64x16xbf16>, vector<16x32xbf16>, vector<64x32xf32> -> vector<64x32xf32>
    %339 = vector.shape_cast %338 : vector<64x32xf32> to vector<2x4x8x32xf32>
    %340 = vector.broadcast %5 : vector<1x4x1x32xf32> to vector<2x4x8x32xf32>
    %341 = arith.mulf %339, %340 : vector<2x4x8x32xf32>
    %cst_218 = arith.constant dense<0.000000e+00> : vector<2x8x32xf32>
    %342 = vector.multi_reduction <add>, %341, %cst_218 [1] : vector<2x4x8x32xf32> to vector<2x8x32xf32>
    %343 = vector.shape_cast %342 : vector<2x8x32xf32> to vector<16x32xf32>
    %344 = arith.truncf %343 : vector<16x32xf32> to vector<16x32xbf16>
    %c1_219 = arith.constant 1 : index
    %c7_220 = arith.constant 7 : index
    %c0_221 = arith.constant 0 : index
    %c0_222 = arith.constant 0 : index
    %345 = vector.load %arg5[%c1_219, %c7_220, %c0_221, %c0_222] : memref<2x8x32x32xbf16, #tpu.memory_space<vmem>>, vector<1x1x32x32xbf16>
    %346 = vector.shape_cast %345 : vector<1x1x32x32xbf16> to vector<32x32xbf16>
    %cst_223 = arith.constant dense<0.000000e+00> : vector<16x32xf32>
    %347 = tpu.matmul %344, %346, %cst_223 {dimension_numbers = #tpu.dot_dimension_numbers<[1], [0], [0], [1], [0, 0, 1, 1], [], []>} : vector<16x32xbf16>, vector<32x32xbf16>, vector<16x32xf32> -> vector<16x32xf32>
    %c1_224 = arith.constant 1 : index
    %c7_225 = arith.constant 7 : index
    %c0_226 = arith.constant 0 : index
    %c0_227 = arith.constant 0 : index
    %348 = vector.load %arg8[%c1_224, %c7_225, %c0_226, %c0_227] : memref<2x15x1x32xf32, #tpu.memory_space<vmem>>, vector<1x1x1x32xf32>
    %349 = vector.shape_cast %348 : vector<1x1x1x32xf32> to vector<1x32xf32>
    %350 = vector.broadcast %349 : vector<1x32xf32> to vector<16x32xf32>
    %351 = arith.addf %347, %350 : vector<16x32xf32>
    %352 = arith.addf %294, %351 : vector<16x32xf32>
    %c1_228 = arith.constant 1 : index
    %c11_229 = arith.constant 11 : index
    %c0_230 = arith.constant 0 : index
    %c0_231 = arith.constant 0 : index
    %353 = vector.load %arg8[%c1_228, %c11_229, %c0_230, %c0_231] : memref<2x15x1x32xf32, #tpu.memory_space<vmem>>, vector<1x1x1x32xf32>
    %354 = vector.shape_cast %353 : vector<1x1x1x32xf32> to vector<1x32xf32>
    %c1_232 = arith.constant 1 : index
    %c12_233 = arith.constant 12 : index
    %c0_234 = arith.constant 0 : index
    %c0_235 = arith.constant 0 : index
    %355 = vector.load %arg8[%c1_232, %c12_233, %c0_234, %c0_235] : memref<2x15x1x32xf32, #tpu.memory_space<vmem>>, vector<1x1x1x32xf32>
    %356 = vector.shape_cast %355 : vector<1x1x1x32xf32> to vector<1x32xf32>
    %cst_236 = arith.constant dense<0.000000e+00> : vector<16xf32>
    %357 = vector.multi_reduction <add>, %352, %cst_236 [1] : vector<16x32xf32> to vector<16xf32>
    %358 = vector.shape_cast %357 : vector<16xf32> to vector<16x1xf32>
    %cst_237 = arith.constant 3.200000e+01 : f32
    %359 = vector.broadcast %cst_237 : f32 to vector<16x1xf32>
    %360 = arith.divf %358, %359 : vector<16x1xf32>
    %361 = vector.broadcast %360 : vector<16x1xf32> to vector<16x32xf32>
    %362 = arith.subf %352, %361 : vector<16x32xf32>
    %363 = arith.mulf %362, %362 : vector<16x32xf32>
    %cst_238 = arith.constant dense<0.000000e+00> : vector<16xf32>
    %364 = vector.multi_reduction <add>, %363, %cst_238 [1] : vector<16x32xf32> to vector<16xf32>
    %365 = vector.shape_cast %364 : vector<16xf32> to vector<16x1xf32>
    %cst_239 = arith.constant 3.200000e+01 : f32
    %366 = vector.broadcast %cst_239 : f32 to vector<16x1xf32>
    %367 = arith.divf %365, %366 : vector<16x1xf32>
    %cst_240 = arith.constant 9.99999974E-6 : f32
    %368 = vector.broadcast %cst_240 : f32 to vector<16x1xf32>
    %369 = arith.addf %367, %368 : vector<16x1xf32>
    %370 = math.rsqrt %369 : vector<16x1xf32>
    %371 = vector.broadcast %370 : vector<16x1xf32> to vector<16x32xf32>
    %372 = arith.mulf %362, %371 : vector<16x32xf32>
    %373 = vector.broadcast %354 : vector<1x32xf32> to vector<16x32xf32>
    %374 = arith.mulf %372, %373 : vector<16x32xf32>
    %375 = vector.broadcast %356 : vector<1x32xf32> to vector<16x32xf32>
    %376 = arith.addf %374, %375 : vector<16x32xf32>
    %377 = arith.truncf %376 : vector<16x32xf32> to vector<16x32xbf16>
    %c1_241 = arith.constant 1 : index
    %c0_242 = arith.constant 0 : index
    %c0_243 = arith.constant 0 : index
    %378 = vector.load %arg6[%c1_241, %c0_242, %c0_243] : memref<2x32x64xbf16, #tpu.memory_space<vmem>>, vector<1x32x64xbf16>
    %379 = vector.shape_cast %378 : vector<1x32x64xbf16> to vector<32x64xbf16>
    %cst_244 = arith.constant dense<0.000000e+00> : vector<16x64xf32>
    %380 = tpu.matmul %377, %379, %cst_244 {dimension_numbers = #tpu.dot_dimension_numbers<[1], [0], [0], [1], [0, 0, 1, 1], [], []>} : vector<16x32xbf16>, vector<32x64xbf16>, vector<16x64xf32> -> vector<16x64xf32>
    %c1_245 = arith.constant 1 : index
    %c0_246 = arith.constant 0 : index
    %c0_247 = arith.constant 0 : index
    %381 = vector.load %arg9[%c1_245, %c0_246, %c0_247] : memref<2x1x64xf32, #tpu.memory_space<vmem>>, vector<1x1x64xf32>
    %382 = vector.shape_cast %381 : vector<1x1x64xf32> to vector<1x64xf32>
    %383 = vector.broadcast %382 : vector<1x64xf32> to vector<16x64xf32>
    %384 = arith.addf %380, %383 : vector<16x64xf32>
    %cst_248 = arith.constant 0.000000e+00 : f32
    %385 = vector.broadcast %cst_248 : f32 to vector<16x64xf32>
    %386 = arith.maximumf %384, %385 : vector<16x64xf32>
    %387 = arith.truncf %386 : vector<16x64xf32> to vector<16x64xbf16>
    %c1_249 = arith.constant 1 : index
    %c0_250 = arith.constant 0 : index
    %c0_251 = arith.constant 0 : index
    %388 = vector.load %arg7[%c1_249, %c0_250, %c0_251] : memref<2x64x32xbf16, #tpu.memory_space<vmem>>, vector<1x64x32xbf16>
    %389 = vector.shape_cast %388 : vector<1x64x32xbf16> to vector<64x32xbf16>
    %cst_252 = arith.constant dense<0.000000e+00> : vector<16x32xf32>
    %390 = tpu.matmul %387, %389, %cst_252 {dimension_numbers = #tpu.dot_dimension_numbers<[1], [0], [0], [1], [0, 0, 1, 1], [], []>} : vector<16x64xbf16>, vector<64x32xbf16>, vector<16x32xf32> -> vector<16x32xf32>
    %c1_253 = arith.constant 1 : index
    %c8_254 = arith.constant 8 : index
    %c0_255 = arith.constant 0 : index
    %c0_256 = arith.constant 0 : index
    %391 = vector.load %arg8[%c1_253, %c8_254, %c0_255, %c0_256] : memref<2x15x1x32xf32, #tpu.memory_space<vmem>>, vector<1x1x1x32xf32>
    %392 = vector.shape_cast %391 : vector<1x1x1x32xf32> to vector<1x32xf32>
    %393 = vector.broadcast %392 : vector<1x32xf32> to vector<16x32xf32>
    %394 = arith.addf %390, %393 : vector<16x32xf32>
    %395 = arith.addf %376, %394 : vector<16x32xf32>
    %c1_257 = arith.constant 1 : index
    %c13_258 = arith.constant 13 : index
    %c0_259 = arith.constant 0 : index
    %c0_260 = arith.constant 0 : index
    %396 = vector.load %arg8[%c1_257, %c13_258, %c0_259, %c0_260] : memref<2x15x1x32xf32, #tpu.memory_space<vmem>>, vector<1x1x1x32xf32>
    %397 = vector.shape_cast %396 : vector<1x1x1x32xf32> to vector<1x32xf32>
    %c1_261 = arith.constant 1 : index
    %c14_262 = arith.constant 14 : index
    %c0_263 = arith.constant 0 : index
    %c0_264 = arith.constant 0 : index
    %398 = vector.load %arg8[%c1_261, %c14_262, %c0_263, %c0_264] : memref<2x15x1x32xf32, #tpu.memory_space<vmem>>, vector<1x1x1x32xf32>
    %399 = vector.shape_cast %398 : vector<1x1x1x32xf32> to vector<1x32xf32>
    %cst_265 = arith.constant dense<0.000000e+00> : vector<16xf32>
    %400 = vector.multi_reduction <add>, %395, %cst_265 [1] : vector<16x32xf32> to vector<16xf32>
    %401 = vector.shape_cast %400 : vector<16xf32> to vector<16x1xf32>
    %cst_266 = arith.constant 3.200000e+01 : f32
    %402 = vector.broadcast %cst_266 : f32 to vector<16x1xf32>
    %403 = arith.divf %401, %402 : vector<16x1xf32>
    %404 = vector.broadcast %403 : vector<16x1xf32> to vector<16x32xf32>
    %405 = arith.subf %395, %404 : vector<16x32xf32>
    %406 = arith.mulf %405, %405 : vector<16x32xf32>
    %cst_267 = arith.constant dense<0.000000e+00> : vector<16xf32>
    %407 = vector.multi_reduction <add>, %406, %cst_267 [1] : vector<16x32xf32> to vector<16xf32>
    %408 = vector.shape_cast %407 : vector<16xf32> to vector<16x1xf32>
    %cst_268 = arith.constant 3.200000e+01 : f32
    %409 = vector.broadcast %cst_268 : f32 to vector<16x1xf32>
    %410 = arith.divf %408, %409 : vector<16x1xf32>
    %cst_269 = arith.constant 9.99999974E-6 : f32
    %411 = vector.broadcast %cst_269 : f32 to vector<16x1xf32>
    %412 = arith.addf %410, %411 : vector<16x1xf32>
    %413 = math.rsqrt %412 : vector<16x1xf32>
    %414 = vector.broadcast %413 : vector<16x1xf32> to vector<16x32xf32>
    %415 = arith.mulf %405, %414 : vector<16x32xf32>
    %416 = vector.broadcast %397 : vector<1x32xf32> to vector<16x32xf32>
    %417 = arith.mulf %415, %416 : vector<16x32xf32>
    %418 = vector.broadcast %399 : vector<1x32xf32> to vector<16x32xf32>
    %419 = arith.addf %417, %418 : vector<16x32xf32>
    %c0_270 = arith.constant 0 : index
    %c0_271 = arith.constant 0 : index
    %420 = vector.load %arg10[%c0_270, %c0_271] : memref<16x32xf32, #tpu.memory_space<vmem>>, vector<16x32xf32>
    tpu.vector_store %arg10[%c0_270, %c0_271], %419 {strides = array<i32>} : memref<16x32xf32, #tpu.memory_space<vmem>>, vector<16x32xf32>,
    return
  }
}

</mosaic_0001>

<bundles_post_ra>
// kernel: decoder_forward.1
= control target key start
LH: loop header
LB: loop body
LE: loop exit
PB: predicated region body
PF: predicated region fallthrough
CT: control target
= control target key end

     0   :  { %v3734_v0 = vmov 0.0   ;;  %vm3735_vm0 = vmmov 0   ;;  %vm85_vm1 = vcmask 261120   ;;  %vm379_vm2 = vcmask 130048   ;;  %s4542_s5 = inlined_call_operand.vmem [shape: bf16[2,8,32,32], index: 5, kind: input, shape index: {}]   ;;  %s4543_s0 = inlined_call_operand.vmem [shape: f32[16,32], index: 0, kind: input, shape index: {}, may-alias: {0,10}]   ;;  %s4544_s8 = inlined_call_operand.vmem [shape: f32[2,15,1,32], index: 8, kind: input, shape index: {}]   ;;  %s4545_s4 = inlined_call_operand.vmem [shape: f32[1,4,1,32], index: 4, kind: input, shape index: {}]   ;;  %s4546_s2 = inlined_call_operand.vmem [shape: f32[64,16], index: 2, kind: input, shape index: {}]   ;;  %s4547_s1 = inlined_call_operand.vmem [shape: f32[16,32], index: 1, kind: input, shape index: {}]   ;;  %s4548_s3 = inlined_call_operand.vmem [shape: f32[64,16], index: 3, kind: input, shape index: {}]   ;;  %s4549_s6 = inlined_call_operand.vmem [shape: bf16[2,32,64], index: 6, kind: input, shape index: {}]   ;;  %s4550_s7 = inlined_call_operand.vmem [shape: bf16[2,64,32], index: 7, kind: input, shape index: {}]   ;;  %s4551_s9 = inlined_call_operand.vmem [shape: f32[2,1,64], index: 9, kind: input, shape index: {}]   ;;  %s4552_s10 = inlined_call_operand.vmem [shape: f32[16,32], index: 10, kind: output, shape index: {}, may-alias: {0,10}]  }
   0x1   :  { %3263 = vmatprep.subr.bf16.mxu1 %v3734_v0  ;;  %v3517_v1 = vld [vmem:[%s4542_s5] sm:$0xff]   ;;  %3267 = vmatprep.mubr.msk.bf16.mxu1 %vm3735_vm0, %v3734_v0  ;;  %v3518_v2 = vld [vmem:[%s4542_s5 + $0x8] sm:$0xff]   ;;  %v3519_v6 = vld [vmem:[%s4542_s5 + $0x10] sm:$0xff]   ;;  %vm1410_vm3 = vcmask 523264  }
   0x2   :  { %3279 = vmatprep.subr.bf16.mxu0 %v3734_v0  ;;  %3283 = vmatprep.mubr.msk.bf16.mxu0 %vm3735_vm0, %v3734_v0  ;;  %v3806_v3 = vld [vmem:[%s4543_s0] sm:$0xff]  ;;  %v3811_v4 = vld [vmem:[%s4543_s0 + $0x8] sm:$0xff]  ;;  %v3520_v7 = vld [vmem:[%s4542_s5 + $0x18] sm:$0xff]  }
   0x3   :  { %3264 = vmatpush3.bf16.msra.mxu1 %v3517_v1  ;;  %v61_v5 = vpack.c.bf16 %v3811_v4, %v3806_v3  ;;  %v2925_v8 = vld [vmem:[%s4544_s8] ss:$0 sm:$0xff]  ;;  %v3839_v10 = vld [vmem:[%s4545_s4 + $0x1] ss:$0 sm:$0xff]  ;;  %v3850_v27 = vld [vmem:[%s4545_s4 + $0x2] ss:$0 sm:$0xff] }
   0x4   :  { %3265 = vmatprep.subr.bf16.mxu1 %v3734_v0  ;;  %v3834_v9 = vld [vmem:[%s4545_s4] ss:$0 sm:$0xff]  ;;  %v2934_v19 = vld [vmem:[%s4544_s8 + $0x1] ss:$0 sm:$0xff]  ;;  %v3855_v28 = vld [vmem:[%s4545_s4 + $0x3] ss:$0 sm:$0xff] }
   0x5   :  { %v3521_v40 = vld [vmem:[%s4542_s5 + $0x20] sm:$0xff]   ;;  %v3522_v41 = vld [vmem:[%s4542_s5 + $0x28] sm:$0xff]   ;;  %v43_v42 = vld [vmem:[%s4546_s2 + $0x10] sm:$0xff] }
   0x6   :  { %3280 = vmatpush3.bf16.msra.mxu0 %v3521_v40  ;;  %v41_v43 = vld [vmem:[%s4546_s2] sm:$0xff]  ;;  %v44_v45 = vld [vmem:[%s4546_s2 + $0x18] sm:$0xff]  ;;  %v42_v48 = vld [vmem:[%s4546_s2 + $0x8] sm:$0xff] }
   0x7   :  { %3266 = vmatpush3.bf16.msra.mxu1 %v3518_v2  ;;  %3281 = vmatprep.subr.bf16.mxu0 %v3734_v0  ;;  %v45_v57 = vld [vmem:[%s4546_s2 + $0x20] sm:$0xff]  ;;  %v47_v60 = vld [vmem:[%s4546_s2 + $0x30] sm:$0xff]  ;;  %v46_v62 = vld [vmem:[%s4546_s2 + $0x28] sm:$0xff] }
   0x8   :  { %3271 = vmatprep.subr.bf16.mxu1 %v3734_v0  ;;  %v48_v2 = vld [vmem:[%s4546_s2 + $0x38] sm:$0xff] }
   0xa   :  { %3268 = vmatmul.mubr.msk.bf16.vlgmr.msra.gmra.mrb[0].mxu1 %vm85_vm1, %v61_v5  ;;  %3282 = vmatpush3.bf16.msra.mxu0 %v3522_v41 }
   0xb   :  { %3272 = vmatpush3.bf16.msra.mxu1 %v3519_v6  ;;  %3275 = vmatprep.mubr.msk.bf16.mxu1 %vm3735_vm0, %v3734_v0 }
   0xc   :  { %3273 = vmatprep.subr.bf16.mxu1 %v3734_v0 }
   0xd   :  { %3284 = vmatmul.mubr.msk.bf16.vlgmr.msra.gmra.mrb[0].mxu0 %vm85_vm1, %v61_v5 }
   0xf   :  { %3274 = vmatpush3.bf16.msra.mxu1 %v3520_v7 }
  0x12   :  { %3276 = vmatmul.mubr.msk.bf16.vlgmr.msra.gmra.mrb[4].mxu1 %vm85_vm1, %v61_v5 }
  0xdd   :  { %v123_v11 = vpop.f32.mrb[0].mxu1 }
  0xde   :  { %v124_v12 = vadd.f32 %v2925_v8, %v123_v11  ;;  %v3269_v13 = vpop.f32.mrb[1].mxu1 }
  0xdf   :  { %v126_v14 = vpop.f32.mrb[2].mxu1 }
  0xe0   :  { %v286_v15 = vmul.f32 %v3834_v9, %v124_v12  ;;  %v287_v16 = vmul.f32 %v3839_v10, %v124_v12  ;;  %v3270_v17 = vpop.f32.mrb[3].mxu1  ;;  %v127_v29 = vadd.f32 %v2925_v8, %v126_v14  ;;  %v288_v31 = vmul.f32 %v3850_v27, %v124_v12 }
  0xe1   :  { %v289_v32 = vmul.f32 %v3855_v28, %v124_v12 }
  0xe2   :  { %v294_v18 = vpack.c.bf16 %v287_v16, %v286_v15  ;;  %v290_v33 = vmul.f32 %v3834_v9, %v127_v29  ;;  %v291_v34 = vmul.f32 %v3839_v10, %v127_v29  ;;  %v292_v37 = vmul.f32 %v3850_v27, %v127_v29 }
  0xe3   :  { %v295_v35 = vpack.c.bf16 %v289_v32, %v288_v31  ;;  %v293_v38 = vmul.f32 %v3855_v28, %v127_v29 }
  0xe4   :  { %3289 = vmatprep.mubr.msk.bf16.mxu1 %vm85_vm1, %v294_v18  ;;  %v296_v36 = vpack.c.bf16 %v291_v34, %v290_v33 }
  0xe5   :  { %v189_v20 = vpop.f32.mrb[4].mxu1  ;;  %v297_v39 = vpack.c.bf16 %v293_v38, %v292_v37 }
  0xe6   :  { %v3277_v21 = vpop.f32.mrb[5].mxu1  ;;  %v190_v23 = vadd.f32 %v2934_v19, %v189_v20 }
  0xe7   :  { %v192_v22 = vpop.f32.mrb[6].mxu1 }
  0xe8   :  { %v193_v24 = vadd.f32 %v2934_v19, %v192_v22  ;;  %v3278_v25 = vpop.f32.mrb[7].mxu1 }
  0xea   :  { %v298_v26 = vpack.c.bf16 %v193_v24, %v190_v23 }
  0xec   :  { %3511 = vmatprep.subr.msk.bf16.mxu1 %vm85_vm1, %v298_v26  ;;  %v312_v30 = vsel %vm85_vm1, %v298_v26, 0 }
  0xed   :  { %3288 = vmatpush3.bf16.xpose.msra.mxu1 %v312_v30 }
  0xee   :  { %3307 = vmatprep.subr.bf16.mxu1 %v3734_v0 }
  0xf4   :  { %3290 = vmatmul.mubr.msk.bf16.vlgmr.msra.gmra.mrb[8].mxu1 %vm85_vm1, %v295_v35 }
  0xf5   :  { %3293 = vmatprep.mubr.msk.bf16.mxu1 %vm85_vm1, %v296_v36 }
  0xfc   :  { %3294 = vmatmul.mubr.msk.bf16.gmra.mrb[12].mxu1 %vm85_vm1, %v297_v39 }
  0xfd   :  { %3311 = vmatprep.mubr.msk.bf16.mxu1 %vm3735_vm0, %v3734_v0 }
 0x1c7   :  { %v3291_v44 = vpop.f32.mrb[8].mxu1 }
 0x1c8   :  { %v357_v46 = vadd.f32 %v3291_v44, %v43_v42  ;;  %v348_v47 = vpop.f32.mrb[9].mxu1 }
 0x1c9   :  { %v349_v49 = vadd.f32 %v348_v47, %v41_v43  ;;  %v3292_v50 = vpop.f32.mrb[10].mxu1 }
 0x1ca   :  { %v360_v51 = vadd.f32 %v3292_v50, %v44_v45  ;;  %v351_v52 = vpop.f32.mrb[11].mxu1  ;;  %v386_v53 = vsel %vm379_vm2, %v357_v46, -inf }
 0x1cb   :  { %v352_v54 = vadd.f32 %v351_v52, %v42_v48  ;;  %387 = vmax.xlane.f32.xlu1 %v386_v53  ;;  %v380_v55 = vsel %vm379_vm2, %v349_v49, -inf }
 0x1cc   :  { %381 = vmax.xlane.f32.xlu0 %v380_v55  ;;  %v389_v56 = vsel %vm379_vm2, %v360_v51, -inf }
 0x1cd   :  { %v383_v59 = vsel %vm379_vm2, %v352_v54, -inf }
 0x1cf   :  { %390 = vmax.xlane.f32.xlu1 %v389_v56  ;;  %v3295_v58 = vpop.f32.mrb[12].mxu1 }
 0x1d0   :  { %v364_v61 = vpop.f32.mrb[13].mxu1  ;;  %384 = vmax.xlane.f32.xlu0 %v383_v59  ;;  %v373_v6 = vadd.f32 %v3295_v58, %v47_v60  ;;  %v2943_v59 = vld [vmem:[%s4544_s8 + $0x2] ss:$0 sm:$0xff] }
 0x1d1   :  { %v365_v63 = vadd.f32 %v364_v61, %v45_v57  ;;  %v3296_v1 = vpop.f32.mrb[14].mxu1  ;;  %v255_v57 = vpop.f32.mrb[0].mxu0 }
 0x1d2   :  { %v367_v5 = vpop.f32.mrb[15].mxu1  ;;  %v376_v11 = vadd.f32 %v3296_v1, %v48_v2  ;;  %v398_v13 = vsel %vm379_vm2, %v373_v6, -inf  ;;  %v3285_v58 = vpop.f32.mrb[1].mxu0  ;;  %v256_v61 = vadd.f32 %v2943_v59, %v255_v57 }
 0x1d3   :  { %v368_v7 = vadd.f32 %v367_v5, %v46_v62  ;;  %v392_v8 = vsel %vm379_vm2, %v365_v63, -inf  ;;  %v258_v60 = vpop.f32.mrb[2].mxu0 }
 0x1d4   :  { %393 = vmax.xlane.f32.xlu0 %v392_v8  ;;  %v401_v14 = vsel %vm379_vm2, %v376_v11, -inf  ;;  %v259_v62 = vadd.f32 %v2943_v59, %v258_v60 }
 0x1d5   :  { %v395_v12 = vsel %vm379_vm2, %v368_v7, -inf }
 0x1d6   :  { %396 = vmax.xlane.f32.xlu1 %v395_v12  ;;  %v472_v1 = vpack.c.bf16 %v259_v62, %v256_v61 }
 0x1d8   :  { %399 = vmax.xlane.f32.xlu0 %v398_v13  ;;  %3297 = vmatprep.subr.bf16.mxu0 %v472_v1 }
 0x1d9   :  { %3298 = vmatpush3.bf16.msra.mxu0 %v472_v1 }
 0x1da   :  { %402 = vmax.xlane.f32.xlu1 %v401_v14  ;;  %3315 = vmatprep.subr.bf16.mxu0 %v3734_v0 }
 0x258   :  { %v388_v15 = vpop.xlane.xlu1 %387 }
 0x259   :  { %v406_v16 = vsub.f32 %v357_v46, %v388_v15  ;;  %v382_v17 = vpop.xlane.xlu0 %381 }
 0x25a   :  { %v404_v18 = vsub.f32 %v349_v49, %v382_v17 }
 0x25b   :  { %v416_v19 = vmul.f32 1.442695, %v406_v16 }
 0x25c   :  { %v412_v20 = vmul.f32 1.442695, %v404_v18  ;;  %v391_v21 = vpop.xlane.xlu1 %390 }
 0x25d   :  { %v407_v22 = vsub.f32 %v360_v51, %v391_v21  ;;  %v385_v23 = vpop.xlane.xlu0 %384 }
 0x25e   :  { %3561 = vpow2.f32 %v412_v20  ;;  %v405_v24 = vsub.f32 %v352_v54, %v385_v23 }
 0x25f   :  { %3563 = vpow2.f32 %v416_v19  ;;  %v418_v25 = vmul.f32 1.442695, %v407_v22 }
 0x260   :  { %v414_v26 = vmul.f32 1.442695, %v405_v24 }
 0x261   :  { %v394_v29 = vpop.xlane.xlu0 %393 }
 0x262   :  { %3565 = vpow2.f32 %v414_v26  ;;  %v408_v30 = vsub.f32 %v365_v63, %v394_v29  ;;  %v3286_v63 = vpop.f32.mrb[3].mxu0 }
 0x263   :  { %v397_v31 = vpop.xlane.xlu1 %396  ;;  %3567 = vpow2.f32 %v418_v25 }
 0x264   :  { %v420_v32 = vmul.f32 1.442695, %v408_v30  ;;  %v409_v33 = vsub.f32 %v368_v7, %v397_v31 }
 0x265   :  { %v400_v34 = vpop.xlane.xlu0 %399 }
 0x266   :  { %3569 = vpow2.f32 %v420_v32  ;;  %v422_v35 = vmul.f32 1.442695, %v409_v33  ;;  %v410_v36 = vsub.f32 %v373_v6, %v400_v34 }
 0x267   :  { %v403_v37 = vpop.xlane.xlu1 %402 }
 0x268   :  { %v3562_v38 = vpop.eup %3561  ;;  %3571 = vpow2.f32 %v422_v35  ;;  %v424_v39 = vmul.f32 1.442695, %v410_v36  ;;  %v411_v40 = vsub.f32 %v376_v11, %v403_v37  ;;  %v3523_v36 = vld [vmem:[%s4542_s5 + $0x30] sm:$0xff]   ;;  %v3524_v37 = vld [vmem:[%s4542_s5 + $0x38] sm:$0xff]  }
 0x269   :  { %v428_v41 = vsel %vm379_vm2, %v3562_v38, 0.0  ;;  %v3564_v42 = vpop.eup %3563  ;;  %3308 = vmatpush3.bf16.msra.mxu1 %v3523_v36  ;;  %v3526_v36 = vld [vmem:[%s4542_s5 + $0x40] sm:$0xff]  }
 0x26a   :  { %3573 = vpow2.f32 %v424_v39  ;;  %v426_v43 = vmul.f32 1.442695, %v411_v40  ;;  %429 = vadd.xlane.f32.xlu0 %v428_v41  ;;  %v434_v45 = vsel %vm379_vm2, %v3564_v42, 0.0  ;;  %3309 = vmatprep.subr.bf16.mxu1 %v3734_v0 }
 0x26c   :  { %v3566_v44 = vpop.eup %3565  ;;  %3575 = vpow2.f32 %v426_v43 }
 0x26d   :  { %v431_v46 = vsel %vm379_vm2, %v3566_v44, 0.0  ;;  %v3568_v47 = vpop.eup %3567  ;;  %3310 = vmatpush3.bf16.msra.mxu1 %v3524_v37  ;;  %v3528_v37 = vld [vmem:[%s4542_s5 + $0x48] sm:$0xff]  }
 0x26e   :  { %435 = vadd.xlane.f32.xlu0 %v434_v45  ;;  %432 = vadd.xlane.f32.xlu1 %v431_v46  ;;  %v437_v49 = vsel %vm379_vm2, %v3568_v47, 0.0 }
 0x26f   :  { %3323 = vmatprep.subr.bf16.mxu1 %v3734_v0 }
 0x270   :  { %v3570_v48 = vpop.eup %3569 }
 0x271   :  { %v440_v50 = vsel %vm379_vm2, %v3570_v48, 0.0 }
 0x272   :  { %v3572_v51 = vpop.eup %3571  ;;  %438 = vadd.xlane.f32.xlu1 %v437_v49  ;;  %441 = vadd.xlane.f32.xlu0 %v440_v50 }
 0x273   :  { %v443_v53 = vsel %vm379_vm2, %v3572_v51, 0.0 }
 0x274   :  { %v3574_v52 = vpop.eup %3573 }
 0x275   :  { %v446_v54 = vsel %vm379_vm2, %v3574_v52, 0.0 }
 0x276   :  { %v3576_v55 = vpop.eup %3575  ;;  %444 = vadd.xlane.f32.xlu1 %v443_v53  ;;  %447 = vadd.xlane.f32.xlu0 %v446_v54 }
 0x277   :  { %v449_v56 = vsel %vm379_vm2, %v3576_v55, 0.0 }
 0x27a   :  { %450 = vadd.xlane.f32.xlu1 %v449_v56 }
 0x2f7   :  { %v430_v2 = vpop.xlane.xlu0 %429 }
 0x2f8   :  { %3577 = vrcp.f32 %v430_v2 }
 0x2fb   :  { %v433_v5 = vpop.xlane.xlu1 %432  ;;  %v436_v6 = vpop.xlane.xlu0 %435 }
 0x2fc   :  { %3579 = vrcp.f32 %v433_v5 }
 0x2fd   :  { %3581 = vrcp.f32 %v436_v6 }
 0x2ff   :  { %v439_v7 = vpop.xlane.xlu1 %438  ;;  %v442_v8 = vpop.xlane.xlu0 %441 }
 0x300   :  { %3583 = vrcp.f32 %v439_v7 }
 0x301   :  { %3585 = vrcp.f32 %v442_v8  ;;  %v2964_v8 = vld [vmem:[%s4544_s8 + $0x3] ss:$0 sm:$0xff] }
 0x302   :  { %v3578_v13 = vpop.eup %3577 }
 0x303   :  { %v445_v11 = vpop.xlane.xlu1 %444  ;;  %v448_v12 = vpop.xlane.xlu0 %447  ;;  %v460_v16 = vmul.f32 %v3578_v13, %v3562_v38 }
 0x304   :  { %3587 = vrcp.f32 %v445_v11 }
 0x305   :  { %3589 = vrcp.f32 %v448_v12 }
 0x306   :  { %v3580_v14 = vpop.eup %3579 }
 0x307   :  { %v451_v15 = vpop.xlane.xlu1 %450  ;;  %v461_v17 = vmul.f32 %v3580_v14, %v3566_v44  ;;  %v3582_v18 = vpop.eup %3581 }
 0x308   :  { %3591 = vrcp.f32 %v451_v15  ;;  %v462_v21 = vmul.f32 %v3582_v18, %v3564_v42 }
 0x309   :  { %v468_v19 = vpack.c.bf16 %v461_v17, %v460_v16 }
 0x30a   :  { %v3584_v20 = vpop.eup %3583 }
 0x30b   :  { %v463_v22 = vmul.f32 %v3584_v20, %v3568_v47  ;;  %3299 = vmatprep.mubr.msk.bf16.mxu0 %vm379_vm2, %v468_v19  ;;  %v3586_v23 = vpop.eup %3585 }
 0x30c   :  { %v464_v26 = vmul.f32 %v3586_v23, %v3570_v48 }
 0x30d   :  { %v469_v24 = vpack.c.bf16 %v463_v22, %v462_v21 }
 0x30e   :  { %v3588_v25 = vpop.eup %3587 }
 0x30f   :  { %3300 = vmatmul.mubr.msk.bf16.vlgmr.msra.gmra.mrb[4].mxu0 %vm379_vm2, %v469_v24  ;;  %v465_v29 = vmul.f32 %v3588_v25, %v3572_v51  ;;  %v3590_v30 = vpop.eup %3589 }
 0x310   :  { %v466_v33 = vmul.f32 %v3590_v30, %v3574_v52  ;;  %3316 = vmatpush3.bf16.msra.mxu0 %v3526_v36 }
 0x311   :  { %v470_v31 = vpack.c.bf16 %v465_v29, %v464_v26  ;;  %3317 = vmatprep.subr.bf16.mxu0 %v3734_v0 }
 0x312   :  { %v3592_v32 = vpop.eup %3591 }
 0x313   :  { %3303 = vmatprep.mubr.msk.bf16.mxu0 %vm379_vm2, %v470_v31  ;;  %v467_v34 = vmul.f32 %v3592_v32, %v3576_v55  ;;  %v3527_v32 = vld [vmem:[%s4542_s5 + $0x58] sm:$0xff]  }
 0x314   :  { %3318 = vmatpush3.bf16.msra.mxu0 %v3528_v37 }
 0x315   :  { %v471_v35 = vpack.c.bf16 %v467_v34, %v466_v33  ;;  %v38_v33 = vld [vmem:[%s4547_s1] sm:$0xff]  ;;  %v39_v34 = vld [vmem:[%s4547_s1 + $0x8] sm:$0xff]  ;;  %3331 = vmatprep.subr.bf16.mxu0 %v3734_v0 }
 0x317   :  { %3304 = vmatmul.mubr.msk.bf16.gmra.mrb[8].mxu0 %vm379_vm2, %v471_v35  ;;  %v3978_v35 = vpack.c.bf16 %v39_v34, %v38_v33  ;;  %v52_v33 = vld [vmem:[%s4548_s3 + $0x18] sm:$0xff] }
 0x318   :  { %3319 = vmatprep.mubr.msk.bf16.mxu0 %vm3735_vm0, %v3734_v0 }
 0x3e2   :  { %v3301_v38 = vpop.f32.mrb[4].mxu0 }
 0x3e3   :  { %v519_v39 = vpop.f32.mrb[5].mxu0  ;;  %v552_v43 = vmul.f32 %v3301_v38, %v3850_v27 }
 0x3e4   :  { %v550_v40 = vmul.f32 %v3834_v9, %v519_v39  ;;  %v3302_v41 = vpop.f32.mrb[6].mxu0 }
 0x3e5   :  { %v522_v42 = vpop.f32.mrb[7].mxu0  ;;  %v553_v46 = vmul.f32 %v3302_v41, %v3855_v28  ;;  %v561_v49 = vsel %vm85_vm1, %v552_v43, 0.0 }
 0x3e6   :  { %v551_v44 = vmul.f32 %v3839_v10, %v522_v42  ;;  %v558_v45 = vsel %vm85_vm1, %v550_v40, 0.0 }
 0x3e7   :  { %v563_v53 = vsel %vm85_vm1, %v553_v46, 0.0 }
 0x3e8   :  { %v559_v47 = vsel %vm85_vm1, %v551_v44, 0.0 }
 0x3e9   :  { %v560_v48 = vadd.f32 %v559_v47, %v558_v45  ;;  %v2970_v45 = vld [vmem:[%s4544_s8 + $0x9] ss:$0 sm:$0xff] }
 0x3ea   :  { %v3305_v50 = vpop.f32.mrb[8].mxu0 }
 0x3eb   :  { %v562_v51 = vadd.f32 %v561_v49, %v560_v48  ;;  %v535_v52 = vpop.f32.mrb[9].mxu0  ;;  %v556_v58 = vmul.f32 %v3305_v50, %v3850_v27  ;;  %v2971_v50 = vld [vmem:[%s4544_s8 + $0xa] ss:$0 sm:$0xff] }
 0x3ec   :  { %v554_v54 = vmul.f32 %v3834_v9, %v535_v52  ;;  %v3306_v55 = vpop.f32.mrb[10].mxu0 }
 0x3ed   :  { %v564_v56 = vadd.f32 %v563_v53, %v562_v51  ;;  %v538_v57 = vpop.f32.mrb[11].mxu0  ;;  %v557_v61 = vmul.f32 %v3306_v55, %v3855_v28  ;;  %v568_v1 = vsel %vm85_vm1, %v556_v58, 0.0  ;;  %v2986_v55 = vld [vmem:[%s4544_s8 + $0x5] ss:$0 sm:$0xff] }
 0x3ee   :  { %v555_v59 = vmul.f32 %v3839_v10, %v538_v57  ;;  %v565_v60 = vsel %vm85_vm1, %v554_v54, 0.0 }
 0x3ef   :  { %v570_v5 = vsel %vm85_vm1, %v557_v61, 0.0 }
 0x3f0   :  { %v566_v62 = vsel %vm85_vm1, %v555_v59, 0.0 }
 0x3f1   :  { %v567_v63 = vadd.f32 %v566_v62, %v565_v60 }
 0x3f3   :  { %v569_v2 = vadd.f32 %v568_v1, %v567_v63  ;;  %v2977_v1 = vld [vmem:[%s4544_s8 + $0x4] ss:$0 sm:$0xff] }
 0x3f5   :  { %v571_v6 = vadd.f32 %v570_v5, %v569_v2 }
 0x3f7   :  { %v572_v7 = vpack.c.bf16 %v571_v6, %v564_v56 }
 0x3f9   :  { %3312 = vmatmul.mubr.msk.bf16.vlgmr.msra.gmra.mrb[16].mxu1 %vm85_vm1, %v572_v7 }
 0x3fa   :  { %3327 = vmatprep.mubr.msk.bf16.mxu1 %vm3735_vm0, %v3734_v0 }
 0x4cc   :  { %v635_v11 = vpop.f32.mrb[16].mxu1 }
 0x4cd   :  { %v636_v12 = vadd.f32 %v2964_v8, %v635_v11  ;;  %v3313_v13 = vpop.f32.mrb[17].mxu1 }
 0x4ce   :  { %v638_v14 = vpop.f32.mrb[18].mxu1 }
 0x4cf   :  { %v639_v15 = vadd.f32 %v2964_v8, %v638_v14  ;;  %v3314_v16 = vpop.f32.mrb[19].mxu1  ;;  %v642_v17 = vadd.f32 %v636_v12, %v3806_v3 }
 0x4d1   :  { %v648_v18 = vsel %vm85_vm1, %v642_v17, 0.0  ;;  %v643_v19 = vadd.f32 %v639_v15, %v3811_v4  ;;  %v3525_v4 = vld [vmem:[%s4542_s5 + $0x50] sm:$0xff]  }
 0x4d2   :  { %649 = vadd.xlane.f32.xlu0 %v648_v18  ;;  %3324 = vmatpush3.bf16.msra.mxu1 %v3525_v4 }
 0x4d3   :  { %v651_v20 = vsel %vm85_vm1, %v643_v19, 0.0  ;;  %3325 = vmatprep.subr.bf16.mxu1 %v3734_v0 }
 0x4d4   :  { %652 = vadd.xlane.f32.xlu1 %v651_v20 }
 0x4d6   :  { %3326 = vmatpush3.bf16.msra.mxu1 %v3527_v32 }
 0x4d9   :  { %3328 = vmatmul.mubr.msk.bf16.vlgmr.msra.gmra.mrb[20].mxu1 %vm85_vm1, %v3978_v35 }
 0x55f   :  { %v650_v21 = vpop.xlane.xlu0 %649 }
 0x560   :  { %v655_v22 = vmul.f32 0.03125, %v650_v21 }
 0x561   :  { %v653_v23 = vpop.xlane.xlu1 %652 }
 0x562   :  { %v657_v24 = vsub.f32 %v642_v17, %v655_v22  ;;  %v656_v25 = vmul.f32 0.03125, %v653_v23 }
 0x564   :  { %v658_v26 = vsub.f32 %v643_v19, %v656_v25  ;;  %v659_v29 = vmul.f32 %v657_v24, %v657_v24  ;;  %v3530_v25 = vld [vmem:[%s4542_s5 + $0x68] sm:$0xff]  }
 0x566   :  { %v661_v30 = vsel %vm85_vm1, %v659_v29, 0.0  ;;  %v660_v31 = vmul.f32 %v658_v26, %v658_v26 }
 0x567   :  { %662 = vadd.xlane.f32.xlu0 %v661_v30  ;;  %v51_v30 = vld [vmem:[%s4548_s3 + $0x10] sm:$0xff] }
 0x568   :  { %v664_v3 = vsel %vm85_vm1, %v660_v31, 0.0 }
 0x569   :  { %665 = vadd.xlane.f32.xlu1 %v664_v3  ;;  %v50_v3 = vld [vmem:[%s4548_s3 + $0x8] sm:$0xff] }
 0x5ac   :  { %v823_v56 = vpop.f32.mrb[20].mxu1 }
 0x5ad   :  { %v824_v57 = vadd.f32 %v2986_v55, %v823_v56  ;;  %v3329_v58 = vpop.f32.mrb[21].mxu1 }
 0x5ae   :  { %v826_v59 = vpop.f32.mrb[22].mxu1 }
 0x5af   :  { %v827_v60 = vadd.f32 %v2986_v55, %v826_v59  ;;  %v3330_v61 = vpop.f32.mrb[23].mxu1 }
 0x5b1   :  { %v908_v62 = vpack.c.bf16 %v827_v60, %v824_v57 }
 0x5b3   :  { %3512 = vmatprep.subr.msk.bf16.mxu1 %vm85_vm1, %v908_v62  ;;  %v922_v63 = vsel %vm85_vm1, %v908_v62, 0 }
 0x5b4   :  { %3340 = vmatpush3.bf16.xpose.msra.mxu1 %v922_v63 }
 0x5b5   :  { %3359 = vmatprep.subr.bf16.mxu1 %v3734_v0 }
 0x5f4   :  { %v663_v38 = vpop.xlane.xlu0 %662 }
 0x5f5   :  { %v667_v39 = vmul.f32 0.03125, %v663_v38 }
 0x5f6   :  { %v666_v40 = vpop.xlane.xlu1 %665 }
 0x5f7   :  { %v669_v41 = vadd.f32 1e-05, %v667_v39  ;;  %v668_v42 = vmul.f32 0.03125, %v666_v40 }
 0x5f9   :  { %3593 = vrsqrt.f32 %v669_v41  ;;  %v670_v43 = vadd.f32 1e-05, %v668_v42  ;;  %v53_v41 = vld [vmem:[%s4548_s3 + $0x20] sm:$0xff] }
 0x5fb   :  { %3595 = vrsqrt.f32 %v670_v43 }
 0x603   :  { %v3594_v44 = vpop.eup %3593 }
 0x604   :  { %v673_v46 = vmul.f32 %v3594_v44, %v657_v24  ;;  %v3529_v24 = vld [vmem:[%s4542_s5 + $0x60] sm:$0xff]   ;;  %v55_v44 = vld [vmem:[%s4548_s3 + $0x30] sm:$0xff] }
 0x605   :  { %v3596_v47 = vpop.eup %3595 }
 0x606   :  { %v681_v48 = vmul.f32 %v2970_v45, %v673_v46  ;;  %v674_v49 = vmul.f32 %v3596_v47, %v658_v26  ;;  %v49_v26 = vld [vmem:[%s4548_s3] sm:$0xff]  ;;  %v54_v46 = vld [vmem:[%s4548_s3 + $0x28] sm:$0xff] }
 0x608   :  { %v682_v51 = vmul.f32 %v2970_v45, %v674_v49  ;;  %v3996_v52 = vadd.f32 %v2971_v50, %v681_v48 }
 0x60a   :  { %v3998_v53 = vadd.f32 %v2971_v50, %v682_v51  ;;  %v56_v50 = vld [vmem:[%s4548_s3 + $0x38] sm:$0xff] }
 0x60c   :  { %v691_v54 = vpack.c.bf16 %v3998_v53, %v3996_v52 }
 0x60e   :  { %3320 = vmatmul.mubr.msk.bf16.vlgmr.msra.gmra.mrb[12].mxu0 %vm85_vm1, %v691_v54 }
 0x60f   :  { %3335 = vmatprep.mubr.msk.bf16.mxu0 %vm3735_vm0, %v3734_v0  ;;  %3332 = vmatpush3.bf16.msra.mxu0 %v3529_v24 }
 0x610   :  { %3333 = vmatprep.subr.bf16.mxu0 %v3734_v0 }
 0x613   :  { %3334 = vmatpush3.bf16.msra.mxu0 %v3530_v25 }
 0x616   :  { %3336 = vmatmul.mubr.msk.bf16.vlgmr.msra.gmra.mrb[16].mxu0 %vm85_vm1, %v3978_v35 }
 0x6e1   :  { %v754_v2 = vpop.f32.mrb[12].mxu0 }
 0x6e2   :  { %v755_v5 = vadd.f32 %v2977_v1, %v754_v2  ;;  %v3321_v6 = vpop.f32.mrb[13].mxu0 }
 0x6e3   :  { %v757_v7 = vpop.f32.mrb[14].mxu0 }
 0x6e4   :  { %v896_v8 = vmul.f32 %v3834_v9, %v755_v5  ;;  %v897_v11 = vmul.f32 %v3839_v10, %v755_v5  ;;  %v898_v12 = vmul.f32 %v3850_v27, %v755_v5  ;;  %v899_v13 = vmul.f32 %v3855_v28, %v755_v5  ;;  %v3322_v14 = vpop.f32.mrb[15].mxu0 }
 0x6e5   :  { %v758_v15 = vadd.f32 %v2977_v1, %v757_v7 }
 0x6e6   :  { %v905_v16 = vpack.c.bf16 %v899_v13, %v898_v12  ;;  %v904_v17 = vpack.c.bf16 %v897_v11, %v896_v8 }
 0x6e7   :  { %v900_v18 = vmul.f32 %v3834_v9, %v758_v15  ;;  %v901_v19 = vmul.f32 %v3839_v10, %v758_v15  ;;  %v902_v21 = vmul.f32 %v3850_v27, %v758_v15  ;;  %v903_v22 = vmul.f32 %v3855_v28, %v758_v15 }
 0x6e8   :  { %3341 = vmatprep.mubr.msk.bf16.mxu1 %vm85_vm1, %v904_v17 }
 0x6e9   :  { %3342 = vmatmul.mubr.msk.bf16.vlgmr.msra.gmra.mrb[24].mxu1 %vm85_vm1, %v905_v16  ;;  %v906_v20 = vpack.c.bf16 %v901_v19, %v900_v18  ;;  %v907_v23 = vpack.c.bf16 %v903_v22, %v902_v21 }
 0x6eb   :  { %3345 = vmatprep.mubr.msk.bf16.mxu1 %vm85_vm1, %v906_v20 }
 0x6f1   :  { %3346 = vmatmul.mubr.msk.bf16.gmra.mrb[28].mxu1 %vm85_vm1, %v907_v23 }
 0x6f2   :  { %3363 = vmatprep.mubr.msk.bf16.mxu1 %vm3735_vm0, %v3734_v0 }
 0x7bc   :  { %v3343_v29 = vpop.f32.mrb[24].mxu1 }
 0x7bd   :  { %v958_v31 = vpop.f32.mrb[25].mxu1  ;;  %v967_v36 = vadd.f32 %v3343_v29, %v51_v30 }
 0x7be   :  { %v959_v4 = vadd.f32 %v958_v31, %v49_v26  ;;  %v3344_v32 = vpop.f32.mrb[26].mxu1 }
 0x7bf   :  { %v961_v34 = vpop.f32.mrb[27].mxu1  ;;  %v970_v39 = vadd.f32 %v3344_v32, %v52_v33  ;;  %v995_v43 = vsel %vm379_vm2, %v967_v36, -inf }
 0x7c0   :  { %v962_v37 = vadd.f32 %v961_v34, %v50_v3  ;;  %v989_v38 = vsel %vm379_vm2, %v959_v4, -inf }
 0x7c1   :  { %990 = vmax.xlane.f32.xlu0 %v989_v38  ;;  %v998_v49 = vsel %vm379_vm2, %v970_v39, -inf }
 0x7c2   :  { %v992_v40 = vsel %vm379_vm2, %v962_v37, -inf }
 0x7c3   :  { %993 = vmax.xlane.f32.xlu1 %v992_v40 }
 0x7c4   :  { %v3347_v42 = vpop.f32.mrb[28].mxu1 }
 0x7c5   :  { %v974_v45 = vpop.f32.mrb[29].mxu1  ;;  %996 = vmax.xlane.f32.xlu0 %v995_v43  ;;  %v983_v54 = vadd.f32 %v3347_v42, %v55_v44  ;;  %v889_v43 = vpop.f32.mrb[16].mxu0 }
 0x7c6   :  { %v975_v47 = vadd.f32 %v974_v45, %v53_v41  ;;  %v3348_v48 = vpop.f32.mrb[30].mxu1  ;;  %v3337_v44 = vpop.f32.mrb[17].mxu0  ;;  %v2995_v45 = vld [vmem:[%s4544_s8 + $0x6] ss:$0 sm:$0xff] }
 0x7c7   :  { %v977_v51 = vpop.f32.mrb[31].mxu1  ;;  %999 = vmax.xlane.f32.xlu1 %v998_v49  ;;  %v986_v57 = vadd.f32 %v3348_v48, %v56_v50  ;;  %v1007_v59 = vsel %vm379_vm2, %v983_v54, -inf }
 0x7c8   :  { %v978_v55 = vadd.f32 %v977_v51, %v54_v46  ;;  %v1001_v56 = vsel %vm379_vm2, %v975_v47, -inf  ;;  %v890_v46 = vadd.f32 %v2995_v45, %v889_v43 }
 0x7c9   :  { %1002 = vmax.xlane.f32.xlu0 %v1001_v56  ;;  %v1010_v60 = vsel %vm379_vm2, %v986_v57, -inf }
 0x7ca   :  { %v1004_v58 = vsel %vm379_vm2, %v978_v55, -inf }
 0x7cb   :  { %1005 = vmax.xlane.f32.xlu1 %v1004_v58 }
 0x7cd   :  { %1008 = vmax.xlane.f32.xlu0 %v1007_v59 }
 0x7cf   :  { %1011 = vmax.xlane.f32.xlu1 %v1010_v60 }
 0x84e   :  { %v991_v61 = vpop.xlane.xlu0 %990 }
 0x84f   :  { %v1013_v62 = vsub.f32 %v959_v4, %v991_v61 }
 0x850   :  { %v994_v63 = vpop.xlane.xlu1 %993 }
 0x851   :  { %v1021_v1 = vmul.f32 1.442695, %v1013_v62  ;;  %v1014_v2 = vsub.f32 %v962_v37, %v994_v63 }
 0x852   :  { %v997_v5 = vpop.xlane.xlu0 %996 }
 0x853   :  { %3597 = vpow2.f32 %v1021_v1  ;;  %v1023_v6 = vmul.f32 1.442695, %v1014_v2  ;;  %v1015_v7 = vsub.f32 %v967_v36, %v997_v5 }
 0x854   :  { %v1000_v8 = vpop.xlane.xlu1 %999 }
 0x855   :  { %3599 = vpow2.f32 %v1023_v6  ;;  %v1025_v11 = vmul.f32 1.442695, %v1015_v7  ;;  %v1016_v12 = vsub.f32 %v970_v39, %v1000_v8 }
 0x856   :  { %v1003_v13 = vpop.xlane.xlu0 %1002 }
 0x857   :  { %3601 = vpow2.f32 %v1025_v11  ;;  %v1027_v14 = vmul.f32 1.442695, %v1016_v12  ;;  %v1017_v15 = vsub.f32 %v975_v47, %v1003_v13  ;;  %v892_v47 = vpop.f32.mrb[18].mxu0 }
 0x858   :  { %v1006_v16 = vpop.xlane.xlu1 %1005  ;;  %v893_v48 = vadd.f32 %v2995_v45, %v892_v47  ;;  %v3338_v49 = vpop.f32.mrb[19].mxu0  ;;  %v4108_v45 = vld [vmem:[%s4545_s4 + $0x1] ss:$0 sm:$0xff] }
 0x859   :  { %3603 = vpow2.f32 %v1027_v14  ;;  %v1029_v17 = vmul.f32 1.442695, %v1017_v15  ;;  %v1018_v18 = vsub.f32 %v978_v55, %v1006_v16 }
 0x85a   :  { %v1009_v19 = vpop.xlane.xlu0 %1008  ;;  %v1081_v50 = vpack.c.bf16 %v893_v48, %v890_v46 }
 0x85b   :  { %3605 = vpow2.f32 %v1029_v17  ;;  %v1031_v20 = vmul.f32 1.442695, %v1018_v18  ;;  %v1019_v21 = vsub.f32 %v983_v54, %v1009_v19 }
 0x85c   :  { %v1012_v22 = vpop.xlane.xlu1 %1011  ;;  %3349 = vmatprep.subr.bf16.mxu0 %v1081_v50 }
 0x85d   :  { %v3598_v23 = vpop.eup %3597  ;;  %3607 = vpow2.f32 %v1031_v20  ;;  %v1033_v24 = vmul.f32 1.442695, %v1019_v21  ;;  %v1020_v25 = vsub.f32 %v986_v57, %v1012_v22  ;;  %3350 = vmatpush3.bf16.msra.mxu0 %v1081_v50  ;;  %v3531_v22 = vld [vmem:[%s4542_s5 + $0x70] sm:$0xff]  }
 0x85e   :  { %v1037_v26 = vsel %vm379_vm2, %v3598_v23, 0.0  ;;  %3367 = vmatprep.subr.bf16.mxu0 %v3734_v0  ;;  %3360 = vmatpush3.bf16.msra.mxu1 %v3531_v22 }
 0x85f   :  { %v3600_v29 = vpop.eup %3599  ;;  %3609 = vpow2.f32 %v1033_v24  ;;  %v1035_v30 = vmul.f32 1.442695, %v1020_v25  ;;  %1038 = vadd.xlane.f32.xlu0 %v1037_v26  ;;  %3361 = vmatprep.subr.bf16.mxu1 %v3734_v0 }
 0x860   :  { %v1040_v31 = vsel %vm379_vm2, %v3600_v29, 0.0 }
 0x861   :  { %v3602_v3 = vpop.eup %3601  ;;  %3611 = vpow2.f32 %v1035_v30  ;;  %1041 = vadd.xlane.f32.xlu1 %v1040_v31 }
 0x862   :  { %v1043_v4 = vsel %vm379_vm2, %v3602_v3, 0.0 }
 0x863   :  { %v3604_v32 = vpop.eup %3603  ;;  %1044 = vadd.xlane.f32.xlu0 %v1043_v4 }
 0x864   :  { %v1046_v33 = vsel %vm379_vm2, %v3604_v32, 0.0 }
 0x865   :  { %v3606_v34 = vpop.eup %3605  ;;  %1047 = vadd.xlane.f32.xlu1 %v1046_v33 }
 0x866   :  { %v1049_v36 = vsel %vm379_vm2, %v3606_v34, 0.0 }
 0x867   :  { %v3608_v37 = vpop.eup %3607  ;;  %1050 = vadd.xlane.f32.xlu0 %v1049_v36 }
 0x868   :  { %v1052_v38 = vsel %vm379_vm2, %v3608_v37, 0.0 }
 0x869   :  { %v3610_v39 = vpop.eup %3609  ;;  %1053 = vadd.xlane.f32.xlu1 %v1052_v38 }
 0x86a   :  { %v1055_v40 = vsel %vm379_vm2, %v3610_v39, 0.0 }
 0x86b   :  { %v3612_v41 = vpop.eup %3611  ;;  %1056 = vadd.xlane.f32.xlu0 %v1055_v40 }
 0x86c   :  { %v1058_v42 = vsel %vm379_vm2, %v3612_v41, 0.0 }
 0x86d   :  { %1059 = vadd.xlane.f32.xlu1 %v1058_v42 }
 0x8ec   :  { %v1039_v51 = vpop.xlane.xlu0 %1038 }
 0x8ed   :  { %3613 = vrcp.f32 %v1039_v51 }
 0x8ee   :  { %v1042_v54 = vpop.xlane.xlu1 %1041 }
 0x8ef   :  { %3615 = vrcp.f32 %v1042_v54 }
 0x8f0   :  { %v1045_v55 = vpop.xlane.xlu0 %1044 }
 0x8f1   :  { %3617 = vrcp.f32 %v1045_v55 }
 0x8f2   :  { %v1048_v56 = vpop.xlane.xlu1 %1047 }
 0x8f3   :  { %3619 = vrcp.f32 %v1048_v56  ;;  %v3012_v56 = vld [vmem:[%s4544_s8 + $0x7] ss:$0 sm:$0xff] }
 0x8f4   :  { %v1051_v57 = vpop.xlane.xlu0 %1050 }
 0x8f5   :  { %3621 = vrcp.f32 %v1051_v57 }
 0x8f6   :  { %v1054_v58 = vpop.xlane.xlu1 %1053 }
 0x8f7   :  { %v3614_v59 = vpop.eup %3613  ;;  %3623 = vrcp.f32 %v1054_v58 }
 0x8f8   :  { %v1057_v60 = vpop.xlane.xlu0 %1056  ;;  %v1069_v63 = vmul.f32 %v3614_v59, %v3598_v23  ;;  %v3532_v23 = vld [vmem:[%s4542_s5 + $0x78] sm:$0xff]  }
 0x8f9   :  { %v3616_v61 = vpop.eup %3615  ;;  %3625 = vrcp.f32 %v1057_v60  ;;  %3362 = vmatpush3.bf16.msra.mxu1 %v3532_v23 }
 0x8fa   :  { %v1060_v62 = vpop.xlane.xlu1 %1059  ;;  %v1070_v1 = vmul.f32 %v3616_v61, %v3600_v29  ;;  %3375 = vmatprep.subr.bf16.mxu1 %v3734_v0 }
 0x8fb   :  { %v3618_v2 = vpop.eup %3617  ;;  %3627 = vrcp.f32 %v1060_v62 }
 0x8fc   :  { %v1077_v5 = vpack.c.bf16 %v1070_v1, %v1069_v63  ;;  %v1071_v7 = vmul.f32 %v3618_v2, %v3602_v3 }
 0x8fd   :  { %v3620_v6 = vpop.eup %3619 }
 0x8fe   :  { %v1072_v8 = vmul.f32 %v3620_v6, %v3604_v32  ;;  %3351 = vmatprep.mubr.msk.bf16.mxu0 %vm379_vm2, %v1077_v5 }
 0x8ff   :  { %v3622_v11 = vpop.eup %3621 }
 0x900   :  { %v1078_v12 = vpack.c.bf16 %v1072_v8, %v1071_v7  ;;  %v1073_v14 = vmul.f32 %v3622_v11, %v3606_v34 }
 0x901   :  { %v3624_v13 = vpop.eup %3623 }
 0x902   :  { %3352 = vmatmul.mubr.msk.bf16.vlgmr.msra.gmra.mrb[20].mxu0 %vm379_vm2, %v1078_v12  ;;  %v1074_v15 = vmul.f32 %v3624_v13, %v3608_v37 }
 0x903   :  { %v3626_v16 = vpop.eup %3625 }
 0x904   :  { %v1079_v17 = vpack.c.bf16 %v1074_v15, %v1073_v14  ;;  %v1075_v19 = vmul.f32 %v3626_v16, %v3610_v39  ;;  %v3534_v16 = vld [vmem:[%s4549_s6 + $0x8] sm:$0xff]  }
 0x905   :  { %v3628_v18 = vpop.eup %3627 }
 0x906   :  { %3355 = vmatprep.mubr.msk.bf16.mxu0 %vm379_vm2, %v1079_v17  ;;  %v1076_v20 = vmul.f32 %v3628_v18, %v3612_v41  ;;  %v3535_v17 = vld [vmem:[%s4550_s7] sm:$0xff]   ;;  %v3536_v18 = vld [vmem:[%s4550_s7 + $0x8] sm:$0xff]  }
 0x908   :  { %v1080_v21 = vpack.c.bf16 %v1076_v20, %v1075_v19 }
 0x90a   :  { %3356 = vmatmul.mubr.msk.bf16.gmra.mrb[24].mxu0 %vm379_vm2, %v1080_v21 }
 0x90b   :  { %3371 = vmatprep.mubr.msk.bf16.mxu0 %vm3735_vm0, %v3734_v0 }
 0x9d5   :  { %v3353_v24 = vpop.f32.mrb[20].mxu0 }
 0x9d6   :  { %v1128_v25 = vpop.f32.mrb[21].mxu0  ;;  %v1161_v31 = vmul.f32 %v3353_v24, %v3850_v27 }
 0x9d7   :  { %v1159_v26 = vmul.f32 %v3834_v9, %v1128_v25  ;;  %v3354_v29 = vpop.f32.mrb[22].mxu0 }
 0x9d8   :  { %v1131_v30 = vpop.f32.mrb[23].mxu0  ;;  %v1162_v32 = vmul.f32 %v3354_v29, %v3855_v28  ;;  %v1170_v36 = vsel %vm85_vm1, %v1161_v31, 0.0 }
 0x9d9   :  { %v1160_v3 = vmul.f32 %v3839_v10, %v1131_v30  ;;  %v1167_v4 = vsel %vm85_vm1, %v1159_v26, 0.0  ;;  %v3018_v26 = vld [vmem:[%s4544_s8 + $0xb] ss:$0 sm:$0xff] }
 0x9da   :  { %v1172_v40 = vsel %vm85_vm1, %v1162_v32, 0.0 }
 0x9db   :  { %v1168_v33 = vsel %vm85_vm1, %v1160_v3, 0.0 }
 0x9dc   :  { %v1169_v34 = vadd.f32 %v1168_v33, %v1167_v4  ;;  %v3019_v4 = vld [vmem:[%s4544_s8 + $0xc] ss:$0 sm:$0xff] }
 0x9dd   :  { %v3357_v37 = vpop.f32.mrb[24].mxu0 }
 0x9de   :  { %v1171_v38 = vadd.f32 %v1170_v36, %v1169_v34  ;;  %v1144_v39 = vpop.f32.mrb[25].mxu0  ;;  %v1165_v10 = vmul.f32 %v3357_v37, %v3850_v27  ;;  %v3537_v37 = vld [vmem:[%s4550_s7 + $0x10] sm:$0xff]  }
 0x9df   :  { %v1163_v41 = vmul.f32 %v3834_v9, %v1144_v39  ;;  %v3358_v42 = vpop.f32.mrb[26].mxu0  ;;  %v3020_v39 = vld [vmem:[%s4551_s9] ss:$0 sm:$0xff] }
 0x9e0   :  { %v1173_v43 = vadd.f32 %v1172_v40, %v1171_v38  ;;  %v1147_v44 = vpop.f32.mrb[27].mxu0  ;;  %v1166_v48 = vmul.f32 %v3358_v42, %v3855_v28  ;;  %v1177_v9 = vsel %vm85_vm1, %v1165_v10, 0.0  ;;  %v3538_v38 = vld [vmem:[%s4550_s7 + $0x18] sm:$0xff]  }
 0x9e1   :  { %v1164_v46 = vmul.f32 %v4108_v45, %v1147_v44  ;;  %v1174_v47 = vsel %vm85_vm1, %v1163_v41, 0.0 }
 0x9e2   :  { %v1179_v54 = vsel %vm85_vm1, %v1166_v48, 0.0 }
 0x9e3   :  { %v1175_v49 = vsel %vm85_vm1, %v1164_v46, 0.0 }
 0x9e4   :  { %v1176_v50 = vadd.f32 %v1175_v49, %v1174_v47  ;;  %v3025_v49 = vld [vmem:[%s4544_s8 + $0x8] ss:$0 sm:$0xff] }
 0x9e6   :  { %v1178_v51 = vadd.f32 %v1177_v9, %v1176_v50 }
 0x9e8   :  { %v1180_v27 = vadd.f32 %v1179_v54, %v1178_v51 }
 0x9ea   :  { %v1181_v55 = vpack.c.bf16 %v1180_v27, %v1173_v43 }
 0x9ec   :  { %3364 = vmatmul.mubr.msk.bf16.vlgmr.msra.gmra.mrb[32].mxu1 %vm85_vm1, %v1181_v55 }
 0x9ed   :  { %3383 = vmatprep.mubr.msk.bf16.mxu1 %vm3735_vm0, %v3734_v0  ;;  %3376 = vmatpush3.bf16.msra.mxu1 %v3535_v17 }
 0x9ee   :  { %3377 = vmatprep.subr.bf16.mxu1 %v3734_v0 }
 0x9f1   :  { %3378 = vmatpush3.bf16.msra.mxu1 %v3536_v18 }
 0x9f2   :  { %3379 = vmatprep.subr.bf16.mxu1 %v3734_v0 }
 0x9f5   :  { %3380 = vmatpush3.bf16.msra.mxu1 %v3537_v37 }
 0x9f6   :  { %3381 = vmatprep.subr.bf16.mxu1 %v3734_v0 }
 0x9f9   :  { %3382 = vmatpush3.bf16.msra.mxu1 %v3538_v38  ;;  %v3058_v38 = vld [vmem:[%s4544_s8 + $0x11] ss:$0 sm:$0xff] }
 0x9fa   :  { %3403 = vmatprep.subr.bf16.mxu1 %v3734_v0 }
 0xabf   :  { %v1244_v28 = vpop.f32.mrb[32].mxu1 }
 0xac0   :  { %v1245_v57 = vadd.f32 %v3012_v56, %v1244_v28  ;;  %v3365_v58 = vpop.f32.mrb[33].mxu1 }
 0xac1   :  { %v1247_v59 = vpop.f32.mrb[34].mxu1 }
 0xac2   :  { %v1248_v60 = vadd.f32 %v3012_v56, %v1247_v59  ;;  %v3366_v61 = vpop.f32.mrb[35].mxu1  ;;  %v1251_v62 = vadd.f32 %v1245_v57, %v3996_v52 }
 0xac4   :  { %v1257_v63 = vsel %vm85_vm1, %v1251_v62, 0.0  ;;  %v1252_v1 = vadd.f32 %v1248_v60, %v3998_v53  ;;  %v3533_v53 = vld [vmem:[%s4549_s6] sm:$0xff]  }
 0xac5   :  { %1258 = vadd.xlane.f32.xlu0 %v1257_v63  ;;  %3368 = vmatpush3.bf16.msra.mxu0 %v3533_v53 }
 0xac6   :  { %v1260_v2 = vsel %vm85_vm1, %v1252_v1, 0.0  ;;  %3369 = vmatprep.subr.bf16.mxu0 %v3734_v0 }
 0xac7   :  { %1261 = vadd.xlane.f32.xlu1 %v1260_v2 }
 0xac9   :  { %3370 = vmatpush3.bf16.msra.mxu0 %v3534_v16 }
 0xaca   :  { %3387 = vmatprep.subr.bf16.mxu0 %v3734_v0 }
 0xb52   :  { %v1259_v5 = vpop.xlane.xlu0 %1258 }
 0xb53   :  { %v1263_v6 = vmul.f32 0.03125, %v1259_v5 }
 0xb54   :  { %v1262_v7 = vpop.xlane.xlu1 %1261 }
 0xb55   :  { %v1265_v8 = vsub.f32 %v1251_v62, %v1263_v6  ;;  %v1264_v11 = vmul.f32 0.03125, %v1262_v7 }
 0xb57   :  { %v1266_v12 = vsub.f32 %v1252_v1, %v1264_v11  ;;  %v1267_v13 = vmul.f32 %v1265_v8, %v1265_v8  ;;  %v3540_v11 = vld [vmem:[%s4542_s5 + $0xa0] sm:$0xff]  }
 0xb59   :  { %v1269_v14 = vsel %vm85_vm1, %v1267_v13, 0.0  ;;  %v1268_v15 = vmul.f32 %v1266_v12, %v1266_v12  ;;  %v3542_v13 = vld [vmem:[%s4542_s5 + $0xa8] sm:$0xff]  }
 0xb5a   :  { %1270 = vadd.xlane.f32.xlu0 %v1269_v14 }
 0xb5b   :  { %v1272_v52 = vsel %vm85_vm1, %v1268_v15, 0.0 }
 0xb5c   :  { %1273 = vadd.xlane.f32.xlu1 %v1272_v52 }
 0xbe7   :  { %v1271_v19 = vpop.xlane.xlu0 %1270 }
 0xbe8   :  { %v1275_v20 = vmul.f32 0.03125, %v1271_v19  ;;  %v3033_v19 = vld [vmem:[%s4544_s8 + $0xd] ss:$0 sm:$0xff] }
 0xbe9   :  { %v1274_v21 = vpop.xlane.xlu1 %1273 }
 0xbea   :  { %v1277_v22 = vadd.f32 1e-05, %v1275_v20  ;;  %v1276_v23 = vmul.f32 0.03125, %v1274_v21 }
 0xbec   :  { %3629 = vrsqrt.f32 %v1277_v22  ;;  %v1278_v24 = vadd.f32 1e-05, %v1276_v23 }
 0xbee   :  { %3631 = vrsqrt.f32 %v1278_v24  ;;  %v3034_v24 = vld [vmem:[%s4544_s8 + $0xe] ss:$0 sm:$0xff] }
 0xbf6   :  { %v3630_v25 = vpop.eup %3629 }
 0xbf7   :  { %v1281_v29 = vmul.f32 %v3630_v25, %v1265_v8  ;;  %v3539_v8 = vld [vmem:[%s4542_s5 + $0x80] sm:$0xff]  }
 0xbf8   :  { %v3632_v30 = vpop.eup %3631 }
 0xbf9   :  { %v1289_v31 = vmul.f32 %v3018_v26, %v1281_v29  ;;  %v1282_v3 = vmul.f32 %v3632_v30, %v1266_v12  ;;  %v3541_v12 = vld [vmem:[%s4542_s5 + $0x88] sm:$0xff]   ;;  %v3543_v30 = vld [vmem:[%s4542_s5 + $0x90] sm:$0xff]  }
 0xbfb   :  { %v1290_v32 = vmul.f32 %v3018_v26, %v1282_v3  ;;  %v1297_v33 = vadd.f32 %v3019_v4, %v1289_v31  ;;  %v3544_v3 = vld [vmem:[%s4542_s5 + $0x98] sm:$0xff]  }
 0xbfd   :  { %v1298_v34 = vadd.f32 %v3019_v4, %v1290_v32  ;;  %v3040_v4 = vld [vmem:[%s4544_s8 + $0xf] ss:$0 sm:$0xff] }
 0xbff   :  { %v1299_v36 = vpack.c.bf16 %v1298_v34, %v1297_v33 }
 0xc01   :  { %3372 = vmatmul.mubr.msk.bf16.vlgmr.msra.gmra.mrb[28].mxu0 %vm85_vm1, %v1299_v36 }
 0xc02   :  { %3391 = vmatprep.mubr.msk.bf16.mxu0 %vm3735_vm0, %v3734_v0  ;;  %3388 = vmatpush3.bf16.msra.mxu0 %v3539_v8 }
 0xc03   :  { %3389 = vmatprep.subr.bf16.mxu0 %v3734_v0 }
 0xc06   :  { %3390 = vmatpush3.bf16.msra.mxu0 %v3541_v12 }
 0xc07   :  { %3395 = vmatprep.subr.bf16.mxu0 %v3734_v0 }
 0xcd4   :  { %v1360_v40 = vpop.f32.mrb[28].mxu0 }
 0xcd5   :  { %v1361_v41 = vadd.f32 %v3020_v39, %v1360_v40  ;;  %v3373_v42 = vpop.f32.mrb[29].mxu0 }
 0xcd6   :  { %v1363_v43 = vpop.f32.mrb[30].mxu0 }
 0xcd7   :  { %v1364_v44 = vadd.f32 %v3020_v39, %v1363_v43  ;;  %v3374_v10 = vpop.f32.mrb[31].mxu0  ;;  %v1367_v46 = vmax.f32 %v1361_v41, 0.0  ;;  %v4222_v41 = vld [vmem:[%s4545_s4] ss:$0 sm:$0xff] }
 0xcd9   :  { %v1368_v47 = vmax.f32 %v1364_v44, 0.0 }
 0xcdb   :  { %v1369_v48 = vpack.c.bf16 %v1368_v47, %v1367_v46 }
 0xcdd   :  { %3384 = vmatmul.mubr.msk.bf16.vlgmr.msra.gmra.mrb[36].mxu1 %vm1410_vm3, %v1369_v48 }
 0xcde   :  { %3407 = vmatprep.mubr.msk.bf16.mxu1 %vm3735_vm0, %v3734_v0  ;;  %3404 = vmatpush3.bf16.msra.mxu1 %v3540_v11 }
 0xcdf   :  { %3405 = vmatprep.subr.bf16.mxu1 %v3734_v0 }
 0xce2   :  { %3406 = vmatpush3.bf16.msra.mxu1 %v3542_v13  ;;  %v3717_v13 = vld [vmem:[%s4546_s2] sm:$0xff] }
 0xdb0   :  { %v1448_v50 = vpop.f32.mrb[36].mxu1 }
 0xdb1   :  { %v1449_v9 = vadd.f32 %v3025_v49, %v1448_v50  ;;  %v3385_v51 = vpop.f32.mrb[37].mxu1  ;;  %v3049_v50 = vld [vmem:[%s4544_s8 + $0x10] ss:$0 sm:$0xff] }
 0xdb2   :  { %v1451_v54 = vpop.f32.mrb[38].mxu1 }
 0xdb3   :  { %v1452_v27 = vadd.f32 %v3025_v49, %v1451_v54  ;;  %v3386_v55 = vpop.f32.mrb[39].mxu1  ;;  %v1455_v56 = vadd.f32 %v1449_v9, %v1297_v33 }
 0xdb5   :  { %v1461_v28 = vsel %vm85_vm1, %v1455_v56, 0.0  ;;  %v1456_v57 = vadd.f32 %v1452_v27, %v1298_v34 }
 0xdb6   :  { %1462 = vadd.xlane.f32.xlu0 %v1461_v28 }
 0xdb7   :  { %v1464_v58 = vsel %vm85_vm1, %v1456_v57, 0.0 }
 0xdb8   :  { %1465 = vadd.xlane.f32.xlu1 %v1464_v58 }
 0xe43   :  { %v1463_v59 = vpop.xlane.xlu0 %1462 }
 0xe44   :  { %v1467_v60 = vmul.f32 0.03125, %v1463_v59  ;;  %v4236_v59 = vld [vmem:[%s4545_s4 + $0x2] ss:$0 sm:$0xff] }
 0xe45   :  { %v1466_v61 = vpop.xlane.xlu1 %1465 }
 0xe46   :  { %v1469_v62 = vsub.f32 %v1455_v56, %v1467_v60  ;;  %v1468_v63 = vmul.f32 0.03125, %v1466_v61  ;;  %v4242_v61 = vld [vmem:[%s4545_s4 + $0x3] ss:$0 sm:$0xff] }
 0xe48   :  { %v1470_v1 = vsub.f32 %v1456_v57, %v1468_v63  ;;  %v1471_v2 = vmul.f32 %v1469_v62, %v1469_v62 }
 0xe4a   :  { %v1473_v5 = vsel %vm85_vm1, %v1471_v2, 0.0  ;;  %v1472_v6 = vmul.f32 %v1470_v1, %v1470_v1 }
 0xe4b   :  { %1474 = vadd.xlane.f32.xlu0 %v1473_v5 }
 0xe4c   :  { %v1476_v7 = vsel %vm85_vm1, %v1472_v6, 0.0 }
 0xe4d   :  { %1477 = vadd.xlane.f32.xlu1 %v1476_v7 }
 0xed8   :  { %v1475_v14 = vpop.xlane.xlu0 %1474 }
 0xed9   :  { %v1479_v15 = vmul.f32 0.03125, %v1475_v14 }
 0xeda   :  { %v1478_v52 = vpop.xlane.xlu1 %1477 }
 0xedb   :  { %v1481_v53 = vadd.f32 1e-05, %v1479_v15  ;;  %v1480_v16 = vmul.f32 0.03125, %v1478_v52 }
 0xedd   :  { %3633 = vrsqrt.f32 %v1481_v53  ;;  %v1482_v17 = vadd.f32 1e-05, %v1480_v16  ;;  %v3718_v53 = vld [vmem:[%s4546_s2 + $0x10] sm:$0xff] }
 0xedf   :  { %3635 = vrsqrt.f32 %v1482_v17  ;;  %v3719_v17 = vld [vmem:[%s4546_s2 + $0x8] sm:$0xff] }
 0xee7   :  { %v3634_v18 = vpop.eup %3633 }
 0xee8   :  { %v1485_v20 = vmul.f32 %v3634_v18, %v1469_v62 }
 0xee9   :  { %v3636_v21 = vpop.eup %3635 }
 0xeea   :  { %v1493_v22 = vmul.f32 %v3033_v19, %v1485_v20  ;;  %v1486_v23 = vmul.f32 %v3636_v21, %v1470_v1  ;;  %v3720_v20 = vld [vmem:[%s4546_s2 + $0x18] sm:$0xff] }
 0xeec   :  { %v1494_v25 = vmul.f32 %v3033_v19, %v1486_v23  ;;  %v4195_v26 = vadd.f32 %v3034_v24, %v1493_v22 }
 0xeee   :  { %v4197_v29 = vadd.f32 %v3034_v24, %v1494_v25 }
 0xef0   :  { %v1503_v31 = vpack.c.bf16 %v4197_v29, %v4195_v26 }
 0xef2   :  { %3392 = vmatmul.mubr.msk.bf16.vlgmr.msra.gmra.mrb[32].mxu0 %vm85_vm1, %v1503_v31  ;;  %3408 = vmatmul.mubr.msk.bf16.vlgmr.msra.gmra.mrb[40].mxu1 %vm85_vm1, %v1503_v31 }
 0xef3   :  { %3396 = vmatpush3.bf16.msra.mxu0 %v3543_v30  ;;  %3399 = vmatprep.mubr.msk.bf16.mxu0 %vm3735_vm0, %v3734_v0  ;;  %v3721_v30 = vld [vmem:[%s4546_s2 + $0x20] sm:$0xff] }
 0xef4   :  { %3397 = vmatprep.subr.bf16.mxu0 %v3734_v0 }
 0xef7   :  { %3398 = vmatpush3.bf16.msra.mxu0 %v3544_v3 }
 0xefa   :  { %3400 = vmatmul.mubr.msk.bf16.vlgmr.msra.gmra.mrb[36].mxu0 %vm85_vm1, %v1503_v31 }
 0xfc5   :  { %v1566_v32 = vpop.f32.mrb[32].mxu0  ;;  %v1698_v33 = vpop.f32.mrb[40].mxu1 }
 0xfc6   :  { %v1567_v34 = vadd.f32 %v3040_v4, %v1566_v32  ;;  %v3393_v36 = vpop.f32.mrb[33].mxu0  ;;  %v3409_v37 = vpop.f32.mrb[41].mxu1  ;;  %v1699_v47 = vadd.f32 %v3058_v38, %v1698_v33  ;;  %v3722_v33 = vld [vmem:[%s4546_s2 + $0x30] sm:$0xff] }
 0xfc7   :  { %v1569_v39 = vpop.f32.mrb[34].mxu0  ;;  %v1701_v40 = vpop.f32.mrb[42].mxu1  ;;  %v3723_v36 = vld [vmem:[%s4546_s2 + $0x28] sm:$0xff] }
 0xfc8   :  { %v1705_v42 = vmul.f32 %v4222_v41, %v1567_v34  ;;  %v1706_v43 = vmul.f32 %v4108_v45, %v1567_v34  ;;  %v3394_v44 = vpop.f32.mrb[35].mxu0  ;;  %v3410_v10 = vpop.f32.mrb[43].mxu1  ;;  %v1702_v46 = vadd.f32 %v3058_v38, %v1701_v40  ;;  %v1570_v57 = vadd.f32 %v3040_v4, %v1569_v39  ;;  %v3724_v39 = vld [vmem:[%s4546_s2 + $0x38] sm:$0xff] }
 0xfc9   :  { %v1707_v60 = vmul.f32 %v4236_v59, %v1567_v34  ;;  %v1708_v62 = vmul.f32 %v4242_v61, %v1567_v34 }
 0xfca   :  { %v1713_v48 = vpack.c.bf16 %v1706_v43, %v1705_v42  ;;  %v1890_v49 = vpack.c.bf16 %v1702_v46, %v1699_v47  ;;  %v1709_v63 = vmul.f32 %v4222_v41, %v1570_v57  ;;  %v1710_v1 = vmul.f32 %v4108_v45, %v1570_v57 }
 0xfcb   :  { %v1714_v2 = vpack.c.bf16 %v1708_v62, %v1707_v60  ;;  %v1711_v6 = vmul.f32 %v4236_v59, %v1570_v57  ;;  %v1712_v7 = vmul.f32 %v4242_v61, %v1570_v57 }
 0xfcc   :  { %3413 = vmatprep.mubr.msk.bf16.mxu0 %vm85_vm1, %v1713_v48  ;;  %3421 = vmatprep.subr.bf16.mxu1 %v1890_v49  ;;  %v1715_v5 = vpack.c.bf16 %v1710_v1, %v1709_v63 }
 0xfcd   :  { %v1632_v9 = vpop.f32.mrb[36].mxu0  ;;  %3422 = vmatpush3.bf16.msra.mxu1 %v1890_v49  ;;  %v1716_v8 = vpack.c.bf16 %v1712_v7, %v1711_v6 }
 0xfce   :  { %v3401_v51 = vpop.f32.mrb[37].mxu0  ;;  %v1633_v27 = vadd.f32 %v3049_v50, %v1632_v9  ;;  %3439 = vmatprep.subr.bf16.mxu1 %v3734_v0 }
 0xfcf   :  { %v1635_v54 = vpop.f32.mrb[38].mxu0 }
 0xfd0   :  { %v1636_v55 = vadd.f32 %v3049_v50, %v1635_v54  ;;  %v3402_v56 = vpop.f32.mrb[39].mxu0 }
 0xfd2   :  { %v1717_v28 = vpack.c.bf16 %v1636_v55, %v1633_v27 }
 0xfd4   :  { %3513 = vmatprep.subr.msk.bf16.mxu0 %vm85_vm1, %v1717_v28  ;;  %v1731_v58 = vsel %vm85_vm1, %v1717_v28, 0 }
 0xfd5   :  { %3412 = vmatpush3.bf16.xpose.msra.mxu0 %v1731_v58 }
 0xfd6   :  { %3431 = vmatprep.subr.bf16.mxu0 %v3734_v0 }
 0xfdc   :  { %3414 = vmatmul.mubr.msk.bf16.vlgmr.msra.gmra.mrb[40].mxu0 %vm85_vm1, %v1714_v2 }
 0xfdd   :  { %3417 = vmatprep.mubr.msk.bf16.mxu0 %vm85_vm1, %v1715_v5 }
 0xfe4   :  { %3418 = vmatmul.mubr.msk.bf16.gmra.mrb[44].mxu0 %vm85_vm1, %v1716_v8 }
 0xfe5   :  { %3435 = vmatprep.mubr.msk.bf16.mxu0 %vm3735_vm0, %v3734_v0 }
0x10af   :  { %v3415_v11 = vpop.f32.mrb[40].mxu0 }
0x10b0   :  { %v1767_v12 = vpop.f32.mrb[41].mxu0  ;;  %v1776_v16 = vadd.f32 %v3718_v53, %v3415_v11 }
0x10b1   :  { %v1768_v14 = vadd.f32 %v3717_v13, %v1767_v12  ;;  %v3416_v15 = vpop.f32.mrb[42].mxu0 }
0x10b2   :  { %v1770_v52 = vpop.f32.mrb[43].mxu0  ;;  %v1779_v21 = vadd.f32 %v3720_v20, %v3416_v15  ;;  %v1804_v24 = vsel %vm379_vm2, %v1776_v16, -inf }
0x10b3   :  { %v1771_v18 = vadd.f32 %v3719_v17, %v1770_v52  ;;  %v1798_v19 = vsel %vm379_vm2, %v1768_v14, -inf }
0x10b4   :  { %1799 = vmax.xlane.f32.xlu0 %v1798_v19  ;;  %v1807_v4 = vsel %vm379_vm2, %v1779_v21, -inf }
0x10b5   :  { %v1801_v22 = vsel %vm379_vm2, %v1771_v18, -inf }
0x10b6   :  { %1802 = vmax.xlane.f32.xlu1 %v1801_v22 }
0x10b7   :  { %v3419_v23 = vpop.f32.mrb[44].mxu0 }
0x10b8   :  { %v1783_v25 = vpop.f32.mrb[45].mxu0  ;;  %1805 = vmax.xlane.f32.xlu0 %v1804_v24  ;;  %v1792_v34 = vadd.f32 %v3722_v33, %v3419_v23 }
0x10b9   :  { %v1784_v31 = vadd.f32 %v3721_v30, %v1783_v25  ;;  %v3420_v3 = vpop.f32.mrb[46].mxu0 }
0x10ba   :  { %v1786_v32 = vpop.f32.mrb[47].mxu0  ;;  %1808 = vmax.xlane.f32.xlu1 %v1807_v4  ;;  %v1795_v40 = vadd.f32 %v3724_v39, %v3420_v3  ;;  %v1816_v43 = vsel %vm379_vm2, %v1792_v34, -inf }
0x10bb   :  { %v1787_v37 = vadd.f32 %v3723_v36, %v1786_v32  ;;  %v1810_v38 = vsel %vm379_vm2, %v1784_v31, -inf }
0x10bc   :  { %1811 = vmax.xlane.f32.xlu0 %v1810_v38  ;;  %v1819_v44 = vsel %vm379_vm2, %v1795_v40, -inf }
0x10bd   :  { %v1813_v42 = vsel %vm379_vm2, %v1787_v37, -inf }
0x10be   :  { %1814 = vmax.xlane.f32.xlu1 %v1813_v42 }
0x10c0   :  { %1817 = vmax.xlane.f32.xlu0 %v1816_v43 }
0x10c2   :  { %1820 = vmax.xlane.f32.xlu1 %v1819_v44 }
0x1141   :  { %v1800_v10 = vpop.xlane.xlu0 %1799 }
0x1142   :  { %v1822_v46 = vsub.f32 %v1768_v14, %v1800_v10 }
0x1143   :  { %v1803_v47 = vpop.xlane.xlu1 %1802 }
0x1144   :  { %v1830_v48 = vmul.f32 1.442695, %v1822_v46  ;;  %v1823_v49 = vsub.f32 %v1771_v18, %v1803_v47 }
0x1145   :  { %v1806_v50 = vpop.xlane.xlu0 %1805 }
0x1146   :  { %3637 = vpow2.f32 %v1830_v48  ;;  %v1832_v9 = vmul.f32 1.442695, %v1823_v49  ;;  %v1824_v51 = vsub.f32 %v1776_v16, %v1806_v50 }
0x1147   :  { %v1809_v54 = vpop.xlane.xlu1 %1808 }
0x1148   :  { %3639 = vpow2.f32 %v1832_v9  ;;  %v1834_v27 = vmul.f32 1.442695, %v1824_v51  ;;  %v1825_v55 = vsub.f32 %v1779_v21, %v1809_v54 }
0x1149   :  { %v1812_v56 = vpop.xlane.xlu0 %1811 }
0x114a   :  { %3641 = vpow2.f32 %v1834_v27  ;;  %v1836_v28 = vmul.f32 1.442695, %v1825_v55  ;;  %v1826_v57 = vsub.f32 %v1784_v31, %v1812_v56 }
0x114b   :  { %v1815_v58 = vpop.xlane.xlu1 %1814 }
0x114c   :  { %3643 = vpow2.f32 %v1836_v28  ;;  %v1838_v60 = vmul.f32 1.442695, %v1826_v57  ;;  %v1827_v62 = vsub.f32 %v1787_v37, %v1815_v58  ;;  %v3545_v28 = vld [vmem:[%s4542_s5 + $0xb0] sm:$0xff]   ;;  %v3546_v57 = vld [vmem:[%s4542_s5 + $0xb8] sm:$0xff]  }
0x114d   :  { %v1818_v63 = vpop.xlane.xlu0 %1817  ;;  %3432 = vmatpush3.bf16.msra.mxu0 %v3545_v28 }
0x114e   :  { %3645 = vpow2.f32 %v1838_v60  ;;  %v1840_v1 = vmul.f32 1.442695, %v1827_v62  ;;  %v1828_v2 = vsub.f32 %v1792_v34, %v1818_v63  ;;  %3433 = vmatprep.subr.bf16.mxu0 %v3734_v0 }
0x114f   :  { %v1821_v5 = vpop.xlane.xlu1 %1820 }
0x1150   :  { %v3638_v6 = vpop.eup %3637  ;;  %3647 = vpow2.f32 %v1840_v1  ;;  %v1842_v7 = vmul.f32 1.442695, %v1828_v2  ;;  %v1829_v8 = vsub.f32 %v1795_v40, %v1821_v5 }
0x1151   :  { %v1846_v11 = vsel %vm379_vm2, %v3638_v6, 0.0  ;;  %3434 = vmatpush3.bf16.msra.mxu0 %v3546_v57 }
0x1152   :  { %v3640_v12 = vpop.eup %3639  ;;  %3649 = vpow2.f32 %v1842_v7  ;;  %v1844_v13 = vmul.f32 1.442695, %v1829_v8  ;;  %1847 = vadd.xlane.f32.xlu0 %v1846_v11  ;;  %3447 = vmatprep.subr.bf16.mxu0 %v3734_v0 }
0x1153   :  { %v1849_v14 = vsel %vm379_vm2, %v3640_v12, 0.0 }
0x1154   :  { %v3642_v15 = vpop.eup %3641  ;;  %3651 = vpow2.f32 %v1844_v13  ;;  %1850 = vadd.xlane.f32.xlu1 %v1849_v14 }
0x1155   :  { %v1852_v52 = vsel %vm379_vm2, %v3642_v15, 0.0 }
0x1156   :  { %v3644_v53 = vpop.eup %3643  ;;  %1853 = vadd.xlane.f32.xlu0 %v1852_v52 }
0x1157   :  { %v1855_v16 = vsel %vm379_vm2, %v3644_v53, 0.0 }
0x1158   :  { %v3646_v17 = vpop.eup %3645  ;;  %1856 = vadd.xlane.f32.xlu1 %v1855_v16 }
0x1159   :  { %v1858_v18 = vsel %vm379_vm2, %v3646_v17, 0.0 }
0x115a   :  { %v3648_v19 = vpop.eup %3647  ;;  %1859 = vadd.xlane.f32.xlu0 %v1858_v18 }
0x115b   :  { %v1861_v20 = vsel %vm379_vm2, %v3648_v19, 0.0 }
0x115c   :  { %v3650_v21 = vpop.eup %3649  ;;  %1862 = vadd.xlane.f32.xlu1 %v1861_v20 }
0x115d   :  { %v1864_v22 = vsel %vm379_vm2, %v3650_v21, 0.0 }
0x115e   :  { %v3652_v23 = vpop.eup %3651  ;;  %1865 = vadd.xlane.f32.xlu0 %v1864_v22 }
0x115f   :  { %v1867_v24 = vsel %vm379_vm2, %v3652_v23, 0.0 }
0x1160   :  { %1868 = vadd.xlane.f32.xlu1 %v1867_v24 }
0x11df   :  { %v1848_v25 = vpop.xlane.xlu0 %1847 }
0x11e0   :  { %3653 = vrcp.f32 %v1848_v25 }
0x11e1   :  { %v1851_v30 = vpop.xlane.xlu1 %1850 }
0x11e2   :  { %3655 = vrcp.f32 %v1851_v30 }
0x11e3   :  { %v1854_v31 = vpop.xlane.xlu0 %1853 }
0x11e4   :  { %3657 = vrcp.f32 %v1854_v31 }
0x11e5   :  { %v1857_v3 = vpop.xlane.xlu1 %1856 }
0x11e6   :  { %3659 = vrcp.f32 %v1857_v3 }
0x11e7   :  { %v1860_v4 = vpop.xlane.xlu0 %1859 }
0x11e8   :  { %3661 = vrcp.f32 %v1860_v4 }
0x11e9   :  { %v1863_v32 = vpop.xlane.xlu1 %1862 }
0x11ea   :  { %v3654_v33 = vpop.eup %3653  ;;  %3663 = vrcp.f32 %v1863_v32  ;;  %v3075_v32 = vld [vmem:[%s4544_s8 + $0x12] ss:$0 sm:$0xff] }
0x11eb   :  { %v1866_v34 = vpop.xlane.xlu0 %1865  ;;  %v1878_v38 = vmul.f32 %v3654_v33, %v3638_v6 }
0x11ec   :  { %v3656_v36 = vpop.eup %3655  ;;  %3665 = vrcp.f32 %v1866_v34 }
0x11ed   :  { %v1869_v37 = vpop.xlane.xlu1 %1868  ;;  %v1879_v39 = vmul.f32 %v3656_v36, %v3640_v12 }
0x11ee   :  { %v3658_v40 = vpop.eup %3657  ;;  %3667 = vrcp.f32 %v1869_v37 }
0x11ef   :  { %v1886_v42 = vpack.c.bf16 %v1879_v39, %v1878_v38  ;;  %v1880_v44 = vmul.f32 %v3658_v40, %v3642_v15 }
0x11f0   :  { %v3660_v43 = vpop.eup %3659 }
0x11f1   :  { %v1881_v10 = vmul.f32 %v3660_v43, %v3644_v53  ;;  %3423 = vmatprep.mubr.msk.bf16.mxu1 %vm379_vm2, %v1886_v42 }
0x11f2   :  { %v3662_v46 = vpop.eup %3661 }
0x11f3   :  { %v1887_v47 = vpack.c.bf16 %v1881_v10, %v1880_v44  ;;  %v1882_v49 = vmul.f32 %v3662_v46, %v3646_v17 }
0x11f4   :  { %v3664_v48 = vpop.eup %3663 }
0x11f5   :  { %3424 = vmatmul.mubr.msk.bf16.vlgmr.msra.gmra.mrb[44].mxu1 %vm379_vm2, %v1887_v47  ;;  %v1883_v50 = vmul.f32 %v3664_v48, %v3648_v19 }
0x11f6   :  { %v3666_v9 = vpop.eup %3665 }
0x11f7   :  { %v1888_v51 = vpack.c.bf16 %v1883_v50, %v1882_v49  ;;  %v1884_v27 = vmul.f32 %v3666_v9, %v3650_v21 }
0x11f8   :  { %v3668_v54 = vpop.eup %3667 }
0x11f9   :  { %3427 = vmatprep.mubr.msk.bf16.mxu1 %vm379_vm2, %v1888_v51  ;;  %v1885_v55 = vmul.f32 %v3668_v54, %v3652_v23 }
0x11fb   :  { %v1889_v56 = vpack.c.bf16 %v1885_v55, %v1884_v27  ;;  %v3549_v27 = vld [vmem:[%s4542_s5 + $0xd8] sm:$0xff]   ;;  %v3548_v55 = vld [vmem:[%s4542_s5 + $0xc0] sm:$0xff]  }
0x11fc   :  { %3440 = vmatpush3.bf16.msra.mxu1 %v3548_v55  ;;  %v3728_v55 = vld [vmem:[%s4548_s3 + $0x18] sm:$0xff] }
0x11fd   :  { %3428 = vmatmul.mubr.msk.bf16.gmra.mrb[48].mxu1 %vm379_vm2, %v1889_v56  ;;  %3441 = vmatprep.subr.bf16.mxu1 %v3734_v0  ;;  %v3550_v56 = vld [vmem:[%s4542_s5 + $0xc8] sm:$0xff]  }
0x11fe   :  { %3443 = vmatprep.mubr.msk.bf16.mxu1 %vm3735_vm0, %v3734_v0 }
0x1200   :  { %3442 = vmatpush3.bf16.msra.mxu1 %v3550_v56 }
0x1201   :  { %3455 = vmatprep.subr.bf16.mxu1 %v3734_v0 }
0x12c8   :  { %v3425_v58 = vpop.f32.mrb[44].mxu1 }
0x12c9   :  { %v1937_v60 = vpop.f32.mrb[45].mxu1  ;;  %v1970_v2 = vmul.f32 %v4236_v59, %v3425_v58 }
0x12ca   :  { %v1968_v62 = vmul.f32 %v4222_v41, %v1937_v60  ;;  %v3426_v63 = vpop.f32.mrb[46].mxu1 }
0x12cb   :  { %v1940_v1 = vpop.f32.mrb[47].mxu1  ;;  %v1971_v7 = vmul.f32 %v4242_v61, %v3426_v63  ;;  %v1979_v12 = vsel %vm85_vm1, %v1970_v2, 0.0  ;;  %v3081_v2 = vld [vmem:[%s4544_s8 + $0x18] ss:$0 sm:$0xff] }
0x12cc   :  { %v1969_v5 = vmul.f32 %v4108_v45, %v1940_v1  ;;  %v1976_v6 = vsel %vm85_vm1, %v1968_v62, 0.0 }
0x12cd   :  { %v1981_v52 = vsel %vm85_vm1, %v1971_v7, 0.0 }
0x12ce   :  { %v1977_v8 = vsel %vm85_vm1, %v1969_v5, 0.0 }
0x12cf   :  { %v1978_v11 = vadd.f32 %v1977_v8, %v1976_v6 }
0x12d0   :  { %v3429_v13 = vpop.f32.mrb[48].mxu1 }
0x12d1   :  { %v1980_v14 = vadd.f32 %v1979_v12, %v1978_v11  ;;  %v1953_v15 = vpop.f32.mrb[49].mxu1  ;;  %v1974_v19 = vmul.f32 %v4236_v59, %v3429_v13  ;;  %v3082_v11 = vld [vmem:[%s4544_s8 + $0x19] ss:$0 sm:$0xff] }
0x12d2   :  { %v1972_v53 = vmul.f32 %v4222_v41, %v1953_v15  ;;  %v3430_v16 = vpop.f32.mrb[50].mxu1 }
0x12d3   :  { %v1982_v17 = vadd.f32 %v1981_v52, %v1980_v14  ;;  %v1956_v18 = vpop.f32.mrb[51].mxu1  ;;  %v1975_v22 = vmul.f32 %v4242_v61, %v3430_v16  ;;  %v1986_v25 = vsel %vm85_vm1, %v1974_v19, 0.0  ;;  %v3097_v52 = vld [vmem:[%s4544_s8 + $0x14] ss:$0 sm:$0xff] }
0x12d4   :  { %v1973_v20 = vmul.f32 %v4108_v45, %v1956_v18  ;;  %v1983_v21 = vsel %vm85_vm1, %v1972_v53, 0.0 }
0x12d5   :  { %v1988_v31 = vsel %vm85_vm1, %v1975_v22, 0.0 }
0x12d6   :  { %v1984_v23 = vsel %vm85_vm1, %v1973_v20, 0.0 }
0x12d7   :  { %v1985_v24 = vadd.f32 %v1984_v23, %v1983_v21  ;;  %v3088_v23 = vld [vmem:[%s4544_s8 + $0x13] ss:$0 sm:$0xff] }
0x12d9   :  { %v1987_v30 = vadd.f32 %v1986_v25, %v1985_v24 }
0x12db   :  { %v1989_v3 = vadd.f32 %v1988_v31, %v1987_v30 }
0x12dd   :  { %v1990_v4 = vpack.c.bf16 %v1989_v3, %v1982_v17 }
0x12df   :  { %3436 = vmatmul.mubr.msk.bf16.vlgmr.msra.gmra.mrb[48].mxu0 %vm85_vm1, %v1990_v4 }
0x12e0   :  { %3451 = vmatprep.mubr.msk.bf16.mxu0 %vm3735_vm0, %v3734_v0 }
0x13b2   :  { %v2053_v33 = vpop.f32.mrb[48].mxu0 }
0x13b3   :  { %v2054_v34 = vadd.f32 %v3075_v32, %v2053_v33  ;;  %v3437_v36 = vpop.f32.mrb[49].mxu0 }
0x13b4   :  { %v2056_v37 = vpop.f32.mrb[50].mxu0 }
0x13b5   :  { %v2057_v38 = vadd.f32 %v3075_v32, %v2056_v37  ;;  %v3438_v39 = vpop.f32.mrb[51].mxu0  ;;  %v2060_v40 = vadd.f32 %v2054_v34, %v4195_v26 }
0x13b7   :  { %v2066_v42 = vsel %vm85_vm1, %v2060_v40, 0.0  ;;  %v2061_v43 = vadd.f32 %v2057_v38, %v4197_v29  ;;  %v3547_v29 = vld [vmem:[%s4542_s5 + $0xd0] sm:$0xff]  }
0x13b8   :  { %2067 = vadd.xlane.f32.xlu0 %v2066_v42  ;;  %3448 = vmatpush3.bf16.msra.mxu0 %v3547_v29  ;;  %v3727_v29 = vld [vmem:[%s4548_s3 + $0x8] sm:$0xff] }
0x13b9   :  { %v2069_v44 = vsel %vm85_vm1, %v2061_v43, 0.0  ;;  %3449 = vmatprep.subr.bf16.mxu0 %v3734_v0 }
0x13ba   :  { %2070 = vadd.xlane.f32.xlu1 %v2069_v44 }
0x13bc   :  { %3450 = vmatpush3.bf16.msra.mxu0 %v3549_v27 }
0x13bf   :  { %3452 = vmatmul.mubr.msk.bf16.vlgmr.msra.gmra.mrb[52].mxu0 %vm85_vm1, %v3978_v35 }
0x1445   :  { %v2068_v10 = vpop.xlane.xlu0 %2067 }
0x1446   :  { %v2072_v46 = vmul.f32 0.03125, %v2068_v10 }
0x1447   :  { %v2071_v47 = vpop.xlane.xlu1 %2070 }
0x1448   :  { %v2074_v48 = vsub.f32 %v2060_v40, %v2072_v46  ;;  %v2073_v49 = vmul.f32 0.03125, %v2071_v47  ;;  %v3552_v46 = vld [vmem:[%s4542_s5 + $0xe8] sm:$0xff]  }
0x144a   :  { %v2075_v50 = vsub.f32 %v2061_v43, %v2073_v49  ;;  %v2076_v9 = vmul.f32 %v2074_v48, %v2074_v48  ;;  %v3725_v49 = vld [vmem:[%s4548_s3] sm:$0xff] }
0x144c   :  { %v2078_v51 = vsel %vm85_vm1, %v2076_v9, 0.0  ;;  %v2077_v54 = vmul.f32 %v2075_v50, %v2075_v50 }
0x144d   :  { %2079 = vadd.xlane.f32.xlu0 %v2078_v51 }
0x144e   :  { %v2081_v26 = vsel %vm85_vm1, %v2077_v54, 0.0  ;;  %v3726_v54 = vld [vmem:[%s4548_s3 + $0x10] sm:$0xff] }
0x144f   :  { %2082 = vadd.xlane.f32.xlu1 %v2081_v26 }
0x1492   :  { %v2237_v53 = vpop.f32.mrb[52].mxu0 }
0x1493   :  { %v2238_v16 = vadd.f32 %v3097_v52, %v2237_v53  ;;  %v3453_v17 = vpop.f32.mrb[53].mxu0 }
0x1494   :  { %v2240_v18 = vpop.f32.mrb[54].mxu0 }
0x1495   :  { %v2241_v19 = vadd.f32 %v3097_v52, %v2240_v18  ;;  %v3454_v20 = vpop.f32.mrb[55].mxu0 }
0x1497   :  { %v2322_v21 = vpack.c.bf16 %v2241_v19, %v2238_v16 }
0x1499   :  { %3514 = vmatprep.subr.msk.bf16.mxu0 %vm85_vm1, %v2322_v21  ;;  %v2336_v22 = vsel %vm85_vm1, %v2322_v21, 0 }
0x149a   :  { %3464 = vmatpush3.bf16.xpose.msra.mxu0 %v2336_v22 }
0x149b   :  { %3483 = vmatprep.subr.bf16.mxu0 %v3734_v0 }
0x14da   :  { %v2080_v28 = vpop.xlane.xlu0 %2079 }
0x14db   :  { %v2084_v57 = vmul.f32 0.03125, %v2080_v28 }
0x14dc   :  { %v2083_v58 = vpop.xlane.xlu1 %2082 }
0x14dd   :  { %v2086_v60 = vadd.f32 1e-05, %v2084_v57  ;;  %v2085_v62 = vmul.f32 0.03125, %v2083_v58 }
0x14df   :  { %3669 = vrsqrt.f32 %v2086_v60  ;;  %v2087_v63 = vadd.f32 1e-05, %v2085_v62  ;;  %v3729_v62 = vld [vmem:[%s4548_s3 + $0x20] sm:$0xff] }
0x14e1   :  { %3671 = vrsqrt.f32 %v2087_v63 }
0x14e9   :  { %v3670_v1 = vpop.eup %3669 }
0x14ea   :  { %v2090_v5 = vmul.f32 %v3670_v1, %v2074_v48 }
0x14eb   :  { %v3672_v6 = vpop.eup %3671 }
0x14ec   :  { %v2098_v7 = vmul.f32 %v3081_v2, %v2090_v5  ;;  %v2091_v8 = vmul.f32 %v3672_v6, %v2075_v50  ;;  %v3730_v6 = vld [vmem:[%s4548_s3 + $0x30] sm:$0xff] }
0x14ee   :  { %v2099_v12 = vmul.f32 %v3081_v2, %v2091_v8  ;;  %v4360_v13 = vadd.f32 %v3082_v11, %v2098_v7  ;;  %v3731_v8 = vld [vmem:[%s4548_s3 + $0x28] sm:$0xff] }
0x14f0   :  { %v4362_v14 = vadd.f32 %v3082_v11, %v2099_v12 }
0x14f2   :  { %v2108_v15 = vpack.c.bf16 %v4362_v14, %v4360_v13 }
0x14f4   :  { %3444 = vmatmul.mubr.msk.bf16.vlgmr.msra.gmra.mrb[52].mxu1 %vm85_vm1, %v2108_v15  ;;  %v3732_v15 = vld [vmem:[%s4548_s3 + $0x38] sm:$0xff] }
0x14f5   :  { %3459 = vmatprep.mubr.msk.bf16.mxu1 %vm3735_vm0, %v3734_v0 }
0x15c7   :  { %v2171_v24 = vpop.f32.mrb[52].mxu1 }
0x15c8   :  { %v2172_v25 = vadd.f32 %v3088_v23, %v2171_v24  ;;  %v3445_v30 = vpop.f32.mrb[53].mxu1 }
0x15c9   :  { %v2174_v31 = vpop.f32.mrb[54].mxu1 }
0x15ca   :  { %v2310_v3 = vmul.f32 %v4222_v41, %v2172_v25  ;;  %v2311_v4 = vmul.f32 %v4108_v45, %v2172_v25  ;;  %v2312_v32 = vmul.f32 %v4236_v59, %v2172_v25  ;;  %v2313_v33 = vmul.f32 %v4242_v61, %v2172_v25  ;;  %v3446_v34 = vpop.f32.mrb[55].mxu1 }
0x15cb   :  { %v2175_v36 = vadd.f32 %v3088_v23, %v2174_v31 }
0x15cc   :  { %v2319_v37 = vpack.c.bf16 %v2313_v33, %v2312_v32  ;;  %v2318_v38 = vpack.c.bf16 %v2311_v4, %v2310_v3 }
0x15cd   :  { %v2314_v39 = vmul.f32 %v4222_v41, %v2175_v36  ;;  %v2315_v40 = vmul.f32 %v4108_v45, %v2175_v36  ;;  %v2316_v43 = vmul.f32 %v4236_v59, %v2175_v36  ;;  %v2317_v44 = vmul.f32 %v4242_v61, %v2175_v36  ;;  %v3551_v45 = vld [vmem:[%s4542_s5 + $0xe0] sm:$0xff]  }
0x15ce   :  { %3465 = vmatprep.mubr.msk.bf16.mxu0 %vm85_vm1, %v2318_v38  ;;  %3456 = vmatpush3.bf16.msra.mxu1 %v3551_v45 }
0x15cf   :  { %3466 = vmatmul.mubr.msk.bf16.vlgmr.msra.gmra.mrb[56].mxu0 %vm85_vm1, %v2319_v37  ;;  %v2320_v42 = vpack.c.bf16 %v2315_v40, %v2314_v39  ;;  %v2321_v10 = vpack.c.bf16 %v2317_v44, %v2316_v43  ;;  %3457 = vmatprep.subr.bf16.mxu1 %v3734_v0 }
0x15d1   :  { %3469 = vmatprep.mubr.msk.bf16.mxu0 %vm85_vm1, %v2320_v42 }
0x15d2   :  { %3458 = vmatpush3.bf16.msra.mxu1 %v3552_v46 }
0x15d5   :  { %3460 = vmatmul.mubr.msk.bf16.vlgmr.msra.gmra.mrb[56].mxu1 %vm85_vm1, %v3978_v35 }
0x15d7   :  { %3470 = vmatmul.mubr.msk.bf16.gmra.mrb[60].mxu0 %vm85_vm1, %v2321_v10 }
0x15d8   :  { %3487 = vmatprep.mubr.msk.bf16.mxu0 %vm3735_vm0, %v3734_v0 }
0x16a2   :  { %v3467_v47 = vpop.f32.mrb[56].mxu0 }
0x16a3   :  { %v2372_v48 = vpop.f32.mrb[57].mxu0  ;;  %v2381_v26 = vadd.f32 %v3726_v54, %v3467_v47 }
0x16a4   :  { %v2373_v50 = vadd.f32 %v3725_v49, %v2372_v48  ;;  %v3468_v9 = vpop.f32.mrb[58].mxu0 }
0x16a5   :  { %v2375_v51 = vpop.f32.mrb[59].mxu0  ;;  %v2384_v56 = vadd.f32 %v3728_v55, %v3468_v9  ;;  %v2409_v58 = vsel %vm379_vm2, %v2381_v26, -inf }
0x16a6   :  { %v2376_v27 = vadd.f32 %v3727_v29, %v2375_v51  ;;  %v2403_v35 = vsel %vm379_vm2, %v2373_v50, -inf }
0x16a7   :  { %2404 = vmax.xlane.f32.xlu0 %v2403_v35  ;;  %v2412_v2 = vsel %vm379_vm2, %v2384_v56, -inf }
0x16a8   :  { %v2406_v28 = vsel %vm379_vm2, %v2376_v27, -inf }
0x16a9   :  { %2407 = vmax.xlane.f32.xlu1 %v2406_v28 }
0x16aa   :  { %v3471_v57 = vpop.f32.mrb[60].mxu0 }
0x16ab   :  { %v2388_v60 = vpop.f32.mrb[61].mxu0  ;;  %2410 = vmax.xlane.f32.xlu0 %v2409_v58  ;;  %v2397_v7 = vadd.f32 %v3730_v6, %v3471_v57  ;;  %v2303_v57 = vpop.f32.mrb[56].mxu1 }
0x16ac   :  { %v2389_v63 = vadd.f32 %v3729_v62, %v2388_v60  ;;  %v3472_v1 = vpop.f32.mrb[62].mxu0  ;;  %v3461_v58 = vpop.f32.mrb[57].mxu1  ;;  %v3106_v60 = vld [vmem:[%s4544_s8 + $0x15] ss:$0 sm:$0xff] }
0x16ad   :  { %v2391_v5 = vpop.f32.mrb[63].mxu0  ;;  %2413 = vmax.xlane.f32.xlu1 %v2412_v2  ;;  %v2400_v52 = vadd.f32 %v3732_v15, %v3472_v1  ;;  %v2421_v16 = vsel %vm379_vm2, %v2397_v7, -inf  ;;  %v2304_v62 = vadd.f32 %v3106_v60, %v2303_v57 }
0x16ae   :  { %v2392_v11 = vadd.f32 %v3731_v8, %v2391_v5  ;;  %v2415_v12 = vsel %vm379_vm2, %v2389_v63, -inf }
0x16af   :  { %2416 = vmax.xlane.f32.xlu0 %v2415_v12  ;;  %v2424_v17 = vsel %vm379_vm2, %v2400_v52, -inf }
0x16b0   :  { %v2418_v53 = vsel %vm379_vm2, %v2392_v11, -inf }
0x16b1   :  { %2419 = vmax.xlane.f32.xlu1 %v2418_v53 }
0x16b3   :  { %2422 = vmax.xlane.f32.xlu0 %v2421_v16 }
0x16b5   :  { %2425 = vmax.xlane.f32.xlu1 %v2424_v17 }
0x1734   :  { %v2405_v18 = vpop.xlane.xlu0 %2404 }
0x1735   :  { %v2427_v19 = vsub.f32 %v2373_v50, %v2405_v18 }
0x1736   :  { %v2408_v20 = vpop.xlane.xlu1 %2407 }
0x1737   :  { %v2435_v21 = vmul.f32 1.442695, %v2427_v19  ;;  %v2428_v22 = vsub.f32 %v2376_v27, %v2408_v20 }
0x1738   :  { %v2411_v23 = vpop.xlane.xlu0 %2410 }
0x1739   :  { %3673 = vpow2.f32 %v2435_v21  ;;  %v2437_v24 = vmul.f32 1.442695, %v2428_v22  ;;  %v2429_v25 = vsub.f32 %v2381_v26, %v2411_v23 }
0x173a   :  { %v2414_v30 = vpop.xlane.xlu1 %2413 }
0x173b   :  { %3675 = vpow2.f32 %v2437_v24  ;;  %v2439_v31 = vmul.f32 1.442695, %v2429_v25  ;;  %v2430_v3 = vsub.f32 %v2384_v56, %v2414_v30 }
0x173c   :  { %v2417_v4 = vpop.xlane.xlu0 %2416 }
0x173d   :  { %3677 = vpow2.f32 %v2439_v31  ;;  %v2441_v32 = vmul.f32 1.442695, %v2430_v3  ;;  %v2431_v33 = vsub.f32 %v2389_v63, %v2417_v4  ;;  %v2306_v63 = vpop.f32.mrb[58].mxu1 }
0x173e   :  { %v2420_v34 = vpop.xlane.xlu1 %2419  ;;  %v2307_v1 = vadd.f32 %v3106_v60, %v2306_v63  ;;  %v3462_v2 = vpop.f32.mrb[59].mxu1 }
0x173f   :  { %3679 = vpow2.f32 %v2441_v32  ;;  %v2443_v36 = vmul.f32 1.442695, %v2431_v33  ;;  %v2432_v37 = vsub.f32 %v2392_v11, %v2420_v34 }
0x1740   :  { %v2423_v38 = vpop.xlane.xlu0 %2422  ;;  %v2495_v5 = vpack.c.bf16 %v2307_v1, %v2304_v62 }
0x1741   :  { %3681 = vpow2.f32 %v2443_v36  ;;  %v2445_v39 = vmul.f32 1.442695, %v2432_v37  ;;  %v2433_v40 = vsub.f32 %v2397_v7, %v2423_v38 }
0x1742   :  { %v2426_v42 = vpop.xlane.xlu1 %2425  ;;  %3473 = vmatprep.subr.bf16.mxu1 %v2495_v5 }
0x1743   :  { %v3674_v43 = vpop.eup %3673  ;;  %3683 = vpow2.f32 %v2445_v39  ;;  %v2447_v44 = vmul.f32 1.442695, %v2433_v40  ;;  %v2434_v10 = vsub.f32 %v2400_v52, %v2426_v42  ;;  %3474 = vmatpush3.bf16.msra.mxu1 %v2495_v5  ;;  %v3553_v39 = vld [vmem:[%s4542_s5 + $0xf0] sm:$0xff]   ;;  %v3554_v40 = vld [vmem:[%s4542_s5 + $0xf8] sm:$0xff]  }
0x1744   :  { %v2451_v45 = vsel %vm379_vm2, %v3674_v43, 0.0  ;;  %3491 = vmatprep.subr.bf16.mxu1 %v3734_v0  ;;  %3484 = vmatpush3.bf16.msra.mxu0 %v3553_v39 }
0x1745   :  { %v3676_v46 = vpop.eup %3675  ;;  %3685 = vpow2.f32 %v2447_v44  ;;  %v2449_v47 = vmul.f32 1.442695, %v2434_v10  ;;  %2452 = vadd.xlane.f32.xlu0 %v2451_v45  ;;  %3485 = vmatprep.subr.bf16.mxu0 %v3734_v0 }
0x1746   :  { %v2454_v48 = vsel %vm379_vm2, %v3676_v46, 0.0 }
0x1747   :  { %v3678_v49 = vpop.eup %3677  ;;  %3687 = vpow2.f32 %v2449_v47  ;;  %2455 = vadd.xlane.f32.xlu1 %v2454_v48  ;;  %v3733_v47 = vld [vmem:[%s4545_s4 + $0x1] ss:$0 sm:$0xff] }
0x1748   :  { %v2457_v50 = vsel %vm379_vm2, %v3678_v49, 0.0  ;;  %3486 = vmatpush3.bf16.msra.mxu0 %v3554_v40 }
0x1749   :  { %v3680_v9 = vpop.eup %3679  ;;  %2458 = vadd.xlane.f32.xlu0 %v2457_v50  ;;  %3499 = vmatprep.subr.bf16.mxu0 %v3734_v0 }
0x174a   :  { %v2460_v51 = vsel %vm379_vm2, %v3680_v9, 0.0 }
0x174b   :  { %v3682_v54 = vpop.eup %3681  ;;  %2461 = vadd.xlane.f32.xlu1 %v2460_v51 }
0x174c   :  { %v2463_v26 = vsel %vm379_vm2, %v3682_v54, 0.0 }
0x174d   :  { %v3684_v29 = vpop.eup %3683  ;;  %2464 = vadd.xlane.f32.xlu0 %v2463_v26 }
0x174e   :  { %v2466_v27 = vsel %vm379_vm2, %v3684_v29, 0.0 }
0x174f   :  { %v3686_v35 = vpop.eup %3685  ;;  %2467 = vadd.xlane.f32.xlu1 %v2466_v27 }
0x1750   :  { %v2469_v55 = vsel %vm379_vm2, %v3686_v35, 0.0 }
0x1751   :  { %v3688_v56 = vpop.eup %3687  ;;  %2470 = vadd.xlane.f32.xlu0 %v2469_v55 }
0x1752   :  { %v2472_v28 = vsel %vm379_vm2, %v3688_v56, 0.0 }
0x1753   :  { %2473 = vadd.xlane.f32.xlu1 %v2472_v28 }
0x17d2   :  { %v2453_v6 = vpop.xlane.xlu0 %2452 }
0x17d3   :  { %3689 = vrcp.f32 %v2453_v6 }
0x17d4   :  { %v2456_v7 = vpop.xlane.xlu1 %2455 }
0x17d5   :  { %3691 = vrcp.f32 %v2456_v7 }
0x17d6   :  { %v2459_v8 = vpop.xlane.xlu0 %2458 }
0x17d7   :  { %3693 = vrcp.f32 %v2459_v8 }
0x17d8   :  { %v2462_v11 = vpop.xlane.xlu1 %2461 }
0x17d9   :  { %3695 = vrcp.f32 %v2462_v11 }
0x17da   :  { %v2465_v12 = vpop.xlane.xlu0 %2464 }
0x17db   :  { %3697 = vrcp.f32 %v2465_v12 }
0x17dc   :  { %v2468_v15 = vpop.xlane.xlu1 %2467 }
0x17dd   :  { %v3690_v52 = vpop.eup %3689  ;;  %3699 = vrcp.f32 %v2468_v15 }
0x17de   :  { %v2471_v53 = vpop.xlane.xlu0 %2470  ;;  %v2483_v18 = vmul.f32 %v3690_v52, %v3674_v43 }
0x17df   :  { %v3692_v16 = vpop.eup %3691  ;;  %3701 = vrcp.f32 %v2471_v53 }
0x17e0   :  { %v2474_v17 = vpop.xlane.xlu1 %2473  ;;  %v2484_v19 = vmul.f32 %v3692_v16, %v3676_v46 }
0x17e1   :  { %v3694_v20 = vpop.eup %3693  ;;  %3703 = vrcp.f32 %v2474_v17 }
0x17e2   :  { %v2491_v21 = vpack.c.bf16 %v2484_v19, %v2483_v18  ;;  %v2485_v23 = vmul.f32 %v3694_v20, %v3678_v49 }
0x17e3   :  { %v3696_v22 = vpop.eup %3695 }
0x17e4   :  { %v2486_v24 = vmul.f32 %v3696_v22, %v3680_v9  ;;  %3475 = vmatprep.mubr.msk.bf16.mxu1 %vm379_vm2, %v2491_v21 }
0x17e5   :  { %v3698_v25 = vpop.eup %3697 }
0x17e6   :  { %v2492_v30 = vpack.c.bf16 %v2486_v24, %v2485_v23  ;;  %v2487_v3 = vmul.f32 %v3698_v25, %v3682_v54 }
0x17e7   :  { %v3700_v31 = vpop.eup %3699 }
0x17e8   :  { %3476 = vmatmul.mubr.msk.bf16.vlgmr.msra.gmra.mrb[60].mxu1 %vm379_vm2, %v2492_v30  ;;  %v2488_v4 = vmul.f32 %v3700_v31, %v3684_v29 }
0x17e9   :  { %v3702_v32 = vpop.eup %3701 }
0x17ea   :  { %v2493_v33 = vpack.c.bf16 %v2488_v4, %v2487_v3  ;;  %v2489_v36 = vmul.f32 %v3702_v32, %v3686_v35  ;;  %v3556_v4 = vld [vmem:[%s4549_s6 + $0x18] sm:$0xff]   ;;  %v3557_v32 = vld [vmem:[%s4550_s7 + $0x20] sm:$0xff]  }
0x17eb   :  { %v3704_v34 = vpop.eup %3703 }
0x17ec   :  { %3479 = vmatprep.mubr.msk.bf16.mxu1 %vm379_vm2, %v2493_v33  ;;  %v2490_v37 = vmul.f32 %v3704_v34, %v3688_v56  ;;  %v3558_v33 = vld [vmem:[%s4550_s7 + $0x28] sm:$0xff]  }
0x17ee   :  { %v2494_v38 = vpack.c.bf16 %v2490_v37, %v2489_v36 }
0x17f0   :  { %3480 = vmatmul.mubr.msk.bf16.gmra.mrb[64].mxu1 %vm379_vm2, %v2494_v38 }
0x17f1   :  { %3495 = vmatprep.mubr.msk.bf16.mxu1 %vm3735_vm0, %v3734_v0 }
0x18bb   :  { %v3477_v42 = vpop.f32.mrb[60].mxu1 }
0x18bc   :  { %v2542_v43 = vpop.f32.mrb[61].mxu1  ;;  %v2575_v46 = vmul.f32 %v4236_v59, %v3477_v42 }
0x18bd   :  { %v2573_v44 = vmul.f32 %v4222_v41, %v2542_v43  ;;  %v3478_v10 = vpop.f32.mrb[62].mxu1  ;;  %v3129_v43 = vld [vmem:[%s4544_s8 + $0x1a] ss:$0 sm:$0xff] }
0x18be   :  { %v2545_v45 = vpop.f32.mrb[63].mxu1  ;;  %v2576_v50 = vmul.f32 %v4242_v61, %v3478_v10  ;;  %v2584_v54 = vsel %vm85_vm1, %v2575_v46, 0.0 }
0x18bf   :  { %v2574_v48 = vmul.f32 %v3733_v47, %v2545_v45  ;;  %v2581_v49 = vsel %vm85_vm1, %v2573_v44, 0.0 }
0x18c0   :  { %v2586_v35 = vsel %vm85_vm1, %v2576_v50, 0.0 }
0x18c1   :  { %v2582_v9 = vsel %vm85_vm1, %v2574_v48, 0.0 }
0x18c2   :  { %v2583_v51 = vadd.f32 %v2582_v9, %v2581_v49 }
0x18c3   :  { %v3481_v26 = vpop.f32.mrb[64].mxu1 }
0x18c4   :  { %v2585_v29 = vadd.f32 %v2584_v54, %v2583_v51  ;;  %v2558_v27 = vpop.f32.mrb[65].mxu1  ;;  %v2579_v58 = vmul.f32 %v4236_v59, %v3481_v26  ;;  %v3123_v59 = vld [vmem:[%s4544_s8 + $0x16] ss:$0 sm:$0xff]  ;;  %v3560_v54 = vld [vmem:[%s4550_s7 + $0x38] sm:$0xff]   ;;  %v3136_v26 = vld [vmem:[%s4551_s9 + $0x1] ss:$0 sm:$0xff] }
0x18c5   :  { %v2577_v55 = vmul.f32 %v4222_v41, %v2558_v27  ;;  %v3482_v56 = vpop.f32.mrb[66].mxu1  ;;  %v3559_v51 = vld [vmem:[%s4550_s7 + $0x30] sm:$0xff]  }
0x18c6   :  { %v2587_v28 = vadd.f32 %v2586_v35, %v2585_v29  ;;  %v2561_v57 = vpop.f32.mrb[67].mxu1  ;;  %v2580_v63 = vmul.f32 %v4242_v61, %v3482_v56  ;;  %v2591_v5 = vsel %vm85_vm1, %v2579_v58, 0.0 }
0x18c7   :  { %v2578_v60 = vmul.f32 %v3733_v47, %v2561_v57  ;;  %v2588_v62 = vsel %vm85_vm1, %v2577_v55, 0.0  ;;  %v3130_v47 = vld [vmem:[%s4544_s8 + $0x1b] ss:$0 sm:$0xff] }
0x18c8   :  { %v2593_v7 = vsel %vm85_vm1, %v2580_v63, 0.0 }
0x18c9   :  { %v2589_v1 = vsel %vm85_vm1, %v2578_v60, 0.0 }
0x18ca   :  { %v2590_v2 = vadd.f32 %v2589_v1, %v2588_v62 }
0x18cc   :  { %v2592_v6 = vadd.f32 %v2591_v5, %v2590_v2 }
0x18ce   :  { %v2594_v8 = vadd.f32 %v2593_v7, %v2592_v6 }
0x18d0   :  { %v2595_v41 = vpack.c.bf16 %v2594_v8, %v2587_v28 }
0x18d2   :  { %3488 = vmatmul.mubr.msk.bf16.vlgmr.msra.gmra.mrb[64].mxu0 %vm85_vm1, %v2595_v41 }
0x18d3   :  { %3507 = vmatprep.mubr.msk.bf16.mxu0 %vm3735_vm0, %v3734_v0  ;;  %3500 = vmatpush3.bf16.msra.mxu0 %v3557_v32 }
0x18d4   :  { %3501 = vmatprep.subr.bf16.mxu0 %v3734_v0 }
0x18d7   :  { %3502 = vmatpush3.bf16.msra.mxu0 %v3558_v33 }
0x18d8   :  { %3503 = vmatprep.subr.bf16.mxu0 %v3734_v0 }
0x18db   :  { %3504 = vmatpush3.bf16.msra.mxu0 %v3559_v51 }
0x18dc   :  { %3505 = vmatprep.subr.bf16.mxu0 %v3734_v0 }
0x18df   :  { %3506 = vmatpush3.bf16.msra.mxu0 %v3560_v54 }
0x19a5   :  { %v2658_v61 = vpop.f32.mrb[64].mxu0 }
0x19a6   :  { %v2659_v11 = vadd.f32 %v3123_v59, %v2658_v61  ;;  %v3489_v12 = vpop.f32.mrb[65].mxu0 }
0x19a7   :  { %v2661_v15 = vpop.f32.mrb[66].mxu0 }
0x19a8   :  { %v2662_v52 = vadd.f32 %v3123_v59, %v2661_v15  ;;  %v3490_v53 = vpop.f32.mrb[67].mxu0  ;;  %v2665_v16 = vadd.f32 %v2659_v11, %v4360_v13 }
0x19aa   :  { %v2671_v17 = vsel %vm85_vm1, %v2665_v16, 0.0  ;;  %v2666_v18 = vadd.f32 %v2662_v52, %v4362_v14  ;;  %v3555_v14 = vld [vmem:[%s4549_s6 + $0x10] sm:$0xff]  }
0x19ab   :  { %2672 = vadd.xlane.f32.xlu0 %v2671_v17  ;;  %3492 = vmatpush3.bf16.msra.mxu1 %v3555_v14  ;;  %v3158_v14 = vld [vmem:[%s4544_s8 + $0x1d] ss:$0 sm:$0xff] }
0x19ac   :  { %v2674_v19 = vsel %vm85_vm1, %v2666_v18, 0.0  ;;  %3493 = vmatprep.subr.bf16.mxu1 %v3734_v0  ;;  %v3149_v0 = vld [vmem:[%s4544_s8 + $0x17] ss:$0 sm:$0xff] }
0x19ad   :  { %2675 = vadd.xlane.f32.xlu1 %v2674_v19 }
0x19af   :  { %3494 = vmatpush3.bf16.msra.mxu1 %v3556_v4 }
0x1a38   :  { %v2673_v20 = vpop.xlane.xlu0 %2672 }
0x1a39   :  { %v2677_v21 = vmul.f32 0.03125, %v2673_v20 }
0x1a3a   :  { %v2676_v22 = vpop.xlane.xlu1 %2675 }
0x1a3b   :  { %v2679_v23 = vsub.f32 %v2665_v16, %v2677_v21  ;;  %v2678_v24 = vmul.f32 0.03125, %v2676_v22 }
0x1a3d   :  { %v2680_v25 = vsub.f32 %v2666_v18, %v2678_v24  ;;  %v2681_v30 = vmul.f32 %v2679_v23, %v2679_v23 }
0x1a3f   :  { %v2683_v31 = vsel %vm85_vm1, %v2681_v30, 0.0  ;;  %v2682_v3 = vmul.f32 %v2680_v25, %v2680_v25 }
0x1a40   :  { %2684 = vadd.xlane.f32.xlu0 %v2683_v31  ;;  %v3157_v31 = vld [vmem:[%s4544_s8 + $0x1c] ss:$0 sm:$0xff] }
0x1a41   :  { %v2686_v13 = vsel %vm85_vm1, %v2682_v3, 0.0 }
0x1a42   :  { %2687 = vadd.xlane.f32.xlu1 %v2686_v13 }
0x1acd   :  { %v2685_v34 = vpop.xlane.xlu0 %2684 }
0x1ace   :  { %v2689_v36 = vmul.f32 0.03125, %v2685_v34 }
0x1acf   :  { %v2688_v37 = vpop.xlane.xlu1 %2687 }
0x1ad0   :  { %v2691_v38 = vadd.f32 1e-05, %v2689_v36  ;;  %v2690_v39 = vmul.f32 0.03125, %v2688_v37 }
0x1ad2   :  { %3705 = vrsqrt.f32 %v2691_v38  ;;  %v2692_v40 = vadd.f32 1e-05, %v2690_v39 }
0x1ad4   :  { %3707 = vrsqrt.f32 %v2692_v40 }
0x1adc   :  { %v3706_v42 = vpop.eup %3705 }
0x1add   :  { %v2695_v44 = vmul.f32 %v3706_v42, %v2679_v23 }
0x1ade   :  { %v3708_v10 = vpop.eup %3707 }
0x1adf   :  { %v2703_v45 = vmul.f32 %v3129_v43, %v2695_v44  ;;  %v2696_v46 = vmul.f32 %v3708_v10, %v2680_v25 }
0x1ae1   :  { %v2704_v48 = vmul.f32 %v3129_v43, %v2696_v46  ;;  %v2711_v49 = vadd.f32 %v3130_v47, %v2703_v45 }
0x1ae3   :  { %v2712_v50 = vadd.f32 %v3130_v47, %v2704_v48 }
0x1ae5   :  { %v2713_v9 = vpack.c.bf16 %v2712_v50, %v2711_v49 }
0x1ae7   :  { %3496 = vmatmul.mubr.msk.bf16.vlgmr.msra.gmra.mrb[68].mxu1 %vm85_vm1, %v2713_v9 }
0x1bba   :  { %v2776_v29 = vpop.f32.mrb[68].mxu1 }
0x1bbb   :  { %v2777_v27 = vadd.f32 %v3136_v26, %v2776_v29  ;;  %v3497_v35 = vpop.f32.mrb[69].mxu1 }
0x1bbc   :  { %v2779_v55 = vpop.f32.mrb[70].mxu1 }
0x1bbd   :  { %v2780_v56 = vadd.f32 %v3136_v26, %v2779_v55  ;;  %v3498_v28 = vpop.f32.mrb[71].mxu1  ;;  %v2783_v57 = vmax.f32 %v2777_v27, 0.0 }
0x1bbf   :  { %v2784_v58 = vmax.f32 %v2780_v56, 0.0 }
0x1bc1   :  { %v2785_v60 = vpack.c.bf16 %v2784_v58, %v2783_v57 }
0x1bc3   :  { %3508 = vmatmul.mubr.msk.bf16.vlgmr.msra.gmra.mrb[68].mxu0 %vm1410_vm3, %v2785_v60 }
0x1c96   :  { %v2864_v62 = vpop.f32.mrb[68].mxu0 }
0x1c97   :  { %v2865_v63 = vadd.f32 %v3149_v0, %v2864_v62  ;;  %v3509_v1 = vpop.f32.mrb[69].mxu0 }
0x1c98   :  { %v2867_v2 = vpop.f32.mrb[70].mxu0 }
0x1c99   :  { %v2868_v5 = vadd.f32 %v3149_v0, %v2867_v2  ;;  %v3510_v6 = vpop.f32.mrb[71].mxu0  ;;  %v2871_v7 = vadd.f32 %v2865_v63, %v2711_v49 }
0x1c9b   :  { %v2877_v8 = vsel %vm85_vm1, %v2871_v7, 0.0  ;;  %v2872_v41 = vadd.f32 %v2868_v5, %v2712_v50 }
0x1c9c   :  { %2878 = vadd.xlane.f32.xlu0 %v2877_v8 }
0x1c9d   :  { %v2880_v59 = vsel %vm85_vm1, %v2872_v41, 0.0 }
0x1c9e   :  { %2881 = vadd.xlane.f32.xlu1 %v2880_v59 }
0x1d29   :  { %v2879_v61 = vpop.xlane.xlu0 %2878 }
0x1d2a   :  { %v2883_v11 = vmul.f32 0.03125, %v2879_v61 }
0x1d2b   :  { %v2882_v12 = vpop.xlane.xlu1 %2881 }
0x1d2c   :  { %v2885_v15 = vsub.f32 %v2871_v7, %v2883_v11  ;;  %v2884_v52 = vmul.f32 0.03125, %v2882_v12 }
0x1d2e   :  { %v2886_v53 = vsub.f32 %v2872_v41, %v2884_v52  ;;  %v2887_v16 = vmul.f32 %v2885_v15, %v2885_v15 }
0x1d30   :  { %v2889_v17 = vsel %vm85_vm1, %v2887_v16, 0.0  ;;  %v2888_v18 = vmul.f32 %v2886_v53, %v2886_v53 }
0x1d31   :  { %2890 = vadd.xlane.f32.xlu0 %v2889_v17 }
0x1d32   :  { %v2892_v19 = vsel %vm85_vm1, %v2888_v18, 0.0 }
0x1d33   :  { %2893 = vadd.xlane.f32.xlu1 %v2892_v19 }
0x1dbe   :  { %v2891_v20 = vpop.xlane.xlu0 %2890 }
0x1dbf   :  { %v2895_v21 = vmul.f32 0.03125, %v2891_v20 }
0x1dc0   :  { %v2894_v22 = vpop.xlane.xlu1 %2893 }
0x1dc1   :  { %v2897_v23 = vadd.f32 1e-05, %v2895_v21  ;;  %v2896_v24 = vmul.f32 0.03125, %v2894_v22 }
0x1dc3   :  { %3709 = vrsqrt.f32 %v2897_v23  ;;  %v2898_v25 = vadd.f32 1e-05, %v2896_v24 }
0x1dc5   :  { %3711 = vrsqrt.f32 %v2898_v25 }
0x1dcd   :  { %v3710_v30 = vpop.eup %3709 }
0x1dce   :  { %v2901_v3 = vmul.f32 %v3710_v30, %v2885_v15 }
0x1dcf   :  { %v3712_v13 = vpop.eup %3711 }
0x1dd0   :  { %v2909_v4 = vmul.f32 %v3157_v31, %v2901_v3  ;;  %v2902_v32 = vmul.f32 %v3712_v13, %v2886_v53 }
0x1dd2   :  { %v2917_v33 = vadd.f32 %v3158_v14, %v2909_v4  ;;  %v2910_v34 = vmul.f32 %v3157_v31, %v2902_v32 }
0x1dd4   :  { %2919 = vst.msk [vmem:[%s4552_s10] sm:$0xff] %vm85_vm1, %v2917_v33  ;;  %v2918_v36 = vadd.f32 %v3158_v14, %v2910_v34 }
0x1dd6   :  { %2920 = vst.msk [vmem:[%s4552_s10 + $0x8] sm:$0xff] %vm85_vm1, %v2918_v36 }

</bundles_post_ra>
